<compile_context>
chip_gen: v7x
topology: tpu7x:2x2x1
jax: 0.10.0
libtpu: 0.0.40
codegen_flags: <defaults>
</compile_context>

<pallas_src>
import functools

import jax
import jax.numpy as jnp
from jax.experimental import pallas as pl
from jax.experimental.pallas import tpu as pltpu


# ----------------------------------------------------------------------------- fused layer kernel

def _layer_kernel(x_ref, g_ref, b_ref, wqkvr_ref, bqkvr_ref, kc_ref, vc_ref,
                  kok_ref, dmat_ref, wproj_ref, bproj_ref,
                  mg_ref, mb_ref, w0_ref, w1_ref, b1_ref,
                  y_ref, nk_ref, nv_ref,
                  kf_scr, vf_scr, ctx_scr, *,
                  heads, head_dim, t, maxlen, nbasis, scale, eps):
    """One full residual transformer block for one batch element (grid=(B,))."""
    e = heads * head_dim
    tk = maxlen + t

    # ---- pre_r_ln LayerNorm + fused [q|k|v|r] projection (single MXU matmul) ----
    x = x_ref[...].astype(jnp.float32)
    mu = jnp.mean(x, axis=-1, keepdims=True)
    var = jnp.mean(jnp.square(x - mu), axis=-1, keepdims=True)
    xn = (x - mu) * jax.lax.rsqrt(var + eps) * g_ref[...] + b_ref[...]

    qkvr = jnp.dot(xn.astype(jnp.bfloat16), wqkvr_ref[...],
                   preferred_element_type=jnp.float32) + bqkvr_ref[...]
    q = qkvr[:, :e] * jnp.float32(scale)              # muP 1/head_dim folded into q
    k_new = qkvr[:, e:2 * e]
    v_new = qkvr[:, 2 * e:3 * e]
    r = qkvr[:, 3 * e:3 * e + heads * nbasis]         # (t, heads*nbasis)

    kc = kc_ref[...]                                  # (maxlen, e) bf16 cache
    vc = vc_ref[...]

    # ---- K/V assembled in VMEM scratch (no concatenate) ----
    kf_scr[:maxlen, :] = kc
    kf_scr[maxlen:, :] = k_new.astype(kf_scr.dtype)
    vf_scr[:maxlen, :] = vc
    vf_scr[maxlen:, :] = v_new.astype(vf_scr.dtype)

    # rolled KV cache written with boundary-aligned sliced stores (no concat+reslice)
    if t < maxlen:
        nk_ref[:maxlen - t, :] = kc[t:, :]
        nk_ref[maxlen - t:, :] = k_new.astype(nk_ref.dtype)
        nv_ref[:maxlen - t, :] = vc[t:, :]
        nv_ref[maxlen - t:, :] = v_new.astype(nv_ref.dtype)
    else:
        nk_ref[...] = k_new[t - maxlen:, :].astype(nk_ref.dtype)
        nv_ref[...] = v_new[t - maxlen:, :].astype(nv_ref.dtype)

    # ---- clipped-causal band + cached-key gating, built once per batch (hoisted mask) ----
    row = jax.lax.broadcasted_iota(jnp.int32, (t, tk), 0)
    col = jax.lax.broadcasted_iota(jnp.int32, (t, tk), 1)
    band = (col > row) & (col <= row + maxlen)
    allowed = band & (kok_ref[...] > 0.5)             # (1, tk) broadcasts over rows
    mask_add = jnp.where(allowed, 0.0, jnp.float32(-1e9))

    # ---- relative-attention bias for all heads: one batched MXU matmul (no VALU FMA loop) ----
    r3 = r.reshape(t, heads, nbasis)
    relb = jax.lax.dot_general(                       # (t, heads, tk)
        r3, dmat_ref[...],
        dimension_numbers=(((2,), (1,)), ((0,), (0,))),
        preferred_element_type=jnp.float32)

    kf = kf_scr[...]                                  # (tk, e) bf16
    vf = vf_scr[...]
    for h in range(heads):
        sl = slice(h * head_dim, (h + 1) * head_dim)
        qh = q[:, sl].astype(jnp.bfloat16)            # (t, dh)
        logits = jax.lax.dot_general(                 # QK^T, no explicit transpose
            qh, kf[:, sl], dimension_numbers=(((1,), (1,)), ((), ())),
            preferred_element_type=jnp.float32)       # (t, tk)
        logits = logits + relb[:, h, :] + mask_add
        m = jnp.max(logits, axis=-1, keepdims=True)
        p = jnp.exp(logits - m)
        p = p * pl.reciprocal(jnp.sum(p, axis=-1, keepdims=True), approx=True)
        ctx_scr[:, sl] = jnp.dot(p.astype(jnp.bfloat16), vf[:, sl],
                                 preferred_element_type=jnp.float32)

    attn = jnp.dot(ctx_scr[...].astype(jnp.bfloat16), wproj_ref[...],
                   preferred_element_type=jnp.float32) + bproj_ref[...]
    y = xn + attn                                     # SelfAttentionLayer internal residual

    # ---- residual pointwise MLP: y + Linear(ReLU(Linear(LN(y)))) ----
    mu2 = jnp.mean(y, axis=-1, keepdims=True)
    var2 = jnp.mean(jnp.square(y - mu2), axis=-1, keepdims=True)
    yn = (y - mu2) * jax.lax.rsqrt(var2 + eps) * mg_ref[...] + mb_ref[...]
    h1 = jnp.maximum(jnp.dot(yn.astype(jnp.bfloat16), w0_ref[...],
                             preferred_element_type=jnp.float32), 0.0)
    mlp = jnp.dot(h1.astype(jnp.bfloat16), w1_ref[...],
                  preferred_element_type=jnp.float32) + b1_ref[...]
    y_ref[...] = (y + mlp).astype(y_ref.dtype)


def _head_kernel(x_ref, g1_ref, b1_ref, w_ref, g2_ref, b2_ref, o_ref, *, eps):
    """FanInInitReLULayer (LN -> Linear(no bias) -> ReLU) fused with the final LayerNorm."""
    x = x_ref[...].astype(jnp.float32)
    mu = jnp.mean(x, axis=-1, keepdims=True)
    var = jnp.mean(jnp.square(x - mu), axis=-1, keepdims=True)
    xn = (x - mu) * jax.lax.rsqrt(var + eps) * g1_ref[...] + b1_ref[...]
    h = jnp.maximum(jnp.dot(xn.astype(jnp.bfloat16), w_ref[...],
                            preferred_element_type=jnp.float32), 0.0)
    mu2 = jnp.mean(h, axis=-1, keepdims=True)
    var2 = jnp.mean(jnp.square(h - mu2), axis=-1, keepdims=True)
    o_ref[...] = ((h - mu2) * jax.lax.rsqrt(var2 + eps) * g2_ref[...]
                  + b2_ref[...]).astype(o_ref.dtype)


# ----------------------------------------------------------------------------- wrappers

_CPARAMS = dict(vmem_limit_bytes=32 * 1024 * 1024)   # raises v5e's 16MiB default, safe on v7x


def _pick_bm(n):
    """>=2 row tiles whenever possible (feeds both v7x TensorCores), multiples of 8."""
    if n <= 8:
        return n
    for bm in (512, 256, 128, 64, 32, 16, 8):
        if n % bm == 0 and n // bm >= 2:
            return bm
    return n


def transformer_layer(x, k_cache, v_cache, key_ok, dmat, p, *, heads, head_dim,
                      maxlen, nbasis, scale, eps=1e-5):
    bsz, t, e = x.shape
    tk = maxlen + t
    dqkvr = p["w_qkvr"].shape[1]
    dmid = p["w0"].shape[1]
    kern = functools.partial(_layer_kernel, heads=heads, head_dim=head_dim, t=t,
                             maxlen=maxlen, nbasis=nbasis, scale=scale, eps=eps)
    return pl.pallas_call(
        kern,
        out_shape=(jax.ShapeDtypeStruct((bsz, t, e), jnp.bfloat16),       # layer output (bf16)
                   jax.ShapeDtypeStruct((bsz, maxlen, e), jnp.bfloat16),  # new K cache
                   jax.ShapeDtypeStruct((bsz, maxlen, e), jnp.bfloat16)), # new V cache
        grid=(bsz,),
        in_specs=[
            pl.BlockSpec((None, t, e), lambda b: (b, 0, 0)),          # x
            pl.BlockSpec((1, e), lambda b: (0, 0)),                   # pre_ln gamma
            pl.BlockSpec((1, e), lambda b: (0, 0)),                   # pre_ln beta
            pl.BlockSpec((e, dqkvr), lambda b: (0, 0)),               # fused w_qkvr (bf16)
            pl.BlockSpec((1, dqkvr), lambda b: (0, 0)),               # fused b_qkvr
            pl.BlockSpec((None, maxlen, e), lambda b: (b, 0, 0)),     # k cache (bf16)
            pl.BlockSpec((None, maxlen, e), lambda b: (b, 0, 0)),     # v cache (bf16)
            pl.BlockSpec((None, 1, tk), lambda b: (b, 0, 0)),         # cached-key gate
            pl.BlockSpec((t, nbasis, tk), lambda b: (0, 0, 0)),       # banded rel-pos basis
            pl.BlockSpec((e, e), lambda b: (0, 0)),                   # wproj (bf16)
            pl.BlockSpec((1, e), lambda b: (0, 0)),                   # bproj
            pl.BlockSpec((1, e), lambda b: (0, 0)),                   # mlp0 LN gamma
            pl.BlockSpec((1, e), lambda b: (0, 0)),                   # mlp0 LN beta
            pl.BlockSpec((e, dmid), lambda b: (0, 0)),                # w0 (bf16)
            pl.BlockSpec((dmid, e), lambda b: (0, 0)),                # w1 (bf16)
            pl.BlockSpec((1, e), lambda b: (0, 0)),                   # b1
        ],
        out_specs=(pl.BlockSpec((None, t, e), lambda b: (b, 0, 0)),
                   pl.BlockSpec((None, maxlen, e), lambda b: (b, 0, 0)),
                   pl.BlockSpec((None, maxlen, e), lambda b: (b, 0, 0))),
        scratch_shapes=[pltpu.VMEM((tk, e), jnp.bfloat16),            # K assembled
                        pltpu.VMEM((tk, e), jnp.bfloat16),            # V assembled
                        pltpu.VMEM((t, e), jnp.float32)],             # per-head contexts
        compiler_params=pltpu.CompilerParams(dimension_semantics=("parallel",), **_CPARAMS),
    )(x,
      p["pre_ln_g"].reshape(1, e), p["pre_ln_b"].reshape(1, e),
      p["w_qkvr"], p["b_qkvr"].reshape(1, dqkvr),
      k_cache, v_cache, key_ok, dmat,
      p["wproj"], p["bproj"].reshape(1, e),
      p["mlp0_ln_g"].reshape(1, e), p["mlp0_ln_b"].reshape(1, e),
      p["w0"], p["w1"], p["b1"].reshape(1, e))


def head_block(x2d, ln1_g, ln1_b, w, ln2_g, ln2_b, eps=1e-5):
    n, e = x2d.shape
    bm = _pick_bm(n)
    return pl.pallas_call(
        functools.partial(_head_kernel, eps=eps),
        out_shape=jax.ShapeDtypeStruct((n, e), jnp.float32),
        grid=(n // bm,),
        in_specs=[pl.BlockSpec((bm, e), lambda i: (i, 0)),
                  pl.BlockSpec((1, e), lambda i: (0, 0)),
                  pl.BlockSpec((1, e), lambda i: (0, 0)),
                  pl.BlockSpec((e, e), lambda i: (0, 0)),
                  pl.BlockSpec((1, e), lambda i: (0, 0)),
                  pl.BlockSpec((1, e), lambda i: (0, 0))],
        out_specs=pl.BlockSpec((bm, e), lambda i: (i, 0)),
        compiler_params=pltpu.CompilerParams(dimension_semantics=("parallel",), **_CPARAMS),
    )(x2d, ln1_g.reshape(1, e), ln1_b.reshape(1, e), w,
      ln2_g.reshape(1, e), ln2_b.reshape(1, e))


# ----------------------------------------------------------------------------- tiny XLA glue

def _key_gate(state_mask, first, t, maxlen):
    """Cache-key gating (state_mask & ~first) as a float mask (B,1,Tk), plus updated state_mask."""
    bsz = state_mask.shape[0]
    first0 = first[:, :1]                                               # (B, 1)
    cache_ok = state_mask[:, :, 0] & (~first0)                          # (B, maxlen)
    key_ok = jnp.concatenate([cache_ok, jnp.ones((bsz, t), jnp.bool_)], axis=-1)
    new_mask = jnp.concatenate(
        [state_mask[:, t:, 0] & (~first0),
         jnp.ones((bsz, min(t, maxlen)), jnp.bool_)], axis=-1)[:, :, None]
    return key_ok.astype(jnp.float32)[:, None, :], new_mask


def _banded_basis(b_nd, t, maxlen):
    """Banded relative-position basis (t, nbasis, Tk) built once from weights (tiny)."""
    tk = maxlen + t
    i = jnp.arange(t)[:, None]
    j = jnp.arange(tk)[None, :]
    d = (i + maxlen) - j
    valid = (d >= 0) & (d < maxlen)
    col = jnp.clip(maxlen - 1 - d, 0, maxlen - 1)                       # (t, tk)
    dm = jnp.where(valid[None, :, :], b_nd[:, col], 0.0)                # (nbasis, t, tk)
    return jnp.transpose(dm, (1, 0, 2)).astype(jnp.float32)             # (t, nbasis, tk)


# ----------------------------------------------------------------------------- model

def decoder_initial_state(bsz, n_layers, maxlen, e):
    return [(jnp.zeros((bsz, maxlen, 1), jnp.bool_),
             (jnp.zeros((bsz, maxlen, e), jnp.bfloat16),
              jnp.zeros((bsz, maxlen, e), jnp.bfloat16)))
            for _ in range(n_layers)]


def decoder_forward(params, x, memory=None, first=None, *, heads, maxlen):
    bsz, t, e = x.shape
    dh = e // heads
    if first is None:
        first = jnp.zeros((bsz, t), jnp.bool_)
    if memory is None:
        memory = decoder_initial_state(bsz, len(params["blocks"]), maxlen, e)

    new_memory = []
    h = x
    for blk_p, st in zip(params["blocks"], memory):
        state_mask, (k_cache, v_cache) = st
        nbasis = blk_p["b_nd"].shape[0]
        key_ok, new_state_mask = _key_gate(state_mask, first, t, maxlen)
        dmat = _banded_basis(blk_p["b_nd"], t, maxlen)
        h, new_k, new_v = transformer_layer(h, k_cache, v_cache, key_ok, dmat, blk_p,
                                            heads=heads, head_dim=dh, maxlen=maxlen,
                                            nbasis=nbasis, scale=1.0 / dh)  # muP: 1/head_dim
        new_memory.append((new_state_mask, (new_k, new_v)))

    h2 = head_block(h.reshape(bsz * t, e),
                    params["last"]["ln_g"], params["last"]["ln_b"], params["last"]["w"],
                    params["final"]["g"], params["final"]["b"])
    return h2.reshape(bsz, t, e), new_memory


# ----------------------------------------------------------------------------- params

def init_decoder_params(key, e, heads, n_layers, maxlen, nbasis=10, ratio=4):
    keys = iter(jax.random.split(key, 8 * n_layers + 8))

    def dense(din, dout, scale=0.05):
        return scale * jax.random.normal(next(keys), (din, dout), jnp.float32)

    blocks = []
    for _ in range(n_layers):
        wq, wk, wv = dense(e, e), dense(e, e), dense(e, e)
        wr = dense(e, nbasis * heads)
        w_qkvr = jnp.concatenate([wq, wk, wv, wr], axis=1).astype(jnp.bfloat16)
        b_qkvr = jnp.zeros((3 * e + nbasis * heads,), jnp.float32)
        blocks.append(dict(
            pre_ln_g=jnp.ones((e,), jnp.float32), pre_ln_b=jnp.zeros((e,), jnp.float32),
            w_qkvr=w_qkvr, b_qkvr=b_qkvr,
            wproj=dense(e, e).astype(jnp.bfloat16), bproj=jnp.zeros((e,), jnp.float32),
            b_nd=0.1 * jax.random.normal(next(keys), (nbasis, maxlen), jnp.float32),
            mlp0_ln_g=jnp.ones((e,), jnp.float32), mlp0_ln_b=jnp.zeros((e,), jnp.float32),
            w0=dense(e, e * ratio).astype(jnp.bfloat16),
            w1=dense(e * ratio, e).astype(jnp.bfloat16),
            b1=jnp.zeros((e,), jnp.float32),
        ))
    last = dict(ln_g=jnp.ones((e,), jnp.float32), ln_b=jnp.zeros((e,), jnp.float32),
                w=dense(e, e).astype(jnp.bfloat16))
    final = dict(g=jnp.ones((e,), jnp.float32), b=jnp.zeros((e,), jnp.float32))
    return dict(blocks=blocks, last=last, final=final)


# ----------------------------------------------------------------------------- main

if __name__ == "__main__":
    B, T, HID, HEADS, LAYERS, MEM = 2, 8, 32, 4, 2, 16   # hiddim=32, head_dim=8, maxlen=MEM

    key = jax.random.PRNGKey(0)
    kx, kp = jax.random.split(key)
    x = jax.random.normal(kx, (B, T, HID), jnp.float32)
    params = init_decoder_params(kp, HID, HEADS, LAYERS, MEM)

    fwd = jax.jit(functools.partial(decoder_forward, heads=HEADS, maxlen=MEM))
    y, memory_out = fwd(params, x)
    jax.block_until_ready((y, memory_out))

    assert y.shape == (B, T, HID)
    assert len(memory_out) == LAYERS
    assert memory_out[0][0].shape == (B, MEM, 1)
    assert memory_out[0][1][0].shape == (B, MEM, HID)
    assert bool(jnp.all(jnp.isfinite(y)))
    print("KERNEL_OK")
</pallas_src>

<mosaic_0001>
module attributes {stable_mosaic.version = 11 : i64} {
  func.func @_head_kernel(%arg0: i32, %arg1: memref<8x32xbf16, #tpu.memory_space<vmem>>, %arg2: memref<1x32xf32, #tpu.memory_space<vmem>>, %arg3: memref<1x32xf32, #tpu.memory_space<vmem>>, %arg4: memref<32x32xbf16, #tpu.memory_space<vmem>>, %arg5: memref<1x32xf32, #tpu.memory_space<vmem>>, %arg6: memref<1x32xf32, #tpu.memory_space<vmem>>, %arg7: memref<8x32xf32, #tpu.memory_space<vmem>>) attributes {dimension_semantics = [#tpu.dimension_semantics<parallel>], iteration_bounds = array<i64: 2>, scalar_prefetch = 0 : i64, scratch_operands = 0 : i64, tpu.core_type = #tpu.core_type<tc>, window_params = [{transform_indices = @transform_0, window_bounds = array<i64: 8, 32>}, {pipeline_mode = #tpu.pipeline_mode<synchronous>, transform_indices = @transform_1, window_bounds = array<i64: 1, 32>}, {pipeline_mode = #tpu.pipeline_mode<synchronous>, transform_indices = @transform_2, window_bounds = array<i64: 1, 32>}, {pipeline_mode = #tpu.pipeline_mode<synchronous>, transform_indices = @transform_3, window_bounds = array<i64: 32, 32>}, {pipeline_mode = #tpu.pipeline_mode<synchronous>, transform_indices = @transform_4, window_bounds = array<i64: 1, 32>}, {pipeline_mode = #tpu.pipeline_mode<synchronous>, transform_indices = @transform_5, window_bounds = array<i64: 1, 32>}, {transform_indices = @transform_6, window_bounds = array<i64: 8, 32>}]} {
    %c0 = arith.constant 0 : index
    %c0_0 = arith.constant 0 : index
    %0 = vector.load %arg1[%c0, %c0_0] : memref<8x32xbf16, #tpu.memory_space<vmem>>, vector<8x32xbf16>
    %1 = arith.extf %0 : vector<8x32xbf16> to vector<8x32xf32>
    %cst = arith.constant dense<0.000000e+00> : vector<8xf32>
    %2 = vector.multi_reduction <add>, %1, %cst [1] : vector<8x32xf32> to vector<8xf32>
    %3 = vector.shape_cast %2 : vector<8xf32> to vector<8x1xf32>
    %cst_1 = arith.constant 3.200000e+01 : f32
    %4 = vector.broadcast %cst_1 : f32 to vector<8x1xf32>
    %5 = arith.divf %3, %4 : vector<8x1xf32>
    %6 = vector.broadcast %5 : vector<8x1xf32> to vector<8x32xf32>
    %7 = arith.subf %1, %6 : vector<8x32xf32>
    %8 = arith.mulf %7, %7 : vector<8x32xf32>
    %cst_2 = arith.constant dense<0.000000e+00> : vector<8xf32>
    %9 = vector.multi_reduction <add>, %8, %cst_2 [1] : vector<8x32xf32> to vector<8xf32>
    %10 = vector.shape_cast %9 : vector<8xf32> to vector<8x1xf32>
    %cst_3 = arith.constant 3.200000e+01 : f32
    %11 = vector.broadcast %cst_3 : f32 to vector<8x1xf32>
    %12 = arith.divf %10, %11 : vector<8x1xf32>
    %13 = vector.broadcast %5 : vector<8x1xf32> to vector<8x32xf32>
    %14 = arith.subf %1, %13 : vector<8x32xf32>
    %cst_4 = arith.constant 9.99999974E-6 : f32
    %15 = vector.broadcast %cst_4 : f32 to vector<8x1xf32>
    %16 = arith.addf %12, %15 : vector<8x1xf32>
    %17 = math.rsqrt %16 : vector<8x1xf32>
    %18 = vector.broadcast %17 : vector<8x1xf32> to vector<8x32xf32>
    %19 = arith.mulf %14, %18 : vector<8x32xf32>
    %c0_5 = arith.constant 0 : index
    %c0_6 = arith.constant 0 : index
    %20 = vector.load %arg2[%c0_5, %c0_6] : memref<1x32xf32, #tpu.memory_space<vmem>>, vector<1x32xf32>
    %21 = vector.broadcast %20 : vector<1x32xf32> to vector<8x32xf32>
    %22 = arith.mulf %19, %21 : vector<8x32xf32>
    %c0_7 = arith.constant 0 : index
    %c0_8 = arith.constant 0 : index
    %23 = vector.load %arg3[%c0_7, %c0_8] : memref<1x32xf32, #tpu.memory_space<vmem>>, vector<1x32xf32>
    %24 = vector.broadcast %23 : vector<1x32xf32> to vector<8x32xf32>
    %25 = arith.addf %22, %24 : vector<8x32xf32>
    %26 = arith.truncf %25 : vector<8x32xf32> to vector<8x32xbf16>
    %c0_9 = arith.constant 0 : index
    %c0_10 = arith.constant 0 : index
    %27 = vector.load %arg4[%c0_9, %c0_10] : memref<32x32xbf16, #tpu.memory_space<vmem>>, vector<32x32xbf16>
    %cst_11 = arith.constant dense<0.000000e+00> : vector<8x32xf32>
    %28 = tpu.matmul %26, %27, %cst_11 {dimension_numbers = #tpu.dot_dimension_numbers<[1], [0], [0], [1], [0, 0, 1, 1], [], []>} : vector<8x32xbf16>, vector<32x32xbf16>, vector<8x32xf32> -> vector<8x32xf32>
    %cst_12 = arith.constant 0.000000e+00 : f32
    %29 = vector.broadcast %cst_12 : f32 to vector<8x32xf32>
    %30 = arith.maximumf %28, %29 : vector<8x32xf32>
    %cst_13 = arith.constant dense<0.000000e+00> : vector<8xf32>
    %31 = vector.multi_reduction <add>, %30, %cst_13 [1] : vector<8x32xf32> to vector<8xf32>
    %32 = vector.shape_cast %31 : vector<8xf32> to vector<8x1xf32>
    %cst_14 = arith.constant 3.200000e+01 : f32
    %33 = vector.broadcast %cst_14 : f32 to vector<8x1xf32>
    %34 = arith.divf %32, %33 : vector<8x1xf32>
    %35 = vector.broadcast %34 : vector<8x1xf32> to vector<8x32xf32>
    %36 = arith.subf %30, %35 : vector<8x32xf32>
    %37 = arith.mulf %36, %36 : vector<8x32xf32>
    %cst_15 = arith.constant dense<0.000000e+00> : vector<8xf32>
    %38 = vector.multi_reduction <add>, %37, %cst_15 [1] : vector<8x32xf32> to vector<8xf32>
    %39 = vector.shape_cast %38 : vector<8xf32> to vector<8x1xf32>
    %cst_16 = arith.constant 3.200000e+01 : f32
    %40 = vector.broadcast %cst_16 : f32 to vector<8x1xf32>
    %41 = arith.divf %39, %40 : vector<8x1xf32>
    %42 = vector.broadcast %34 : vector<8x1xf32> to vector<8x32xf32>
    %43 = arith.subf %30, %42 : vector<8x32xf32>
    %cst_17 = arith.constant 9.99999974E-6 : f32
    %44 = vector.broadcast %cst_17 : f32 to vector<8x1xf32>
    %45 = arith.addf %41, %44 : vector<8x1xf32>
    %46 = math.rsqrt %45 : vector<8x1xf32>
    %47 = vector.broadcast %46 : vector<8x1xf32> to vector<8x32xf32>
    %48 = arith.mulf %43, %47 : vector<8x32xf32>
    %c0_18 = arith.constant 0 : index
    %c0_19 = arith.constant 0 : index
    %49 = vector.load %arg5[%c0_18, %c0_19] : memref<1x32xf32, #tpu.memory_space<vmem>>, vector<1x32xf32>
    %50 = vector.broadcast %49 : vector<1x32xf32> to vector<8x32xf32>
    %51 = arith.mulf %48, %50 : vector<8x32xf32>
    %c0_20 = arith.constant 0 : index
    %c0_21 = arith.constant 0 : index
    %52 = vector.load %arg6[%c0_20, %c0_21] : memref<1x32xf32, #tpu.memory_space<vmem>>, vector<1x32xf32>
    %53 = vector.broadcast %52 : vector<1x32xf32> to vector<8x32xf32>
    %54 = arith.addf %51, %53 : vector<8x32xf32>
    %c0_22 = arith.constant 0 : index
    %c0_23 = arith.constant 0 : index
    %55 = vector.load %arg7[%c0_22, %c0_23] : memref<8x32xf32, #tpu.memory_space<vmem>>, vector<8x32xf32>
    tpu.vector_store %arg7[%c0_22, %c0_23], %54 {strides = array<i32>} : memref<8x32xf32, #tpu.memory_space<vmem>>, vector<8x32xf32>,
    return
  }
  func.func @transform_0(%arg0: i32) -> (i32, i32) {
    %c0_i32 = arith.constant 0 : i32
    %c0_i32_0 = arith.constant 0 : i32
    return %arg0, %c0_i32 : i32, i32
  }
  func.func @transform_1(%arg0: i32) -> (i32, i32) {
    %c0_i32 = arith.constant 0 : i32
    %c0_i32_0 = arith.constant 0 : i32
    %c0_i32_1 = arith.constant 0 : i32
    return %c0_i32, %c0_i32_0 : i32, i32
  }
  func.func @transform_2(%arg0: i32) -> (i32, i32) {
    %c0_i32 = arith.constant 0 : i32
    %c0_i32_0 = arith.constant 0 : i32
    %c0_i32_1 = arith.constant 0 : i32
    return %c0_i32, %c0_i32_0 : i32, i32
  }
  func.func @transform_3(%arg0: i32) -> (i32, i32) {
    %c0_i32 = arith.constant 0 : i32
    %c0_i32_0 = arith.constant 0 : i32
    %c0_i32_1 = arith.constant 0 : i32
    return %c0_i32, %c0_i32_0 : i32, i32
  }
  func.func @transform_4(%arg0: i32) -> (i32, i32) {
    %c0_i32 = arith.constant 0 : i32
    %c0_i32_0 = arith.constant 0 : i32
    %c0_i32_1 = arith.constant 0 : i32
    return %c0_i32, %c0_i32_0 : i32, i32
  }
  func.func @transform_5(%arg0: i32) -> (i32, i32) {
    %c0_i32 = arith.constant 0 : i32
    %c0_i32_0 = arith.constant 0 : i32
    %c0_i32_1 = arith.constant 0 : i32
    return %c0_i32, %c0_i32_0 : i32, i32
  }
  func.func @transform_6(%arg0: i32) -> (i32, i32) {
    %c0_i32 = arith.constant 0 : i32
    %c0_i32_0 = arith.constant 0 : i32
    return %arg0, %c0_i32 : i32, i32
  }
}

module attributes {stable_mosaic.version = 11 : i64} {
  func.func @_layer_kernel(%arg0: i32, %arg1: memref<1x8x32xbf16, #tpu.memory_space<vmem>>, %arg2: memref<1x32xf32, #tpu.memory_space<vmem>>, %arg3: memref<1x32xf32, #tpu.memory_space<vmem>>, %arg4: memref<32x136xbf16, #tpu.memory_space<vmem>>, %arg5: memref<1x136xf32, #tpu.memory_space<vmem>>, %arg6: memref<1x16x32xbf16, #tpu.memory_space<vmem>>, %arg7: memref<1x16x32xbf16, #tpu.memory_space<vmem>>, %arg8: memref<1x1x24xf32, #tpu.memory_space<vmem>>, %arg9: memref<8x10x24xf32, #tpu.memory_space<vmem>>, %arg10: memref<32x32xbf16, #tpu.memory_space<vmem>>, %arg11: memref<1x32xf32, #tpu.memory_space<vmem>>, %arg12: memref<1x32xf32, #tpu.memory_space<vmem>>, %arg13: memref<1x32xf32, #tpu.memory_space<vmem>>, %arg14: memref<32x128xbf16, #tpu.memory_space<vmem>>, %arg15: memref<128x32xbf16, #tpu.memory_space<vmem>>, %arg16: memref<1x32xf32, #tpu.memory_space<vmem>>, %arg17: memref<1x8x32xbf16, #tpu.memory_space<vmem>>, %arg18: memref<1x16x32xbf16, #tpu.memory_space<vmem>>, %arg19: memref<1x16x32xbf16, #tpu.memory_space<vmem>>, %arg20: memref<24x32xbf16, #tpu.memory_space<vmem>>, %arg21: memref<24x32xbf16, #tpu.memory_space<vmem>>, %arg22: memref<8x32xf32, #tpu.memory_space<vmem>>) attributes {dimension_semantics = [#tpu.dimension_semantics<parallel>], iteration_bounds = array<i64: 2>, scalar_prefetch = 0 : i64, scratch_operands = 3 : i64, tpu.core_type = #tpu.core_type<tc>, window_params = [{transform_indices = @transform_0, window_bounds = array<i64: 1, 8, 32>}, {pipeline_mode = #tpu.pipeline_mode<synchronous>, transform_indices = @transform_1, window_bounds = array<i64: 1, 32>}, {pipeline_mode = #tpu.pipeline_mode<synchronous>, transform_indices = @transform_2, window_bounds = array<i64: 1, 32>}, {pipeline_mode = #tpu.pipeline_mode<synchronous>, transform_indices = @transform_3, window_bounds = array<i64: 32, 136>}, {pipeline_mode = #tpu.pipeline_mode<synchronous>, transform_indices = @transform_4, window_bounds = array<i64: 1, 136>}, {transform_indices = @transform_5, window_bounds = array<i64: 1, 16, 32>}, {transform_indices = @transform_6, window_bounds = array<i64: 1, 16, 32>}, {transform_indices = @transform_7, window_bounds = array<i64: 1, 1, 24>}, {pipeline_mode = #tpu.pipeline_mode<synchronous>, transform_indices = @transform_8, window_bounds = array<i64: 8, 10, 24>}, {pipeline_mode = #tpu.pipeline_mode<synchronous>, transform_indices = @transform_9, window_bounds = array<i64: 32, 32>}, {pipeline_mode = #tpu.pipeline_mode<synchronous>, transform_indices = @transform_10, window_bounds = array<i64: 1, 32>}, {pipeline_mode = #tpu.pipeline_mode<synchronous>, transform_indices = @transform_11, window_bounds = array<i64: 1, 32>}, {pipeline_mode = #tpu.pipeline_mode<synchronous>, transform_indices = @transform_12, window_bounds = array<i64: 1, 32>}, {pipeline_mode = #tpu.pipeline_mode<synchronous>, transform_indices = @transform_13, window_bounds = array<i64: 32, 128>}, {pipeline_mode = #tpu.pipeline_mode<synchronous>, transform_indices = @transform_14, window_bounds = array<i64: 128, 32>}, {pipeline_mode = #tpu.pipeline_mode<synchronous>, transform_indices = @transform_15, window_bounds = array<i64: 1, 32>}, {transform_indices = @transform_16, window_bounds = array<i64: 1, 8, 32>}, {transform_indices = @transform_17, window_bounds = array<i64: 1, 16, 32>}, {transform_indices = @transform_18, window_bounds = array<i64: 1, 16, 32>}]} {
    %c0 = arith.constant 0 : index
    %c0_0 = arith.constant 0 : index
    %c0_1 = arith.constant 0 : index
    %0 = vector.load %arg1[%c0, %c0_0, %c0_1] : memref<1x8x32xbf16, #tpu.memory_space<vmem>>, vector<1x8x32xbf16>
    %1 = vector.shape_cast %0 : vector<1x8x32xbf16> to vector<8x32xbf16>
    %2 = arith.extf %1 : vector<8x32xbf16> to vector<8x32xf32>
    %cst = arith.constant dense<0.000000e+00> : vector<8xf32>
    %3 = vector.multi_reduction <add>, %2, %cst [1] : vector<8x32xf32> to vector<8xf32>
    %4 = vector.shape_cast %3 : vector<8xf32> to vector<8x1xf32>
    %cst_2 = arith.constant 3.200000e+01 : f32
    %5 = vector.broadcast %cst_2 : f32 to vector<8x1xf32>
    %6 = arith.divf %4, %5 : vector<8x1xf32>
    %7 = vector.broadcast %6 : vector<8x1xf32> to vector<8x32xf32>
    %8 = arith.subf %2, %7 : vector<8x32xf32>
    %9 = arith.mulf %8, %8 : vector<8x32xf32>
    %cst_3 = arith.constant dense<0.000000e+00> : vector<8xf32>
    %10 = vector.multi_reduction <add>, %9, %cst_3 [1] : vector<8x32xf32> to vector<8xf32>
    %11 = vector.shape_cast %10 : vector<8xf32> to vector<8x1xf32>
    %cst_4 = arith.constant 3.200000e+01 : f32
    %12 = vector.broadcast %cst_4 : f32 to vector<8x1xf32>
    %13 = arith.divf %11, %12 : vector<8x1xf32>
    %14 = vector.broadcast %6 : vector<8x1xf32> to vector<8x32xf32>
    %15 = arith.subf %2, %14 : vector<8x32xf32>
    %cst_5 = arith.constant 9.99999974E-6 : f32
    %16 = vector.broadcast %cst_5 : f32 to vector<8x1xf32>
    %17 = arith.addf %13, %16 : vector<8x1xf32>
    %18 = math.rsqrt %17 : vector<8x1xf32>
    %19 = vector.broadcast %18 : vector<8x1xf32> to vector<8x32xf32>
    %20 = arith.mulf %15, %19 : vector<8x32xf32>
    %c0_6 = arith.constant 0 : index
    %c0_7 = arith.constant 0 : index
    %21 = vector.load %arg2[%c0_6, %c0_7] : memref<1x32xf32, #tpu.memory_space<vmem>>, vector<1x32xf32>
    %22 = vector.broadcast %21 : vector<1x32xf32> to vector<8x32xf32>
    %23 = arith.mulf %20, %22 : vector<8x32xf32>
    %c0_8 = arith.constant 0 : index
    %c0_9 = arith.constant 0 : index
    %24 = vector.load %arg3[%c0_8, %c0_9] : memref<1x32xf32, #tpu.memory_space<vmem>>, vector<1x32xf32>
    %25 = vector.broadcast %24 : vector<1x32xf32> to vector<8x32xf32>
    %26 = arith.addf %23, %25 : vector<8x32xf32>
    %27 = arith.truncf %26 : vector<8x32xf32> to vector<8x32xbf16>
    %c0_10 = arith.constant 0 : index
    %c0_11 = arith.constant 0 : index
    %28 = vector.load %arg4[%c0_10, %c0_11] : memref<32x136xbf16, #tpu.memory_space<vmem>>, vector<32x136xbf16>
    %cst_12 = arith.constant dense<0.000000e+00> : vector<8x136xf32>
    %29 = tpu.matmul %27, %28, %cst_12 {dimension_numbers = #tpu.dot_dimension_numbers<[1], [0], [0], [1], [0, 0, 1, 1], [], []>} : vector<8x32xbf16>, vector<32x136xbf16>, vector<8x136xf32> -> vector<8x136xf32>
    %c0_13 = arith.constant 0 : index
    %c0_14 = arith.constant 0 : index
    %30 = vector.load %arg5[%c0_13, %c0_14] : memref<1x136xf32, #tpu.memory_space<vmem>>, vector<1x136xf32>
    %31 = vector.broadcast %30 : vector<1x136xf32> to vector<8x136xf32>
    %32 = arith.addf %29, %31 : vector<8x136xf32>
    %33 = vector.extract_strided_slice %32 {offsets = [0, 0], sizes = [8, 32], strides = [1, 1]} : vector<8x136xf32> to vector<8x32xf32>
    %cst_15 = arith.constant 1.250000e-01 : f32
    %34 = vector.broadcast %cst_15 : f32 to vector<8x32xf32>
    %35 = arith.mulf %33, %34 : vector<8x32xf32>
    %36 = vector.extract_strided_slice %32 {offsets = [0, 32], sizes = [8, 32], strides = [1, 1]} : vector<8x136xf32> to vector<8x32xf32>
    %37 = vector.extract_strided_slice %32 {offsets = [0, 64], sizes = [8, 32], strides = [1, 1]} : vector<8x136xf32> to vector<8x32xf32>
    %38 = vector.extract_strided_slice %32 {offsets = [0, 96], sizes = [8, 40], strides = [1, 1]} : vector<8x136xf32> to vector<8x40xf32>
    %c0_16 = arith.constant 0 : index
    %c0_17 = arith.constant 0 : index
    %c0_18 = arith.constant 0 : index
    %39 = vector.load %arg6[%c0_16, %c0_17, %c0_18] : memref<1x16x32xbf16, #tpu.memory_space<vmem>>, vector<1x16x32xbf16>
    %40 = vector.shape_cast %39 : vector<1x16x32xbf16> to vector<16x32xbf16>
    %c0_19 = arith.constant 0 : index
    %c0_20 = arith.constant 0 : index
    %c0_21 = arith.constant 0 : index
    %41 = vector.load %arg7[%c0_19, %c0_20, %c0_21] : memref<1x16x32xbf16, #tpu.memory_space<vmem>>, vector<1x16x32xbf16>
    %42 = vector.shape_cast %41 : vector<1x16x32xbf16> to vector<16x32xbf16>
    %c0_22 = arith.constant 0 : index
    %c0_23 = arith.constant 0 : index
    %43 = vector.load %arg20[%c0_22, %c0_23] : memref<24x32xbf16, #tpu.memory_space<vmem>>, vector<16x32xbf16>
    tpu.vector_store %arg20[%c0_22, %c0_23], %40 {strides = array<i32>} : memref<24x32xbf16, #tpu.memory_space<vmem>>, vector<16x32xbf16>,
    %44 = arith.truncf %36 : vector<8x32xf32> to vector<8x32xbf16>
    %c16 = arith.constant 16 : index
    %c0_24 = arith.constant 0 : index
    %45 = vector.load %arg20[%c16, %c0_24] : memref<24x32xbf16, #tpu.memory_space<vmem>>, vector<8x32xbf16>
    tpu.vector_store %arg20[%c16, %c0_24], %44 {strides = array<i32>} : memref<24x32xbf16, #tpu.memory_space<vmem>>, vector<8x32xbf16>,
    %c0_25 = arith.constant 0 : index
    %c0_26 = arith.constant 0 : index
    %46 = vector.load %arg21[%c0_25, %c0_26] : memref<24x32xbf16, #tpu.memory_space<vmem>>, vector<16x32xbf16>
    tpu.vector_store %arg21[%c0_25, %c0_26], %42 {strides = array<i32>} : memref<24x32xbf16, #tpu.memory_space<vmem>>, vector<16x32xbf16>,
    %47 = arith.truncf %37 : vector<8x32xf32> to vector<8x32xbf16>
    %c16_27 = arith.constant 16 : index
    %c0_28 = arith.constant 0 : index
    %48 = vector.load %arg21[%c16_27, %c0_28] : memref<24x32xbf16, #tpu.memory_space<vmem>>, vector<8x32xbf16>
    tpu.vector_store %arg21[%c16_27, %c0_28], %47 {strides = array<i32>} : memref<24x32xbf16, #tpu.memory_space<vmem>>, vector<8x32xbf16>,
    %49 = vector.extract_strided_slice %40 {offsets = [8, 0], sizes = [8, 32], strides = [1, 1]} : vector<16x32xbf16> to vector<8x32xbf16>
    %c0_29 = arith.constant 0 : index
    %c0_30 = arith.constant 0 : index
    %c0_31 = arith.constant 0 : index
    %50 = vector.load %arg18[%c0_29, %c0_30, %c0_31] : memref<1x16x32xbf16, #tpu.memory_space<vmem>>, vector<1x8x32xbf16>
    %51 = vector.shape_cast %50 : vector<1x8x32xbf16> to vector<8x32xbf16>
    %52 = vector.shape_cast %49 : vector<8x32xbf16> to vector<1x8x32xbf16>
    tpu.vector_store %arg18[%c0_29, %c0_30, %c0_31], %52 {strides = array<i32>} : memref<1x16x32xbf16, #tpu.memory_space<vmem>>, vector<1x8x32xbf16>,
    %53 = arith.truncf %36 : vector<8x32xf32> to vector<8x32xbf16>
    %c0_32 = arith.constant 0 : index
    %c8 = arith.constant 8 : index
    %c0_33 = arith.constant 0 : index
    %54 = vector.load %arg18[%c0_32, %c8, %c0_33] : memref<1x16x32xbf16, #tpu.memory_space<vmem>>, vector<1x8x32xbf16>
    %55 = vector.shape_cast %54 : vector<1x8x32xbf16> to vector<8x32xbf16>
    %56 = vector.shape_cast %53 : vector<8x32xbf16> to vector<1x8x32xbf16>
    tpu.vector_store %arg18[%c0_32, %c8, %c0_33], %56 {strides = array<i32>} : memref<1x16x32xbf16, #tpu.memory_space<vmem>>, vector<1x8x32xbf16>,
    %57 = vector.extract_strided_slice %42 {offsets = [8, 0], sizes = [8, 32], strides = [1, 1]} : vector<16x32xbf16> to vector<8x32xbf16>
    %c0_34 = arith.constant 0 : index
    %c0_35 = arith.constant 0 : index
    %c0_36 = arith.constant 0 : index
    %58 = vector.load %arg19[%c0_34, %c0_35, %c0_36] : memref<1x16x32xbf16, #tpu.memory_space<vmem>>, vector<1x8x32xbf16>
    %59 = vector.shape_cast %58 : vector<1x8x32xbf16> to vector<8x32xbf16>
    %60 = vector.shape_cast %57 : vector<8x32xbf16> to vector<1x8x32xbf16>
    tpu.vector_store %arg19[%c0_34, %c0_35, %c0_36], %60 {strides = array<i32>} : memref<1x16x32xbf16, #tpu.memory_space<vmem>>, vector<1x8x32xbf16>,
    %61 = arith.truncf %37 : vector<8x32xf32> to vector<8x32xbf16>
    %c0_37 = arith.constant 0 : index
    %c8_38 = arith.constant 8 : index
    %c0_39 = arith.constant 0 : index
    %62 = vector.load %arg19[%c0_37, %c8_38, %c0_39] : memref<1x16x32xbf16, #tpu.memory_space<vmem>>, vector<1x8x32xbf16>
    %63 = vector.shape_cast %62 : vector<1x8x32xbf16> to vector<8x32xbf16>
    %64 = vector.shape_cast %61 : vector<8x32xbf16> to vector<1x8x32xbf16>
    tpu.vector_store %arg19[%c0_37, %c8_38, %c0_39], %64 {strides = array<i32>} : memref<1x16x32xbf16, #tpu.memory_space<vmem>>, vector<1x8x32xbf16>,
    %65 = tpu.iota {dimensions = array<i32: 0>} : vector<8x24xi32>
    %66 = tpu.iota {dimensions = array<i32: 1>} : vector<8x24xi32>
    %67 = arith.cmpi sgt, %66, %65 : vector<8x24xi32>
    %c16_i32 = arith.constant 16 : i32
    %68 = vector.broadcast %c16_i32 : i32 to vector<8x24xi32>
    %69 = arith.addi %65, %68 : vector<8x24xi32>
    %70 = arith.cmpi sle, %66, %69 : vector<8x24xi32>
    %71 = arith.andi %67, %70 : vector<8x24xi1>
    %c0_40 = arith.constant 0 : index
    %c0_41 = arith.constant 0 : index
    %c0_42 = arith.constant 0 : index
    %72 = vector.load %arg8[%c0_40, %c0_41, %c0_42] : memref<1x1x24xf32, #tpu.memory_space<vmem>>, vector<1x1x24xf32>
    %73 = vector.shape_cast %72 : vector<1x1x24xf32> to vector<1x24xf32>
    %cst_43 = arith.constant 5.000000e-01 : f32
    %74 = vector.broadcast %cst_43 : f32 to vector<1x24xf32>
    %75 = arith.cmpf ogt, %73, %74 : vector<1x24xf32>
    %76 = vector.broadcast %75 : vector<1x24xi1> to vector<8x24xi1>
    %77 = arith.andi %71, %76 : vector<8x24xi1>
    %cst_44 = arith.constant 0.000000e+00 : f32
    %cst_45 = arith.constant -1.000000e+09 : f32
    %78 = vector.broadcast %cst_44 : f32 to vector<8x24xf32>
    %79 = vector.broadcast %cst_45 : f32 to vector<8x24xf32>
    %80 = arith.select %77, %78, %79 : vector<8x24xi1>, vector<8x24xf32>
    %81 = vector.shape_cast %38 : vector<8x40xf32> to vector<8x4x10xf32>
    %c0_46 = arith.constant 0 : index
    %c0_47 = arith.constant 0 : index
    %c0_48 = arith.constant 0 : index
    %82 = vector.load %arg9[%c0_46, %c0_47, %c0_48] : memref<8x10x24xf32, #tpu.memory_space<vmem>>, vector<8x10x24xf32>
    %cst_49 = arith.constant dense<0.000000e+00> : vector<8x4x24xf32>
    %83 = tpu.matmul %81, %82, %cst_49 {dimension_numbers = #tpu.dot_dimension_numbers<[2], [1], [1], [2], [0, 0, 0, 1, 1, 2], [0], [0]>} : vector<8x4x10xf32>, vector<8x10x24xf32>, vector<8x4x24xf32> -> vector<8x4x24xf32>
    %c0_50 = arith.constant 0 : index
    %c0_51 = arith.constant 0 : index
    %84 = vector.load %arg20[%c0_50, %c0_51] : memref<24x32xbf16, #tpu.memory_space<vmem>>, vector<24x32xbf16>
    %c0_52 = arith.constant 0 : index
    %c0_53 = arith.constant 0 : index
    %85 = vector.load %arg21[%c0_52, %c0_53] : memref<24x32xbf16, #tpu.memory_space<vmem>>, vector<24x32xbf16>
    %86 = vector.extract_strided_slice %35 {offsets = [0, 0], sizes = [8, 8], strides = [1, 1]} : vector<8x32xf32> to vector<8x8xf32>
    %87 = arith.truncf %86 : vector<8x8xf32> to vector<8x8xbf16>
    %88 = vector.extract_strided_slice %84 {offsets = [0, 0], sizes = [24, 8], strides = [1, 1]} : vector<24x32xbf16> to vector<24x8xbf16>
    %cst_54 = arith.constant dense<0.000000e+00> : vector<8x24xf32>
    %89 = tpu.matmul %87, %88, %cst_54 {dimension_numbers = #tpu.dot_dimension_numbers<[1], [1], [0], [0], [0, 0, 1, 0], [], []>} : vector<8x8xbf16>, vector<24x8xbf16>, vector<8x24xf32> -> vector<8x24xf32>
    %90 = vector.extract_strided_slice %83 {offsets = [0, 0, 0], sizes = [8, 1, 24], strides = [1, 1, 1]} : vector<8x4x24xf32> to vector<8x1x24xf32>
    %91 = vector.shape_cast %90 : vector<8x1x24xf32> to vector<8x24xf32>
    %92 = arith.addf %89, %91 : vector<8x24xf32>
    %93 = arith.addf %92, %80 : vector<8x24xf32>
    %cst_55 = arith.constant dense<0xFF800000> : vector<8xf32>
    %94 = vector.multi_reduction <maximumf>, %93, %cst_55 [1] : vector<8x24xf32> to vector<8xf32>
    %95 = vector.shape_cast %94 : vector<8xf32> to vector<8x1xf32>
    %96 = vector.broadcast %95 : vector<8x1xf32> to vector<8x24xf32>
    %97 = arith.subf %93, %96 : vector<8x24xf32>
    %98 = math.exp %97 : vector<8x24xf32>
    %cst_56 = arith.constant dense<0.000000e+00> : vector<8xf32>
    %99 = vector.multi_reduction <add>, %98, %cst_56 [1] : vector<8x24xf32> to vector<8xf32>
    %100 = vector.shape_cast %99 : vector<8xf32> to vector<8x1xf32>
    %101 = tpu.reciprocal %100 {approx = true} : vector<8x1xf32> -> vector<8x1xf32>
    %102 = vector.broadcast %101 : vector<8x1xf32> to vector<8x24xf32>
    %103 = arith.mulf %98, %102 : vector<8x24xf32>
    %104 = arith.truncf %103 : vector<8x24xf32> to vector<8x24xbf16>
    %105 = vector.extract_strided_slice %85 {offsets = [0, 0], sizes = [24, 8], strides = [1, 1]} : vector<24x32xbf16> to vector<24x8xbf16>
    %cst_57 = arith.constant dense<0.000000e+00> : vector<8x8xf32>
    %106 = tpu.matmul %104, %105, %cst_57 {dimension_numbers = #tpu.dot_dimension_numbers<[1], [0], [0], [1], [0, 0, 1, 1], [], []>} : vector<8x24xbf16>, vector<24x8xbf16>, vector<8x8xf32> -> vector<8x8xf32>
    %c0_58 = arith.constant 0 : index
    %c0_59 = arith.constant 0 : index
    %107 = vector.load %arg22[%c0_58, %c0_59] : memref<8x32xf32, #tpu.memory_space<vmem>>, vector<8x8xf32>
    tpu.vector_store %arg22[%c0_58, %c0_59], %106 {strides = array<i32>} : memref<8x32xf32, #tpu.memory_space<vmem>>, vector<8x8xf32>,
    %108 = vector.extract_strided_slice %35 {offsets = [0, 8], sizes = [8, 8], strides = [1, 1]} : vector<8x32xf32> to vector<8x8xf32>
    %109 = arith.truncf %108 : vector<8x8xf32> to vector<8x8xbf16>
    %110 = vector.extract_strided_slice %84 {offsets = [0, 8], sizes = [24, 8], strides = [1, 1]} : vector<24x32xbf16> to vector<24x8xbf16>
    %cst_60 = arith.constant dense<0.000000e+00> : vector<8x24xf32>
    %111 = tpu.matmul %109, %110, %cst_60 {dimension_numbers = #tpu.dot_dimension_numbers<[1], [1], [0], [0], [0, 0, 1, 0], [], []>} : vector<8x8xbf16>, vector<24x8xbf16>, vector<8x24xf32> -> vector<8x24xf32>
    %112 = vector.extract_strided_slice %83 {offsets = [0, 1, 0], sizes = [8, 1, 24], strides = [1, 1, 1]} : vector<8x4x24xf32> to vector<8x1x24xf32>
    %113 = vector.shape_cast %112 : vector<8x1x24xf32> to vector<8x24xf32>
    %114 = arith.addf %111, %113 : vector<8x24xf32>
    %115 = arith.addf %114, %80 : vector<8x24xf32>
    %cst_61 = arith.constant dense<0xFF800000> : vector<8xf32>
    %116 = vector.multi_reduction <maximumf>, %115, %cst_61 [1] : vector<8x24xf32> to vector<8xf32>
    %117 = vector.shape_cast %116 : vector<8xf32> to vector<8x1xf32>
    %118 = vector.broadcast %117 : vector<8x1xf32> to vector<8x24xf32>
    %119 = arith.subf %115, %118 : vector<8x24xf32>
    %120 = math.exp %119 : vector<8x24xf32>
    %cst_62 = arith.constant dense<0.000000e+00> : vector<8xf32>
    %121 = vector.multi_reduction <add>, %120, %cst_62 [1] : vector<8x24xf32> to vector<8xf32>
    %122 = vector.shape_cast %121 : vector<8xf32> to vector<8x1xf32>
    %123 = tpu.reciprocal %122 {approx = true} : vector<8x1xf32> -> vector<8x1xf32>
    %124 = vector.broadcast %123 : vector<8x1xf32> to vector<8x24xf32>
    %125 = arith.mulf %120, %124 : vector<8x24xf32>
    %126 = arith.truncf %125 : vector<8x24xf32> to vector<8x24xbf16>
    %127 = vector.extract_strided_slice %85 {offsets = [0, 8], sizes = [24, 8], strides = [1, 1]} : vector<24x32xbf16> to vector<24x8xbf16>
    %cst_63 = arith.constant dense<0.000000e+00> : vector<8x8xf32>
    %128 = tpu.matmul %126, %127, %cst_63 {dimension_numbers = #tpu.dot_dimension_numbers<[1], [0], [0], [1], [0, 0, 1, 1], [], []>} : vector<8x24xbf16>, vector<24x8xbf16>, vector<8x8xf32> -> vector<8x8xf32>
    %c0_64 = arith.constant 0 : index
    %c8_65 = arith.constant 8 : index
    %129 = vector.load %arg22[%c0_64, %c8_65] : memref<8x32xf32, #tpu.memory_space<vmem>>, vector<8x8xf32>
    tpu.vector_store %arg22[%c0_64, %c8_65], %128 {strides = array<i32>} : memref<8x32xf32, #tpu.memory_space<vmem>>, vector<8x8xf32>,
    %130 = vector.extract_strided_slice %35 {offsets = [0, 16], sizes = [8, 8], strides = [1, 1]} : vector<8x32xf32> to vector<8x8xf32>
    %131 = arith.truncf %130 : vector<8x8xf32> to vector<8x8xbf16>
    %132 = vector.extract_strided_slice %84 {offsets = [0, 16], sizes = [24, 8], strides = [1, 1]} : vector<24x32xbf16> to vector<24x8xbf16>
    %cst_66 = arith.constant dense<0.000000e+00> : vector<8x24xf32>
    %133 = tpu.matmul %131, %132, %cst_66 {dimension_numbers = #tpu.dot_dimension_numbers<[1], [1], [0], [0], [0, 0, 1, 0], [], []>} : vector<8x8xbf16>, vector<24x8xbf16>, vector<8x24xf32> -> vector<8x24xf32>
    %134 = vector.extract_strided_slice %83 {offsets = [0, 2, 0], sizes = [8, 1, 24], strides = [1, 1, 1]} : vector<8x4x24xf32> to vector<8x1x24xf32>
    %135 = vector.shape_cast %134 : vector<8x1x24xf32> to vector<8x24xf32>
    %136 = arith.addf %133, %135 : vector<8x24xf32>
    %137 = arith.addf %136, %80 : vector<8x24xf32>
    %cst_67 = arith.constant dense<0xFF800000> : vector<8xf32>
    %138 = vector.multi_reduction <maximumf>, %137, %cst_67 [1] : vector<8x24xf32> to vector<8xf32>
    %139 = vector.shape_cast %138 : vector<8xf32> to vector<8x1xf32>
    %140 = vector.broadcast %139 : vector<8x1xf32> to vector<8x24xf32>
    %141 = arith.subf %137, %140 : vector<8x24xf32>
    %142 = math.exp %141 : vector<8x24xf32>
    %cst_68 = arith.constant dense<0.000000e+00> : vector<8xf32>
    %143 = vector.multi_reduction <add>, %142, %cst_68 [1] : vector<8x24xf32> to vector<8xf32>
    %144 = vector.shape_cast %143 : vector<8xf32> to vector<8x1xf32>
    %145 = tpu.reciprocal %144 {approx = true} : vector<8x1xf32> -> vector<8x1xf32>
    %146 = vector.broadcast %145 : vector<8x1xf32> to vector<8x24xf32>
    %147 = arith.mulf %142, %146 : vector<8x24xf32>
    %148 = arith.truncf %147 : vector<8x24xf32> to vector<8x24xbf16>
    %149 = vector.extract_strided_slice %85 {offsets = [0, 16], sizes = [24, 8], strides = [1, 1]} : vector<24x32xbf16> to vector<24x8xbf16>
    %cst_69 = arith.constant dense<0.000000e+00> : vector<8x8xf32>
    %150 = tpu.matmul %148, %149, %cst_69 {dimension_numbers = #tpu.dot_dimension_numbers<[1], [0], [0], [1], [0, 0, 1, 1], [], []>} : vector<8x24xbf16>, vector<24x8xbf16>, vector<8x8xf32> -> vector<8x8xf32>
    %c0_70 = arith.constant 0 : index
    %c16_71 = arith.constant 16 : index
    %151 = vector.load %arg22[%c0_70, %c16_71] : memref<8x32xf32, #tpu.memory_space<vmem>>, vector<8x8xf32>
    tpu.vector_store %arg22[%c0_70, %c16_71], %150 {strides = array<i32>} : memref<8x32xf32, #tpu.memory_space<vmem>>, vector<8x8xf32>,
    %152 = vector.extract_strided_slice %35 {offsets = [0, 24], sizes = [8, 8], strides = [1, 1]} : vector<8x32xf32> to vector<8x8xf32>
    %153 = arith.truncf %152 : vector<8x8xf32> to vector<8x8xbf16>
    %154 = vector.extract_strided_slice %84 {offsets = [0, 24], sizes = [24, 8], strides = [1, 1]} : vector<24x32xbf16> to vector<24x8xbf16>
    %cst_72 = arith.constant dense<0.000000e+00> : vector<8x24xf32>
    %155 = tpu.matmul %153, %154, %cst_72 {dimension_numbers = #tpu.dot_dimension_numbers<[1], [1], [0], [0], [0, 0, 1, 0], [], []>} : vector<8x8xbf16>, vector<24x8xbf16>, vector<8x24xf32> -> vector<8x24xf32>
    %156 = vector.extract_strided_slice %83 {offsets = [0, 3, 0], sizes = [8, 1, 24], strides = [1, 1, 1]} : vector<8x4x24xf32> to vector<8x1x24xf32>
    %157 = vector.shape_cast %156 : vector<8x1x24xf32> to vector<8x24xf32>
    %158 = arith.addf %155, %157 : vector<8x24xf32>
    %159 = arith.addf %158, %80 : vector<8x24xf32>
    %cst_73 = arith.constant dense<0xFF800000> : vector<8xf32>
    %160 = vector.multi_reduction <maximumf>, %159, %cst_73 [1] : vector<8x24xf32> to vector<8xf32>
    %161 = vector.shape_cast %160 : vector<8xf32> to vector<8x1xf32>
    %162 = vector.broadcast %161 : vector<8x1xf32> to vector<8x24xf32>
    %163 = arith.subf %159, %162 : vector<8x24xf32>
    %164 = math.exp %163 : vector<8x24xf32>
    %cst_74 = arith.constant dense<0.000000e+00> : vector<8xf32>
    %165 = vector.multi_reduction <add>, %164, %cst_74 [1] : vector<8x24xf32> to vector<8xf32>
    %166 = vector.shape_cast %165 : vector<8xf32> to vector<8x1xf32>
    %167 = tpu.reciprocal %166 {approx = true} : vector<8x1xf32> -> vector<8x1xf32>
    %168 = vector.broadcast %167 : vector<8x1xf32> to vector<8x24xf32>
    %169 = arith.mulf %164, %168 : vector<8x24xf32>
    %170 = arith.truncf %169 : vector<8x24xf32> to vector<8x24xbf16>
    %171 = vector.extract_strided_slice %85 {offsets = [0, 24], sizes = [24, 8], strides = [1, 1]} : vector<24x32xbf16> to vector<24x8xbf16>
    %cst_75 = arith.constant dense<0.000000e+00> : vector<8x8xf32>
    %172 = tpu.matmul %170, %171, %cst_75 {dimension_numbers = #tpu.dot_dimension_numbers<[1], [0], [0], [1], [0, 0, 1, 1], [], []>} : vector<8x24xbf16>, vector<24x8xbf16>, vector<8x8xf32> -> vector<8x8xf32>
    %c0_76 = arith.constant 0 : index
    %c24 = arith.constant 24 : index
    %173 = vector.load %arg22[%c0_76, %c24] : memref<8x32xf32, #tpu.memory_space<vmem>>, vector<8x8xf32>
    tpu.vector_store %arg22[%c0_76, %c24], %172 {strides = array<i32>} : memref<8x32xf32, #tpu.memory_space<vmem>>, vector<8x8xf32>,
    %c0_77 = arith.constant 0 : index
    %c0_78 = arith.constant 0 : index
    %174 = vector.load %arg22[%c0_77, %c0_78] : memref<8x32xf32, #tpu.memory_space<vmem>>, vector<8x32xf32>
    %175 = arith.truncf %174 : vector<8x32xf32> to vector<8x32xbf16>
    %c0_79 = arith.constant 0 : index
    %c0_80 = arith.constant 0 : index
    %176 = vector.load %arg10[%c0_79, %c0_80] : memref<32x32xbf16, #tpu.memory_space<vmem>>, vector<32x32xbf16>
    %cst_81 = arith.constant dense<0.000000e+00> : vector<8x32xf32>
    %177 = tpu.matmul %175, %176, %cst_81 {dimension_numbers = #tpu.dot_dimension_numbers<[1], [0], [0], [1], [0, 0, 1, 1], [], []>} : vector<8x32xbf16>, vector<32x32xbf16>, vector<8x32xf32> -> vector<8x32xf32>
    %c0_82 = arith.constant 0 : index
    %c0_83 = arith.constant 0 : index
    %178 = vector.load %arg11[%c0_82, %c0_83] : memref<1x32xf32, #tpu.memory_space<vmem>>, vector<1x32xf32>
    %179 = vector.broadcast %178 : vector<1x32xf32> to vector<8x32xf32>
    %180 = arith.addf %177, %179 : vector<8x32xf32>
    %181 = arith.addf %26, %180 : vector<8x32xf32>
    %cst_84 = arith.constant dense<0.000000e+00> : vector<8xf32>
    %182 = vector.multi_reduction <add>, %181, %cst_84 [1] : vector<8x32xf32> to vector<8xf32>
    %183 = vector.shape_cast %182 : vector<8xf32> to vector<8x1xf32>
    %cst_85 = arith.constant 3.200000e+01 : f32
    %184 = vector.broadcast %cst_85 : f32 to vector<8x1xf32>
    %185 = arith.divf %183, %184 : vector<8x1xf32>
    %186 = vector.broadcast %185 : vector<8x1xf32> to vector<8x32xf32>
    %187 = arith.subf %181, %186 : vector<8x32xf32>
    %188 = arith.mulf %187, %187 : vector<8x32xf32>
    %cst_86 = arith.constant dense<0.000000e+00> : vector<8xf32>
    %189 = vector.multi_reduction <add>, %188, %cst_86 [1] : vector<8x32xf32> to vector<8xf32>
    %190 = vector.shape_cast %189 : vector<8xf32> to vector<8x1xf32>
    %cst_87 = arith.constant 3.200000e+01 : f32
    %191 = vector.broadcast %cst_87 : f32 to vector<8x1xf32>
    %192 = arith.divf %190, %191 : vector<8x1xf32>
    %193 = vector.broadcast %185 : vector<8x1xf32> to vector<8x32xf32>
    %194 = arith.subf %181, %193 : vector<8x32xf32>
    %cst_88 = arith.constant 9.99999974E-6 : f32
    %195 = vector.broadcast %cst_88 : f32 to vector<8x1xf32>
    %196 = arith.addf %192, %195 : vector<8x1xf32>
    %197 = math.rsqrt %196 : vector<8x1xf32>
    %198 = vector.broadcast %197 : vector<8x1xf32> to vector<8x32xf32>
    %199 = arith.mulf %194, %198 : vector<8x32xf32>
    %c0_89 = arith.constant 0 : index
    %c0_90 = arith.constant 0 : index
    %200 = vector.load %arg12[%c0_89, %c0_90] : memref<1x32xf32, #tpu.memory_space<vmem>>, vector<1x32xf32>
    %201 = vector.broadcast %200 : vector<1x32xf32> to vector<8x32xf32>
    %202 = arith.mulf %199, %201 : vector<8x32xf32>
    %c0_91 = arith.constant 0 : index
    %c0_92 = arith.constant 0 : index
    %203 = vector.load %arg13[%c0_91, %c0_92] : memref<1x32xf32, #tpu.memory_space<vmem>>, vector<1x32xf32>
    %204 = vector.broadcast %203 : vector<1x32xf32> to vector<8x32xf32>
    %205 = arith.addf %202, %204 : vector<8x32xf32>
    %206 = arith.truncf %205 : vector<8x32xf32> to vector<8x32xbf16>
    %c0_93 = arith.constant 0 : index
    %c0_94 = arith.constant 0 : index
    %207 = vector.load %arg14[%c0_93, %c0_94] : memref<32x128xbf16, #tpu.memory_space<vmem>>, vector<32x128xbf16>
    %cst_95 = arith.constant dense<0.000000e+00> : vector<8x128xf32>
    %208 = tpu.matmul %206, %207, %cst_95 {dimension_numbers = #tpu.dot_dimension_numbers<[1], [0], [0], [1], [0, 0, 1, 1], [], []>} : vector<8x32xbf16>, vector<32x128xbf16>, vector<8x128xf32> -> vector<8x128xf32>
    %cst_96 = arith.constant 0.000000e+00 : f32
    %209 = vector.broadcast %cst_96 : f32 to vector<8x128xf32>
    %210 = arith.maximumf %208, %209 : vector<8x128xf32>
    %211 = arith.truncf %210 : vector<8x128xf32> to vector<8x128xbf16>
    %c0_97 = arith.constant 0 : index
    %c0_98 = arith.constant 0 : index
    %212 = vector.load %arg15[%c0_97, %c0_98] : memref<128x32xbf16, #tpu.memory_space<vmem>>, vector<128x32xbf16>
    %cst_99 = arith.constant dense<0.000000e+00> : vector<8x32xf32>
    %213 = tpu.matmul %211, %212, %cst_99 {dimension_numbers = #tpu.dot_dimension_numbers<[1], [0], [0], [1], [0, 0, 1, 1], [], []>} : vector<8x128xbf16>, vector<128x32xbf16>, vector<8x32xf32> -> vector<8x32xf32>
    %c0_100 = arith.constant 0 : index
    %c0_101 = arith.constant 0 : index
    %214 = vector.load %arg16[%c0_100, %c0_101] : memref<1x32xf32, #tpu.memory_space<vmem>>, vector<1x32xf32>
    %215 = vector.broadcast %214 : vector<1x32xf32> to vector<8x32xf32>
    %216 = arith.addf %213, %215 : vector<8x32xf32>
    %217 = arith.addf %181, %216 : vector<8x32xf32>
    %218 = arith.truncf %217 : vector<8x32xf32> to vector<8x32xbf16>
    %c0_102 = arith.constant 0 : index
    %c0_103 = arith.constant 0 : index
    %c0_104 = arith.constant 0 : index
    %219 = vector.load %arg17[%c0_102, %c0_103, %c0_104] : memref<1x8x32xbf16, #tpu.memory_space<vmem>>, vector<1x8x32xbf16>
    %220 = vector.shape_cast %219 : vector<1x8x32xbf16> to vector<8x32xbf16>
    %221 = vector.shape_cast %218 : vector<8x32xbf16> to vector<1x8x32xbf16>
    tpu.vector_store %arg17[%c0_102, %c0_103, %c0_104], %221 {strides = array<i32>} : memref<1x8x32xbf16, #tpu.memory_space<vmem>>, vector<1x8x32xbf16>,
    return
  }
  func.func @transform_0(%arg0: i32) -> (i32, i32, i32) {
    %c0_i32 = arith.constant 0 : i32
    %c0_i32_0 = arith.constant 0 : i32
    %c0_i32_1 = arith.constant 0 : i32
    return %arg0, %c0_i32, %c0_i32_0 : i32, i32, i32
  }
  func.func @transform_1(%arg0: i32) -> (i32, i32) {
    %c0_i32 = arith.constant 0 : i32
    %c0_i32_0 = arith.constant 0 : i32
    %c0_i32_1 = arith.constant 0 : i32
    return %c0_i32, %c0_i32_0 : i32, i32
  }
  func.func @transform_2(%arg0: i32) -> (i32, i32) {
    %c0_i32 = arith.constant 0 : i32
    %c0_i32_0 = arith.constant 0 : i32
    %c0_i32_1 = arith.constant 0 : i32
    return %c0_i32, %c0_i32_0 : i32, i32
  }
  func.func @transform_3(%arg0: i32) -> (i32, i32) {
    %c0_i32 = arith.constant 0 : i32
    %c0_i32_0 = arith.constant 0 : i32
    %c0_i32_1 = arith.constant 0 : i32
    return %c0_i32, %c0_i32_0 : i32, i32
  }
  func.func @transform_4(%arg0: i32) -> (i32, i32) {
    %c0_i32 = arith.constant 0 : i32
    %c0_i32_0 = arith.constant 0 : i32
    %c0_i32_1 = arith.constant 0 : i32
    return %c0_i32, %c0_i32_0 : i32, i32
  }
  func.func @transform_5(%arg0: i32) -> (i32, i32, i32) {
    %c0_i32 = arith.constant 0 : i32
    %c0_i32_0 = arith.constant 0 : i32
    %c0_i32_1 = arith.constant 0 : i32
    return %arg0, %c0_i32, %c0_i32_0 : i32, i32, i32
  }
  func.func @transform_6(%arg0: i32) -> (i32, i32, i32) {
    %c0_i32 = arith.constant 0 : i32
    %c0_i32_0 = arith.constant 0 : i32
    %c0_i32_1 = arith.constant 0 : i32
    return %arg0, %c0_i32, %c0_i32_0 : i32, i32, i32
  }
  func.func @transform_7(%arg0: i32) -> (i32, i32, i32) {
    %c0_i32 = arith.constant 0 : i32
    %c0_i32_0 = arith.constant 0 : i32
    %c0_i32_1 = arith.constant 0 : i32
    return %arg0, %c0_i32, %c0_i32_0 : i32, i32, i32
  }
  func.func @transform_8(%arg0: i32) -> (i32, i32, i32) {
    %c0_i32 = arith.constant 0 : i32
    %c0_i32_0 = arith.constant 0 : i32
    %c0_i32_1 = arith.constant 0 : i32
    %c0_i32_2 = arith.constant 0 : i32
    return %c0_i32, %c0_i32_0, %c0_i32_1 : i32, i32, i32
  }
  func.func @transform_9(%arg0: i32) -> (i32, i32) {
    %c0_i32 = arith.constant 0 : i32
    %c0_i32_0 = arith.constant 0 : i32
    %c0_i32_1 = arith.constant 0 : i32
    return %c0_i32, %c0_i32_0 : i32, i32
  }
  func.func @transform_10(%arg0: i32) -> (i32, i32) {
    %c0_i32 = arith.constant 0 : i32
    %c0_i32_0 = arith.constant 0 : i32
    %c0_i32_1 = arith.constant 0 : i32
    return %c0_i32, %c0_i32_0 : i32, i32
  }
  func.func @transform_11(%arg0: i32) -> (i32, i32) {
    %c0_i32 = arith.constant 0 : i32
    %c0_i32_0 = arith.constant 0 : i32
    %c0_i32_1 = arith.constant 0 : i32
    return %c0_i32, %c0_i32_0 : i32, i32
  }
  func.func @transform_12(%arg0: i32) -> (i32, i32) {
    %c0_i32 = arith.constant 0 : i32
    %c0_i32_0 = arith.constant 0 : i32
    %c0_i32_1 = arith.constant 0 : i32
    return %c0_i32, %c0_i32_0 : i32, i32
  }
  func.func @transform_13(%arg0: i32) -> (i32, i32) {
    %c0_i32 = arith.constant 0 : i32
    %c0_i32_0 = arith.constant 0 : i32
    %c0_i32_1 = arith.constant 0 : i32
    return %c0_i32, %c0_i32_0 : i32, i32
  }
  func.func @transform_14(%arg0: i32) -> (i32, i32) {
    %c0_i32 = arith.constant 0 : i32
    %c0_i32_0 = arith.constant 0 : i32
    %c0_i32_1 = arith.constant 0 : i32
    return %c0_i32, %c0_i32_0 : i32, i32
  }
  func.func @transform_15(%arg0: i32) -> (i32, i32) {
    %c0_i32 = arith.constant 0 : i32
    %c0_i32_0 = arith.constant 0 : i32
    %c0_i32_1 = arith.constant 0 : i32
    return %c0_i32, %c0_i32_0 : i32, i32
  }
  func.func @transform_16(%arg0: i32) -> (i32, i32, i32) {
    %c0_i32 = arith.constant 0 : i32
    %c0_i32_0 = arith.constant 0 : i32
    %c0_i32_1 = arith.constant 0 : i32
    return %arg0, %c0_i32, %c0_i32_0 : i32, i32, i32
  }
  func.func @transform_17(%arg0: i32) -> (i32, i32, i32) {
    %c0_i32 = arith.constant 0 : i32
    %c0_i32_0 = arith.constant 0 : i32
    %c0_i32_1 = arith.constant 0 : i32
    return %arg0, %c0_i32, %c0_i32_0 : i32, i32, i32
  }
  func.func @transform_18(%arg0: i32) -> (i32, i32, i32) {
    %c0_i32 = arith.constant 0 : i32
    %c0_i32_0 = arith.constant 0 : i32
    %c0_i32_1 = arith.constant 0 : i32
    return %arg0, %c0_i32, %c0_i32_0 : i32, i32, i32
  }
}

module attributes {stable_mosaic.version = 11 : i64} {
  func.func @_layer_kernel(%arg0: i32, %arg1: memref<1x8x32xf32, #tpu.memory_space<vmem>>, %arg2: memref<1x32xf32, #tpu.memory_space<vmem>>, %arg3: memref<1x32xf32, #tpu.memory_space<vmem>>, %arg4: memref<32x136xbf16, #tpu.memory_space<vmem>>, %arg5: memref<1x136xf32, #tpu.memory_space<vmem>>, %arg6: memref<1x16x32xbf16, #tpu.memory_space<vmem>>, %arg7: memref<1x16x32xbf16, #tpu.memory_space<vmem>>, %arg8: memref<1x1x24xf32, #tpu.memory_space<vmem>>, %arg9: memref<8x10x24xf32, #tpu.memory_space<vmem>>, %arg10: memref<32x32xbf16, #tpu.memory_space<vmem>>, %arg11: memref<1x32xf32, #tpu.memory_space<vmem>>, %arg12: memref<1x32xf32, #tpu.memory_space<vmem>>, %arg13: memref<1x32xf32, #tpu.memory_space<vmem>>, %arg14: memref<32x128xbf16, #tpu.memory_space<vmem>>, %arg15: memref<128x32xbf16, #tpu.memory_space<vmem>>, %arg16: memref<1x32xf32, #tpu.memory_space<vmem>>, %arg17: memref<1x8x32xbf16, #tpu.memory_space<vmem>>, %arg18: memref<1x16x32xbf16, #tpu.memory_space<vmem>>, %arg19: memref<1x16x32xbf16, #tpu.memory_space<vmem>>, %arg20: memref<24x32xbf16, #tpu.memory_space<vmem>>, %arg21: memref<24x32xbf16, #tpu.memory_space<vmem>>, %arg22: memref<8x32xf32, #tpu.memory_space<vmem>>) attributes {dimension_semantics = [#tpu.dimension_semantics<parallel>], iteration_bounds = array<i64: 2>, scalar_prefetch = 0 : i64, scratch_operands = 3 : i64, tpu.core_type = #tpu.core_type<tc>, window_params = [{transform_indices = @transform_0, window_bounds = array<i64: 1, 8, 32>}, {pipeline_mode = #tpu.pipeline_mode<synchronous>, transform_indices = @transform_1, window_bounds = array<i64: 1, 32>}, {pipeline_mode = #tpu.pipeline_mode<synchronous>, transform_indices = @transform_2, window_bounds = array<i64: 1, 32>}, {pipeline_mode = #tpu.pipeline_mode<synchronous>, transform_indices = @transform_3, window_bounds = array<i64: 32, 136>}, {pipeline_mode = #tpu.pipeline_mode<synchronous>, transform_indices = @transform_4, window_bounds = array<i64: 1, 136>}, {transform_indices = @transform_5, window_bounds = array<i64: 1, 16, 32>}, {transform_indices = @transform_6, window_bounds = array<i64: 1, 16, 32>}, {transform_indices = @transform_7, window_bounds = array<i64: 1, 1, 24>}, {pipeline_mode = #tpu.pipeline_mode<synchronous>, transform_indices = @transform_8, window_bounds = array<i64: 8, 10, 24>}, {pipeline_mode = #tpu.pipeline_mode<synchronous>, transform_indices = @transform_9, window_bounds = array<i64: 32, 32>}, {pipeline_mode = #tpu.pipeline_mode<synchronous>, transform_indices = @transform_10, window_bounds = array<i64: 1, 32>}, {pipeline_mode = #tpu.pipeline_mode<synchronous>, transform_indices = @transform_11, window_bounds = array<i64: 1, 32>}, {pipeline_mode = #tpu.pipeline_mode<synchronous>, transform_indices = @transform_12, window_bounds = array<i64: 1, 32>}, {pipeline_mode = #tpu.pipeline_mode<synchronous>, transform_indices = @transform_13, window_bounds = array<i64: 32, 128>}, {pipeline_mode = #tpu.pipeline_mode<synchronous>, transform_indices = @transform_14, window_bounds = array<i64: 128, 32>}, {pipeline_mode = #tpu.pipeline_mode<synchronous>, transform_indices = @transform_15, window_bounds = array<i64: 1, 32>}, {transform_indices = @transform_16, window_bounds = array<i64: 1, 8, 32>}, {transform_indices = @transform_17, window_bounds = array<i64: 1, 16, 32>}, {transform_indices = @transform_18, window_bounds = array<i64: 1, 16, 32>}]} {
    %c0 = arith.constant 0 : index
    %c0_0 = arith.constant 0 : index
    %c0_1 = arith.constant 0 : index
    %0 = vector.load %arg1[%c0, %c0_0, %c0_1] : memref<1x8x32xf32, #tpu.memory_space<vmem>>, vector<1x8x32xf32>
    %1 = vector.shape_cast %0 : vector<1x8x32xf32> to vector<8x32xf32>
    %cst = arith.constant dense<0.000000e+00> : vector<8xf32>
    %2 = vector.multi_reduction <add>, %1, %cst [1] : vector<8x32xf32> to vector<8xf32>
    %3 = vector.shape_cast %2 : vector<8xf32> to vector<8x1xf32>
    %cst_2 = arith.constant 3.200000e+01 : f32
    %4 = vector.broadcast %cst_2 : f32 to vector<8x1xf32>
    %5 = arith.divf %3, %4 : vector<8x1xf32>
    %6 = vector.broadcast %5 : vector<8x1xf32> to vector<8x32xf32>
    %7 = arith.subf %1, %6 : vector<8x32xf32>
    %8 = arith.mulf %7, %7 : vector<8x32xf32>
    %cst_3 = arith.constant dense<0.000000e+00> : vector<8xf32>
    %9 = vector.multi_reduction <add>, %8, %cst_3 [1] : vector<8x32xf32> to vector<8xf32>
    %10 = vector.shape_cast %9 : vector<8xf32> to vector<8x1xf32>
    %cst_4 = arith.constant 3.200000e+01 : f32
    %11 = vector.broadcast %cst_4 : f32 to vector<8x1xf32>
    %12 = arith.divf %10, %11 : vector<8x1xf32>
    %13 = vector.broadcast %5 : vector<8x1xf32> to vector<8x32xf32>
    %14 = arith.subf %1, %13 : vector<8x32xf32>
    %cst_5 = arith.constant 9.99999974E-6 : f32
    %15 = vector.broadcast %cst_5 : f32 to vector<8x1xf32>
    %16 = arith.addf %12, %15 : vector<8x1xf32>
    %17 = math.rsqrt %16 : vector<8x1xf32>
    %18 = vector.broadcast %17 : vector<8x1xf32> to vector<8x32xf32>
    %19 = arith.mulf %14, %18 : vector<8x32xf32>
    %c0_6 = arith.constant 0 : index
    %c0_7 = arith.constant 0 : index
    %20 = vector.load %arg2[%c0_6, %c0_7] : memref<1x32xf32, #tpu.memory_space<vmem>>, vector<1x32xf32>
    %21 = vector.broadcast %20 : vector<1x32xf32> to vector<8x32xf32>
    %22 = arith.mulf %19, %21 : vector<8x32xf32>
    %c0_8 = arith.constant 0 : index
    %c0_9 = arith.constant 0 : index
    %23 = vector.load %arg3[%c0_8, %c0_9] : memref<1x32xf32, #tpu.memory_space<vmem>>, vector<1x32xf32>
    %24 = vector.broadcast %23 : vector<1x32xf32> to vector<8x32xf32>
    %25 = arith.addf %22, %24 : vector<8x32xf32>
    %26 = arith.truncf %25 : vector<8x32xf32> to vector<8x32xbf16>
    %c0_10 = arith.constant 0 : index
    %c0_11 = arith.constant 0 : index
    %27 = vector.load %arg4[%c0_10, %c0_11] : memref<32x136xbf16, #tpu.memory_space<vmem>>, vector<32x136xbf16>
    %cst_12 = arith.constant dense<0.000000e+00> : vector<8x136xf32>
    %28 = tpu.matmul %26, %27, %cst_12 {dimension_numbers = #tpu.dot_dimension_numbers<[1], [0], [0], [1], [0, 0, 1, 1], [], []>} : vector<8x32xbf16>, vector<32x136xbf16>, vector<8x136xf32> -> vector<8x136xf32>
    %c0_13 = arith.constant 0 : index
    %c0_14 = arith.constant 0 : index
    %29 = vector.load %arg5[%c0_13, %c0_14] : memref<1x136xf32, #tpu.memory_space<vmem>>, vector<1x136xf32>
    %30 = vector.broadcast %29 : vector<1x136xf32> to vector<8x136xf32>
    %31 = arith.addf %28, %30 : vector<8x136xf32>
    %32 = vector.extract_strided_slice %31 {offsets = [0, 0], sizes = [8, 32], strides = [1, 1]} : vector<8x136xf32> to vector<8x32xf32>
    %cst_15 = arith.constant 1.250000e-01 : f32
    %33 = vector.broadcast %cst_15 : f32 to vector<8x32xf32>
    %34 = arith.mulf %32, %33 : vector<8x32xf32>
    %35 = vector.extract_strided_slice %31 {offsets = [0, 32], sizes = [8, 32], strides = [1, 1]} : vector<8x136xf32> to vector<8x32xf32>
    %36 = vector.extract_strided_slice %31 {offsets = [0, 64], sizes = [8, 32], strides = [1, 1]} : vector<8x136xf32> to vector<8x32xf32>
    %37 = vector.extract_strided_slice %31 {offsets = [0, 96], sizes = [8, 40], strides = [1, 1]} : vector<8x136xf32> to vector<8x40xf32>
    %c0_16 = arith.constant 0 : index
    %c0_17 = arith.constant 0 : index
    %c0_18 = arith.constant 0 : index
    %38 = vector.load %arg6[%c0_16, %c0_17, %c0_18] : memref<1x16x32xbf16, #tpu.memory_space<vmem>>, vector<1x16x32xbf16>
    %39 = vector.shape_cast %38 : vector<1x16x32xbf16> to vector<16x32xbf16>
    %c0_19 = arith.constant 0 : index
    %c0_20 = arith.constant 0 : index
    %c0_21 = arith.constant 0 : index
    %40 = vector.load %arg7[%c0_19, %c0_20, %c0_21] : memref<1x16x32xbf16, #tpu.memory_space<vmem>>, vector<1x16x32xbf16>
    %41 = vector.shape_cast %40 : vector<1x16x32xbf16> to vector<16x32xbf16>
    %c0_22 = arith.constant 0 : index
    %c0_23 = arith.constant 0 : index
    %42 = vector.load %arg20[%c0_22, %c0_23] : memref<24x32xbf16, #tpu.memory_space<vmem>>, vector<16x32xbf16>
    tpu.vector_store %arg20[%c0_22, %c0_23], %39 {strides = array<i32>} : memref<24x32xbf16, #tpu.memory_space<vmem>>, vector<16x32xbf16>,
    %43 = arith.truncf %35 : vector<8x32xf32> to vector<8x32xbf16>
    %c16 = arith.constant 16 : index
    %c0_24 = arith.constant 0 : index
    %44 = vector.load %arg20[%c16, %c0_24] : memref<24x32xbf16, #tpu.memory_space<vmem>>, vector<8x32xbf16>
    tpu.vector_store %arg20[%c16, %c0_24], %43 {strides = array<i32>} : memref<24x32xbf16, #tpu.memory_space<vmem>>, vector<8x32xbf16>,
    %c0_25 = arith.constant 0 : index
    %c0_26 = arith.constant 0 : index
    %45 = vector.load %arg21[%c0_25, %c0_26] : memref<24x32xbf16, #tpu.memory_space<vmem>>, vector<16x32xbf16>
    tpu.vector_store %arg21[%c0_25, %c0_26], %41 {strides = array<i32>} : memref<24x32xbf16, #tpu.memory_space<vmem>>, vector<16x32xbf16>,
    %46 = arith.truncf %36 : vector<8x32xf32> to vector<8x32xbf16>
    %c16_27 = arith.constant 16 : index
    %c0_28 = arith.constant 0 : index
    %47 = vector.load %arg21[%c16_27, %c0_28] : memref<24x32xbf16, #tpu.memory_space<vmem>>, vector<8x32xbf16>
    tpu.vector_store %arg21[%c16_27, %c0_28], %46 {strides = array<i32>} : memref<24x32xbf16, #tpu.memory_space<vmem>>, vector<8x32xbf16>,
    %48 = vector.extract_strided_slice %39 {offsets = [8, 0], sizes = [8, 32], strides = [1, 1]} : vector<16x32xbf16> to vector<8x32xbf16>
    %c0_29 = arith.constant 0 : index
    %c0_30 = arith.constant 0 : index
    %c0_31 = arith.constant 0 : index
    %49 = vector.load %arg18[%c0_29, %c0_30, %c0_31] : memref<1x16x32xbf16, #tpu.memory_space<vmem>>, vector<1x8x32xbf16>
    %50 = vector.shape_cast %49 : vector<1x8x32xbf16> to vector<8x32xbf16>
    %51 = vector.shape_cast %48 : vector<8x32xbf16> to vector<1x8x32xbf16>
    tpu.vector_store %arg18[%c0_29, %c0_30, %c0_31], %51 {strides = array<i32>} : memref<1x16x32xbf16, #tpu.memory_space<vmem>>, vector<1x8x32xbf16>,
    %52 = arith.truncf %35 : vector<8x32xf32> to vector<8x32xbf16>
    %c0_32 = arith.constant 0 : index
    %c8 = arith.constant 8 : index
    %c0_33 = arith.constant 0 : index
    %53 = vector.load %arg18[%c0_32, %c8, %c0_33] : memref<1x16x32xbf16, #tpu.memory_space<vmem>>, vector<1x8x32xbf16>
    %54 = vector.shape_cast %53 : vector<1x8x32xbf16> to vector<8x32xbf16>
    %55 = vector.shape_cast %52 : vector<8x32xbf16> to vector<1x8x32xbf16>
    tpu.vector_store %arg18[%c0_32, %c8, %c0_33], %55 {strides = array<i32>} : memref<1x16x32xbf16, #tpu.memory_space<vmem>>, vector<1x8x32xbf16>,
    %56 = vector.extract_strided_slice %41 {offsets = [8, 0], sizes = [8, 32], strides = [1, 1]} : vector<16x32xbf16> to vector<8x32xbf16>
    %c0_34 = arith.constant 0 : index
    %c0_35 = arith.constant 0 : index
    %c0_36 = arith.constant 0 : index
    %57 = vector.load %arg19[%c0_34, %c0_35, %c0_36] : memref<1x16x32xbf16, #tpu.memory_space<vmem>>, vector<1x8x32xbf16>
    %58 = vector.shape_cast %57 : vector<1x8x32xbf16> to vector<8x32xbf16>
    %59 = vector.shape_cast %56 : vector<8x32xbf16> to vector<1x8x32xbf16>
    tpu.vector_store %arg19[%c0_34, %c0_35, %c0_36], %59 {strides = array<i32>} : memref<1x16x32xbf16, #tpu.memory_space<vmem>>, vector<1x8x32xbf16>,
    %60 = arith.truncf %36 : vector<8x32xf32> to vector<8x32xbf16>
    %c0_37 = arith.constant 0 : index
    %c8_38 = arith.constant 8 : index
    %c0_39 = arith.constant 0 : index
    %61 = vector.load %arg19[%c0_37, %c8_38, %c0_39] : memref<1x16x32xbf16, #tpu.memory_space<vmem>>, vector<1x8x32xbf16>
    %62 = vector.shape_cast %61 : vector<1x8x32xbf16> to vector<8x32xbf16>
    %63 = vector.shape_cast %60 : vector<8x32xbf16> to vector<1x8x32xbf16>
    tpu.vector_store %arg19[%c0_37, %c8_38, %c0_39], %63 {strides = array<i32>} : memref<1x16x32xbf16, #tpu.memory_space<vmem>>, vector<1x8x32xbf16>,
    %64 = tpu.iota {dimensions = array<i32: 0>} : vector<8x24xi32>
    %65 = tpu.iota {dimensions = array<i32: 1>} : vector<8x24xi32>
    %66 = arith.cmpi sgt, %65, %64 : vector<8x24xi32>
    %c16_i32 = arith.constant 16 : i32
    %67 = vector.broadcast %c16_i32 : i32 to vector<8x24xi32>
    %68 = arith.addi %64, %67 : vector<8x24xi32>
    %69 = arith.cmpi sle, %65, %68 : vector<8x24xi32>
    %70 = arith.andi %66, %69 : vector<8x24xi1>
    %c0_40 = arith.constant 0 : index
    %c0_41 = arith.constant 0 : index
    %c0_42 = arith.constant 0 : index
    %71 = vector.load %arg8[%c0_40, %c0_41, %c0_42] : memref<1x1x24xf32, #tpu.memory_space<vmem>>, vector<1x1x24xf32>
    %72 = vector.shape_cast %71 : vector<1x1x24xf32> to vector<1x24xf32>
    %cst_43 = arith.constant 5.000000e-01 : f32
    %73 = vector.broadcast %cst_43 : f32 to vector<1x24xf32>
    %74 = arith.cmpf ogt, %72, %73 : vector<1x24xf32>
    %75 = vector.broadcast %74 : vector<1x24xi1> to vector<8x24xi1>
    %76 = arith.andi %70, %75 : vector<8x24xi1>
    %cst_44 = arith.constant 0.000000e+00 : f32
    %cst_45 = arith.constant -1.000000e+09 : f32
    %77 = vector.broadcast %cst_44 : f32 to vector<8x24xf32>
    %78 = vector.broadcast %cst_45 : f32 to vector<8x24xf32>
    %79 = arith.select %76, %77, %78 : vector<8x24xi1>, vector<8x24xf32>
    %80 = vector.shape_cast %37 : vector<8x40xf32> to vector<8x4x10xf32>
    %c0_46 = arith.constant 0 : index
    %c0_47 = arith.constant 0 : index
    %c0_48 = arith.constant 0 : index
    %81 = vector.load %arg9[%c0_46, %c0_47, %c0_48] : memref<8x10x24xf32, #tpu.memory_space<vmem>>, vector<8x10x24xf32>
    %cst_49 = arith.constant dense<0.000000e+00> : vector<8x4x24xf32>
    %82 = tpu.matmul %80, %81, %cst_49 {dimension_numbers = #tpu.dot_dimension_numbers<[2], [1], [1], [2], [0, 0, 0, 1, 1, 2], [0], [0]>} : vector<8x4x10xf32>, vector<8x10x24xf32>, vector<8x4x24xf32> -> vector<8x4x24xf32>
    %c0_50 = arith.constant 0 : index
    %c0_51 = arith.constant 0 : index
    %83 = vector.load %arg20[%c0_50, %c0_51] : memref<24x32xbf16, #tpu.memory_space<vmem>>, vector<24x32xbf16>
    %c0_52 = arith.constant 0 : index
    %c0_53 = arith.constant 0 : index
    %84 = vector.load %arg21[%c0_52, %c0_53] : memref<24x32xbf16, #tpu.memory_space<vmem>>, vector<24x32xbf16>
    %85 = vector.extract_strided_slice %34 {offsets = [0, 0], sizes = [8, 8], strides = [1, 1]} : vector<8x32xf32> to vector<8x8xf32>
    %86 = arith.truncf %85 : vector<8x8xf32> to vector<8x8xbf16>
    %87 = vector.extract_strided_slice %83 {offsets = [0, 0], sizes = [24, 8], strides = [1, 1]} : vector<24x32xbf16> to vector<24x8xbf16>
    %cst_54 = arith.constant dense<0.000000e+00> : vector<8x24xf32>
    %88 = tpu.matmul %86, %87, %cst_54 {dimension_numbers = #tpu.dot_dimension_numbers<[1], [1], [0], [0], [0, 0, 1, 0], [], []>} : vector<8x8xbf16>, vector<24x8xbf16>, vector<8x24xf32> -> vector<8x24xf32>
    %89 = vector.extract_strided_slice %82 {offsets = [0, 0, 0], sizes = [8, 1, 24], strides = [1, 1, 1]} : vector<8x4x24xf32> to vector<8x1x24xf32>
    %90 = vector.shape_cast %89 : vector<8x1x24xf32> to vector<8x24xf32>
    %91 = arith.addf %88, %90 : vector<8x24xf32>
    %92 = arith.addf %91, %79 : vector<8x24xf32>
    %cst_55 = arith.constant dense<0xFF800000> : vector<8xf32>
    %93 = vector.multi_reduction <maximumf>, %92, %cst_55 [1] : vector<8x24xf32> to vector<8xf32>
    %94 = vector.shape_cast %93 : vector<8xf32> to vector<8x1xf32>
    %95 = vector.broadcast %94 : vector<8x1xf32> to vector<8x24xf32>
    %96 = arith.subf %92, %95 : vector<8x24xf32>
    %97 = math.exp %96 : vector<8x24xf32>
    %cst_56 = arith.constant dense<0.000000e+00> : vector<8xf32>
    %98 = vector.multi_reduction <add>, %97, %cst_56 [1] : vector<8x24xf32> to vector<8xf32>
    %99 = vector.shape_cast %98 : vector<8xf32> to vector<8x1xf32>
    %100 = tpu.reciprocal %99 {approx = true} : vector<8x1xf32> -> vector<8x1xf32>
    %101 = vector.broadcast %100 : vector<8x1xf32> to vector<8x24xf32>
    %102 = arith.mulf %97, %101 : vector<8x24xf32>
    %103 = arith.truncf %102 : vector<8x24xf32> to vector<8x24xbf16>
    %104 = vector.extract_strided_slice %84 {offsets = [0, 0], sizes = [24, 8], strides = [1, 1]} : vector<24x32xbf16> to vector<24x8xbf16>
    %cst_57 = arith.constant dense<0.000000e+00> : vector<8x8xf32>
    %105 = tpu.matmul %103, %104, %cst_57 {dimension_numbers = #tpu.dot_dimension_numbers<[1], [0], [0], [1], [0, 0, 1, 1], [], []>} : vector<8x24xbf16>, vector<24x8xbf16>, vector<8x8xf32> -> vector<8x8xf32>
    %c0_58 = arith.constant 0 : index
    %c0_59 = arith.constant 0 : index
    %106 = vector.load %arg22[%c0_58, %c0_59] : memref<8x32xf32, #tpu.memory_space<vmem>>, vector<8x8xf32>
    tpu.vector_store %arg22[%c0_58, %c0_59], %105 {strides = array<i32>} : memref<8x32xf32, #tpu.memory_space<vmem>>, vector<8x8xf32>,
    %107 = vector.extract_strided_slice %34 {offsets = [0, 8], sizes = [8, 8], strides = [1, 1]} : vector<8x32xf32> to vector<8x8xf32>
    %108 = arith.truncf %107 : vector<8x8xf32> to vector<8x8xbf16>
    %109 = vector.extract_strided_slice %83 {offsets = [0, 8], sizes = [24, 8], strides = [1, 1]} : vector<24x32xbf16> to vector<24x8xbf16>
    %cst_60 = arith.constant dense<0.000000e+00> : vector<8x24xf32>
    %110 = tpu.matmul %108, %109, %cst_60 {dimension_numbers = #tpu.dot_dimension_numbers<[1], [1], [0], [0], [0, 0, 1, 0], [], []>} : vector<8x8xbf16>, vector<24x8xbf16>, vector<8x24xf32> -> vector<8x24xf32>
    %111 = vector.extract_strided_slice %82 {offsets = [0, 1, 0], sizes = [8, 1, 24], strides = [1, 1, 1]} : vector<8x4x24xf32> to vector<8x1x24xf32>
    %112 = vector.shape_cast %111 : vector<8x1x24xf32> to vector<8x24xf32>
    %113 = arith.addf %110, %112 : vector<8x24xf32>
    %114 = arith.addf %113, %79 : vector<8x24xf32>
    %cst_61 = arith.constant dense<0xFF800000> : vector<8xf32>
    %115 = vector.multi_reduction <maximumf>, %114, %cst_61 [1] : vector<8x24xf32> to vector<8xf32>
    %116 = vector.shape_cast %115 : vector<8xf32> to vector<8x1xf32>
    %117 = vector.broadcast %116 : vector<8x1xf32> to vector<8x24xf32>
    %118 = arith.subf %114, %117 : vector<8x24xf32>
    %119 = math.exp %118 : vector<8x24xf32>
    %cst_62 = arith.constant dense<0.000000e+00> : vector<8xf32>
    %120 = vector.multi_reduction <add>, %119, %cst_62 [1] : vector<8x24xf32> to vector<8xf32>
    %121 = vector.shape_cast %120 : vector<8xf32> to vector<8x1xf32>
    %122 = tpu.reciprocal %121 {approx = true} : vector<8x1xf32> -> vector<8x1xf32>
    %123 = vector.broadcast %122 : vector<8x1xf32> to vector<8x24xf32>
    %124 = arith.mulf %119, %123 : vector<8x24xf32>
    %125 = arith.truncf %124 : vector<8x24xf32> to vector<8x24xbf16>
    %126 = vector.extract_strided_slice %84 {offsets = [0, 8], sizes = [24, 8], strides = [1, 1]} : vector<24x32xbf16> to vector<24x8xbf16>
    %cst_63 = arith.constant dense<0.000000e+00> : vector<8x8xf32>
    %127 = tpu.matmul %125, %126, %cst_63 {dimension_numbers = #tpu.dot_dimension_numbers<[1], [0], [0], [1], [0, 0, 1, 1], [], []>} : vector<8x24xbf16>, vector<24x8xbf16>, vector<8x8xf32> -> vector<8x8xf32>
    %c0_64 = arith.constant 0 : index
    %c8_65 = arith.constant 8 : index
    %128 = vector.load %arg22[%c0_64, %c8_65] : memref<8x32xf32, #tpu.memory_space<vmem>>, vector<8x8xf32>
    tpu.vector_store %arg22[%c0_64, %c8_65], %127 {strides = array<i32>} : memref<8x32xf32, #tpu.memory_space<vmem>>, vector<8x8xf32>,
    %129 = vector.extract_strided_slice %34 {offsets = [0, 16], sizes = [8, 8], strides = [1, 1]} : vector<8x32xf32> to vector<8x8xf32>
    %130 = arith.truncf %129 : vector<8x8xf32> to vector<8x8xbf16>
    %131 = vector.extract_strided_slice %83 {offsets = [0, 16], sizes = [24, 8], strides = [1, 1]} : vector<24x32xbf16> to vector<24x8xbf16>
    %cst_66 = arith.constant dense<0.000000e+00> : vector<8x24xf32>
    %132 = tpu.matmul %130, %131, %cst_66 {dimension_numbers = #tpu.dot_dimension_numbers<[1], [1], [0], [0], [0, 0, 1, 0], [], []>} : vector<8x8xbf16>, vector<24x8xbf16>, vector<8x24xf32> -> vector<8x24xf32>
    %133 = vector.extract_strided_slice %82 {offsets = [0, 2, 0], sizes = [8, 1, 24], strides = [1, 1, 1]} : vector<8x4x24xf32> to vector<8x1x24xf32>
    %134 = vector.shape_cast %133 : vector<8x1x24xf32> to vector<8x24xf32>
    %135 = arith.addf %132, %134 : vector<8x24xf32>
    %136 = arith.addf %135, %79 : vector<8x24xf32>
    %cst_67 = arith.constant dense<0xFF800000> : vector<8xf32>
    %137 = vector.multi_reduction <maximumf>, %136, %cst_67 [1] : vector<8x24xf32> to vector<8xf32>
    %138 = vector.shape_cast %137 : vector<8xf32> to vector<8x1xf32>
    %139 = vector.broadcast %138 : vector<8x1xf32> to vector<8x24xf32>
    %140 = arith.subf %136, %139 : vector<8x24xf32>
    %141 = math.exp %140 : vector<8x24xf32>
    %cst_68 = arith.constant dense<0.000000e+00> : vector<8xf32>
    %142 = vector.multi_reduction <add>, %141, %cst_68 [1] : vector<8x24xf32> to vector<8xf32>
    %143 = vector.shape_cast %142 : vector<8xf32> to vector<8x1xf32>
    %144 = tpu.reciprocal %143 {approx = true} : vector<8x1xf32> -> vector<8x1xf32>
    %145 = vector.broadcast %144 : vector<8x1xf32> to vector<8x24xf32>
    %146 = arith.mulf %141, %145 : vector<8x24xf32>
    %147 = arith.truncf %146 : vector<8x24xf32> to vector<8x24xbf16>
    %148 = vector.extract_strided_slice %84 {offsets = [0, 16], sizes = [24, 8], strides = [1, 1]} : vector<24x32xbf16> to vector<24x8xbf16>
    %cst_69 = arith.constant dense<0.000000e+00> : vector<8x8xf32>
    %149 = tpu.matmul %147, %148, %cst_69 {dimension_numbers = #tpu.dot_dimension_numbers<[1], [0], [0], [1], [0, 0, 1, 1], [], []>} : vector<8x24xbf16>, vector<24x8xbf16>, vector<8x8xf32> -> vector<8x8xf32>
    %c0_70 = arith.constant 0 : index
    %c16_71 = arith.constant 16 : index
    %150 = vector.load %arg22[%c0_70, %c16_71] : memref<8x32xf32, #tpu.memory_space<vmem>>, vector<8x8xf32>
    tpu.vector_store %arg22[%c0_70, %c16_71], %149 {strides = array<i32>} : memref<8x32xf32, #tpu.memory_space<vmem>>, vector<8x8xf32>,
    %151 = vector.extract_strided_slice %34 {offsets = [0, 24], sizes = [8, 8], strides = [1, 1]} : vector<8x32xf32> to vector<8x8xf32>
    %152 = arith.truncf %151 : vector<8x8xf32> to vector<8x8xbf16>
    %153 = vector.extract_strided_slice %83 {offsets = [0, 24], sizes = [24, 8], strides = [1, 1]} : vector<24x32xbf16> to vector<24x8xbf16>
    %cst_72 = arith.constant dense<0.000000e+00> : vector<8x24xf32>
    %154 = tpu.matmul %152, %153, %cst_72 {dimension_numbers = #tpu.dot_dimension_numbers<[1], [1], [0], [0], [0, 0, 1, 0], [], []>} : vector<8x8xbf16>, vector<24x8xbf16>, vector<8x24xf32> -> vector<8x24xf32>
    %155 = vector.extract_strided_slice %82 {offsets = [0, 3, 0], sizes = [8, 1, 24], strides = [1, 1, 1]} : vector<8x4x24xf32> to vector<8x1x24xf32>
    %156 = vector.shape_cast %155 : vector<8x1x24xf32> to vector<8x24xf32>
    %157 = arith.addf %154, %156 : vector<8x24xf32>
    %158 = arith.addf %157, %79 : vector<8x24xf32>
    %cst_73 = arith.constant dense<0xFF800000> : vector<8xf32>
    %159 = vector.multi_reduction <maximumf>, %158, %cst_73 [1] : vector<8x24xf32> to vector<8xf32>
    %160 = vector.shape_cast %159 : vector<8xf32> to vector<8x1xf32>
    %161 = vector.broadcast %160 : vector<8x1xf32> to vector<8x24xf32>
    %162 = arith.subf %158, %161 : vector<8x24xf32>
    %163 = math.exp %162 : vector<8x24xf32>
    %cst_74 = arith.constant dense<0.000000e+00> : vector<8xf32>
    %164 = vector.multi_reduction <add>, %163, %cst_74 [1] : vector<8x24xf32> to vector<8xf32>
    %165 = vector.shape_cast %164 : vector<8xf32> to vector<8x1xf32>
    %166 = tpu.reciprocal %165 {approx = true} : vector<8x1xf32> -> vector<8x1xf32>
    %167 = vector.broadcast %166 : vector<8x1xf32> to vector<8x24xf32>
    %168 = arith.mulf %163, %167 : vector<8x24xf32>
    %169 = arith.truncf %168 : vector<8x24xf32> to vector<8x24xbf16>
    %170 = vector.extract_strided_slice %84 {offsets = [0, 24], sizes = [24, 8], strides = [1, 1]} : vector<24x32xbf16> to vector<24x8xbf16>
    %cst_75 = arith.constant dense<0.000000e+00> : vector<8x8xf32>
    %171 = tpu.matmul %169, %170, %cst_75 {dimension_numbers = #tpu.dot_dimension_numbers<[1], [0], [0], [1], [0, 0, 1, 1], [], []>} : vector<8x24xbf16>, vector<24x8xbf16>, vector<8x8xf32> -> vector<8x8xf32>
    %c0_76 = arith.constant 0 : index
    %c24 = arith.constant 24 : index
    %172 = vector.load %arg22[%c0_76, %c24] : memref<8x32xf32, #tpu.memory_space<vmem>>, vector<8x8xf32>
    tpu.vector_store %arg22[%c0_76, %c24], %171 {strides = array<i32>} : memref<8x32xf32, #tpu.memory_space<vmem>>, vector<8x8xf32>,
    %c0_77 = arith.constant 0 : index
    %c0_78 = arith.constant 0 : index
    %173 = vector.load %arg22[%c0_77, %c0_78] : memref<8x32xf32, #tpu.memory_space<vmem>>, vector<8x32xf32>
    %174 = arith.truncf %173 : vector<8x32xf32> to vector<8x32xbf16>
    %c0_79 = arith.constant 0 : index
    %c0_80 = arith.constant 0 : index
    %175 = vector.load %arg10[%c0_79, %c0_80] : memref<32x32xbf16, #tpu.memory_space<vmem>>, vector<32x32xbf16>
    %cst_81 = arith.constant dense<0.000000e+00> : vector<8x32xf32>
    %176 = tpu.matmul %174, %175, %cst_81 {dimension_numbers = #tpu.dot_dimension_numbers<[1], [0], [0], [1], [0, 0, 1, 1], [], []>} : vector<8x32xbf16>, vector<32x32xbf16>, vector<8x32xf32> -> vector<8x32xf32>
    %c0_82 = arith.constant 0 : index
    %c0_83 = arith.constant 0 : index
    %177 = vector.load %arg11[%c0_82, %c0_83] : memref<1x32xf32, #tpu.memory_space<vmem>>, vector<1x32xf32>
    %178 = vector.broadcast %177 : vector<1x32xf32> to vector<8x32xf32>
    %179 = arith.addf %176, %178 : vector<8x32xf32>
    %180 = arith.addf %25, %179 : vector<8x32xf32>
    %cst_84 = arith.constant dense<0.000000e+00> : vector<8xf32>
    %181 = vector.multi_reduction <add>, %180, %cst_84 [1] : vector<8x32xf32> to vector<8xf32>
    %182 = vector.shape_cast %181 : vector<8xf32> to vector<8x1xf32>
    %cst_85 = arith.constant 3.200000e+01 : f32
    %183 = vector.broadcast %cst_85 : f32 to vector<8x1xf32>
    %184 = arith.divf %182, %183 : vector<8x1xf32>
    %185 = vector.broadcast %184 : vector<8x1xf32> to vector<8x32xf32>
    %186 = arith.subf %180, %185 : vector<8x32xf32>
    %187 = arith.mulf %186, %186 : vector<8x32xf32>
    %cst_86 = arith.constant dense<0.000000e+00> : vector<8xf32>
    %188 = vector.multi_reduction <add>, %187, %cst_86 [1] : vector<8x32xf32> to vector<8xf32>
    %189 = vector.shape_cast %188 : vector<8xf32> to vector<8x1xf32>
    %cst_87 = arith.constant 3.200000e+01 : f32
    %190 = vector.broadcast %cst_87 : f32 to vector<8x1xf32>
    %191 = arith.divf %189, %190 : vector<8x1xf32>
    %192 = vector.broadcast %184 : vector<8x1xf32> to vector<8x32xf32>
    %193 = arith.subf %180, %192 : vector<8x32xf32>
    %cst_88 = arith.constant 9.99999974E-6 : f32
    %194 = vector.broadcast %cst_88 : f32 to vector<8x1xf32>
    %195 = arith.addf %191, %194 : vector<8x1xf32>
    %196 = math.rsqrt %195 : vector<8x1xf32>
    %197 = vector.broadcast %196 : vector<8x1xf32> to vector<8x32xf32>
    %198 = arith.mulf %193, %197 : vector<8x32xf32>
    %c0_89 = arith.constant 0 : index
    %c0_90 = arith.constant 0 : index
    %199 = vector.load %arg12[%c0_89, %c0_90] : memref<1x32xf32, #tpu.memory_space<vmem>>, vector<1x32xf32>
    %200 = vector.broadcast %199 : vector<1x32xf32> to vector<8x32xf32>
    %201 = arith.mulf %198, %200 : vector<8x32xf32>
    %c0_91 = arith.constant 0 : index
    %c0_92 = arith.constant 0 : index
    %202 = vector.load %arg13[%c0_91, %c0_92] : memref<1x32xf32, #tpu.memory_space<vmem>>, vector<1x32xf32>
    %203 = vector.broadcast %202 : vector<1x32xf32> to vector<8x32xf32>
    %204 = arith.addf %201, %203 : vector<8x32xf32>
    %205 = arith.truncf %204 : vector<8x32xf32> to vector<8x32xbf16>
    %c0_93 = arith.constant 0 : index
    %c0_94 = arith.constant 0 : index
    %206 = vector.load %arg14[%c0_93, %c0_94] : memref<32x128xbf16, #tpu.memory_space<vmem>>, vector<32x128xbf16>
    %cst_95 = arith.constant dense<0.000000e+00> : vector<8x128xf32>
    %207 = tpu.matmul %205, %206, %cst_95 {dimension_numbers = #tpu.dot_dimension_numbers<[1], [0], [0], [1], [0, 0, 1, 1], [], []>} : vector<8x32xbf16>, vector<32x128xbf16>, vector<8x128xf32> -> vector<8x128xf32>
    %cst_96 = arith.constant 0.000000e+00 : f32
    %208 = vector.broadcast %cst_96 : f32 to vector<8x128xf32>
    %209 = arith.maximumf %207, %208 : vector<8x128xf32>
    %210 = arith.truncf %209 : vector<8x128xf32> to vector<8x128xbf16>
    %c0_97 = arith.constant 0 : index
    %c0_98 = arith.constant 0 : index
    %211 = vector.load %arg15[%c0_97, %c0_98] : memref<128x32xbf16, #tpu.memory_space<vmem>>, vector<128x32xbf16>
    %cst_99 = arith.constant dense<0.000000e+00> : vector<8x32xf32>
    %212 = tpu.matmul %210, %211, %cst_99 {dimension_numbers = #tpu.dot_dimension_numbers<[1], [0], [0], [1], [0, 0, 1, 1], [], []>} : vector<8x128xbf16>, vector<128x32xbf16>, vector<8x32xf32> -> vector<8x32xf32>
    %c0_100 = arith.constant 0 : index
    %c0_101 = arith.constant 0 : index
    %213 = vector.load %arg16[%c0_100, %c0_101] : memref<1x32xf32, #tpu.memory_space<vmem>>, vector<1x32xf32>
    %214 = vector.broadcast %213 : vector<1x32xf32> to vector<8x32xf32>
    %215 = arith.addf %212, %214 : vector<8x32xf32>
    %216 = arith.addf %180, %215 : vector<8x32xf32>
    %217 = arith.truncf %216 : vector<8x32xf32> to vector<8x32xbf16>
    %c0_102 = arith.constant 0 : index
    %c0_103 = arith.constant 0 : index
    %c0_104 = arith.constant 0 : index
    %218 = vector.load %arg17[%c0_102, %c0_103, %c0_104] : memref<1x8x32xbf16, #tpu.memory_space<vmem>>, vector<1x8x32xbf16>
    %219 = vector.shape_cast %218 : vector<1x8x32xbf16> to vector<8x32xbf16>
    %220 = vector.shape_cast %217 : vector<8x32xbf16> to vector<1x8x32xbf16>
    tpu.vector_store %arg17[%c0_102, %c0_103, %c0_104], %220 {strides = array<i32>} : memref<1x8x32xbf16, #tpu.memory_space<vmem>>, vector<1x8x32xbf16>,
    return
  }
  func.func @transform_0(%arg0: i32) -> (i32, i32, i32) {
    %c0_i32 = arith.constant 0 : i32
    %c0_i32_0 = arith.constant 0 : i32
    %c0_i32_1 = arith.constant 0 : i32
    return %arg0, %c0_i32, %c0_i32_0 : i32, i32, i32
  }
  func.func @transform_1(%arg0: i32) -> (i32, i32) {
    %c0_i32 = arith.constant 0 : i32
    %c0_i32_0 = arith.constant 0 : i32
    %c0_i32_1 = arith.constant 0 : i32
    return %c0_i32, %c0_i32_0 : i32, i32
  }
  func.func @transform_2(%arg0: i32) -> (i32, i32) {
    %c0_i32 = arith.constant 0 : i32
    %c0_i32_0 = arith.constant 0 : i32
    %c0_i32_1 = arith.constant 0 : i32
    return %c0_i32, %c0_i32_0 : i32, i32
  }
  func.func @transform_3(%arg0: i32) -> (i32, i32) {
    %c0_i32 = arith.constant 0 : i32
    %c0_i32_0 = arith.constant 0 : i32
    %c0_i32_1 = arith.constant 0 : i32
    return %c0_i32, %c0_i32_0 : i32, i32
  }
  func.func @transform_4(%arg0: i32) -> (i32, i32) {
    %c0_i32 = arith.constant 0 : i32
    %c0_i32_0 = arith.constant 0 : i32
    %c0_i32_1 = arith.constant 0 : i32
    return %c0_i32, %c0_i32_0 : i32, i32
  }
  func.func @transform_5(%arg0: i32) -> (i32, i32, i32) {
    %c0_i32 = arith.constant 0 : i32
    %c0_i32_0 = arith.constant 0 : i32
    %c0_i32_1 = arith.constant 0 : i32
    return %arg0, %c0_i32, %c0_i32_0 : i32, i32, i32
  }
  func.func @transform_6(%arg0: i32) -> (i32, i32, i32) {
    %c0_i32 = arith.constant 0 : i32
    %c0_i32_0 = arith.constant 0 : i32
    %c0_i32_1 = arith.constant 0 : i32
    return %arg0, %c0_i32, %c0_i32_0 : i32, i32, i32
  }
  func.func @transform_7(%arg0: i32) -> (i32, i32, i32) {
    %c0_i32 = arith.constant 0 : i32
    %c0_i32_0 = arith.constant 0 : i32
    %c0_i32_1 = arith.constant 0 : i32
    return %arg0, %c0_i32, %c0_i32_0 : i32, i32, i32
  }
  func.func @transform_8(%arg0: i32) -> (i32, i32, i32) {
    %c0_i32 = arith.constant 0 : i32
    %c0_i32_0 = arith.constant 0 : i32
    %c0_i32_1 = arith.constant 0 : i32
    %c0_i32_2 = arith.constant 0 : i32
    return %c0_i32, %c0_i32_0, %c0_i32_1 : i32, i32, i32
  }
  func.func @transform_9(%arg0: i32) -> (i32, i32) {
    %c0_i32 = arith.constant 0 : i32
    %c0_i32_0 = arith.constant 0 : i32
    %c0_i32_1 = arith.constant 0 : i32
    return %c0_i32, %c0_i32_0 : i32, i32
  }
  func.func @transform_10(%arg0: i32) -> (i32, i32) {
    %c0_i32 = arith.constant 0 : i32
    %c0_i32_0 = arith.constant 0 : i32
    %c0_i32_1 = arith.constant 0 : i32
    return %c0_i32, %c0_i32_0 : i32, i32
  }
  func.func @transform_11(%arg0: i32) -> (i32, i32) {
    %c0_i32 = arith.constant 0 : i32
    %c0_i32_0 = arith.constant 0 : i32
    %c0_i32_1 = arith.constant 0 : i32
    return %c0_i32, %c0_i32_0 : i32, i32
  }
  func.func @transform_12(%arg0: i32) -> (i32, i32) {
    %c0_i32 = arith.constant 0 : i32
    %c0_i32_0 = arith.constant 0 : i32
    %c0_i32_1 = arith.constant 0 : i32
    return %c0_i32, %c0_i32_0 : i32, i32
  }
  func.func @transform_13(%arg0: i32) -> (i32, i32) {
    %c0_i32 = arith.constant 0 : i32
    %c0_i32_0 = arith.constant 0 : i32
    %c0_i32_1 = arith.constant 0 : i32
    return %c0_i32, %c0_i32_0 : i32, i32
  }
  func.func @transform_14(%arg0: i32) -> (i32, i32) {
    %c0_i32 = arith.constant 0 : i32
    %c0_i32_0 = arith.constant 0 : i32
    %c0_i32_1 = arith.constant 0 : i32
    return %c0_i32, %c0_i32_0 : i32, i32
  }
  func.func @transform_15(%arg0: i32) -> (i32, i32) {
    %c0_i32 = arith.constant 0 : i32
    %c0_i32_0 = arith.constant 0 : i32
    %c0_i32_1 = arith.constant 0 : i32
    return %c0_i32, %c0_i32_0 : i32, i32
  }
  func.func @transform_16(%arg0: i32) -> (i32, i32, i32) {
    %c0_i32 = arith.constant 0 : i32
    %c0_i32_0 = arith.constant 0 : i32
    %c0_i32_1 = arith.constant 0 : i32
    return %arg0, %c0_i32, %c0_i32_0 : i32, i32, i32
  }
  func.func @transform_17(%arg0: i32) -> (i32, i32, i32) {
    %c0_i32 = arith.constant 0 : i32
    %c0_i32_0 = arith.constant 0 : i32
    %c0_i32_1 = arith.constant 0 : i32
    return %arg0, %c0_i32, %c0_i32_0 : i32, i32, i32
  }
  func.func @transform_18(%arg0: i32) -> (i32, i32, i32) {
    %c0_i32 = arith.constant 0 : i32
    %c0_i32_0 = arith.constant 0 : i32
    %c0_i32_1 = arith.constant 0 : i32
    return %arg0, %c0_i32, %c0_i32_0 : i32, i32, i32
  }
}

</mosaic_0001>

<bundles_post_ra>
// kernel: decoder_forward.5
= control target key start
LH: loop header
LB: loop body
LE: loop exit
PB: predicated region body
PF: predicated region fallthrough
CT: control target
= control target key end

     0   :  { %11 = vsyncpa [#allocation3], 0  ;;  %s746_s0 = inlined_call_operand.vmem [shape: bf16[16,32], index: 0, kind: input, shape index: {}]   ;;  %s747_s1 = inlined_call_operand.vmem [shape: f32[1,32], index: 1, kind: input, shape index: {}]   ;;  %s748_s2 = inlined_call_operand.vmem [shape: f32[1,32], index: 2, kind: input, shape index: {}]   ;;  %s749_s3 = inlined_call_operand.vmem [shape: bf16[32,32], index: 3, kind: input, shape index: {}]   ;;  %s750_s4 = inlined_call_operand.vmem [shape: f32[1,32], index: 4, kind: input, shape index: {}]   ;;  %s751_s5 = inlined_call_operand.vmem [shape: f32[1,32], index: 5, kind: input, shape index: {}]   ;;  %s752_s6 = inlined_call_operand.hbm [shape: f32[16,32], index: 6, kind: output, shape index: {}]  }
   0x1   :  { %13 = vsyncpa [#allocation3 + $0x1], 0  ;;  %s622_s21 = smov 0   ;;  %s624_s22 = smov 0  }
   0x2   :  { %s626_s23 = smov 0   ;;  %s628_s24 = smov 0  }
   0x3 LB: > { %s643_s25 = sadd.s32 4294967295, %s582_s24   ;;  %s445_s26 = sadd.s32 4294967294, %s582_s24   ;;  %s582_s24 = sphi %s628_s24, %s758_s24   ;;  %s578_s23 = sphi %s626_s23, %s757_s23   ;;  %s574_s22 = sphi %s624_s22, %s756_s22   ;;  %s570_s21 = sphi %s622_s21, %s755_s21  }
   0x4   : > { %s647_s27 = sadd.s32 1, %s582_s24   ;;  %s157_s28 = sadd.s32 1, %s578_s23 }
   0x5   : > { %s154_s29 = ssub.s32 %s582_s24, %s647_s27  ;;  %p167_p0 = scmp.ne.s32.totalorder %s578_s23, %s574_s22 }
   0x6   : > { %p155_p1 = scmp.eq.s32.totalorder %s154_s29, 0  ;;  %p168_p2 = scmp.eq.s32.totalorder %s643_s25, 1 }
   0x7   : > { %p173_p3 = scmp.ne.s32.totalorder %s574_s22, %s570_s21  ;;  %p174_p4 = scmp.eq.s32.totalorder %s445_s26, 1 }
   0x8   : > { %s658_s30 = scalar_select %p155_p1, %s578_s23, %s157_s28  }
   0x9   : > { %p660_p5 = por %p168_p2, %p167_p0  ;;  %p664_p6 = por %p174_p4, %p173_p3 }
   0xa   : > { %p448_p7 = scmp.ge.s32.totalorder %s582_s24, 1  ;;  %p214_p8 = scmp.lt.s32.totalorder %s582_s24, 3 }
   0xc   : > { %p215_p9 = pnand %p448_p7, %p214_p8 }
   0xd   : > { %p243_p10 = scmp.lt.s32.totalorder (!%p215_p9), %s643_s25, 1  ;;  %vm250_vm0 = vcmask (!%p215_p9), 261120   ;;  %v514_v8 = vld [vmem:[%s749_s3] sm:$0xff] (!%p215_p9)   ;;  %v584_v9 = vmov (!%p215_p9), 0.0   ;;  %v515_v10 = vld [vmem:[%s749_s3 + $0x8] sm:$0xff] (!%p215_p9)   ;;  %vm585_vm1 = vmmov (!%p215_p9), 0  }
   0xe   : > { %218 = sbr.rel (%p215_p9) target bundleno = 884 (0x374), region = 44  ;;  %465 = vmatprep.subr.bf16.mxu0 (!%p215_p9), %v584_v9  ;;  %469 = vmatprep.mubr.msk.bf16.mxu0 (!%p215_p9), %vm585_vm1, %v584_v9  ;;  %v451_v15 = vld [vmem:[%s747_s1] ss:$0 sm:$0xff] (!%p215_p9)  ;;  %s240_s28 = sand.u32 (!%p215_p9), 1, %s574_s22  }
   0xf   : > { %466 = vmatpush3.bf16.msra.mxu0 (!%p215_p9), %v514_v8  ;;  %v452_v17 = vld [vmem:[%s748_s2] ss:$0 sm:$0xff] (!%p215_p9)  ;;  %s449_s29 = sshll.u32 (!%p215_p9), %s240_s28, 3  ;;  %s373_s19 = scalar_lea.sflag (!%p215_p9), [#allocation3], %s240_s28 }
  0x10   : > { %467 = vmatprep.subr.bf16.mxu0 (!%p215_p9), %v584_v9  ;;  %v456_v36 = vld [vmem:[%s750_s4] ss:$0 sm:$0xff] (!%p215_p9)  ;;  %s242_s14 = scalar_lea.vmem (!%p215_p9), [#allocation2], %s449_s29 }
  0x11   : > { %v457_v38 = vld [vmem:[%s751_s5] ss:$0 sm:$0xff] (!%p215_p9)  ;;  %s386_s15 = sshll.u32 (!%p215_p9), %s242_s14, 4  ;;  %s705_s15 = int_to_ptr.vmem [resolvable:$true] %s386_s15 }
  0x12   : > { %s520_s20 = scalar_lea.vmem (!%p215_p9), %s705_s15, 128 }
  0x13   : > { %468 = vmatpush3.bf16.msra.mxu0 (!%p215_p9), %v515_v10  ;;  %p521_p11 = scmp.ne.s32.totalorder (!%p215_p9), %s705_s15, %s520_s20 }
  0x15   : > { %s244_s9 = scalar_select %p243_p10, %s643_s25, 1 }
  0x16   : > { %p522_p12 = pnand %p521_p11, %p660_p5 }
  0x17   : > { %s450_s10 = sshll.u32 %s244_s9, 2 }
  0x18   : > { %s246_s13 = scalar_lea.vmem %s746_s0, %s450_s10  ;;  %p523_p13 = pneg %p522_p12 }
  0x19   : > { %v248_v0 = vld [vmem:[%s246_s13] sm:$0xf]  ;;  %s459_s13 = sshll.u32 %s643_s25, 7  ;;  %s586_s25 = smov [#allocation2]  }
  0x1a   : > { %v249_v1 = vunpack.c.l.bf16 %v248_v0  ;;  %s703_s18 = scalar_lea.hbm %s752_s6, %s459_s13  ;;  %s524_s26 = sshll.u32 %s586_s25, 4  ;;  %s525_s26 = int_to_ptr.vmem [resolvable:$false] %s524_s26 }
  0x1b   : > { %s526_s29 = scalar_lea.vmem %s525_s26, 256  ;;  %p527_p0 = scmp.lt.s32.totalorder %s705_s15, %s525_s26 }
  0x1c   : > { %v251_v2 = vsel %vm250_vm0, %v249_v1, 0.0  ;;  %p528_p1 = scmp.lt.s32.totalorder %s526_s29, %s520_s20 }
  0x1d   : > { %252 = vadd.xlane.f32.xlu0 %v251_v2 }
  0x1e   : > { %p529_p2 = por %p528_p1, %p527_p0 }
  0x20   : > { %p530_p3 = pnand %p529_p2, %p523_p13 }
  0xaa   : > { %v253_v3 = vpop.xlane.xlu0 %252 }
  0xab   : > { %v255_v4 = vmul.f32 0.03125, %v253_v3 }
  0xad   : > { %v256_v5 = vsub.f32 %v249_v1, %v255_v4 }
  0xaf   : > { %v257_v6 = vmul.f32 %v256_v5, %v256_v5 }
  0xb1   : > { %v258_v7 = vsel %vm250_vm0, %v257_v6, 0.0 }
  0xb2   : > { %259 = vadd.xlane.f32.xlu0 %v258_v7 }
 0x13f   : > { %v260_v11 = vpop.xlane.xlu0 %259 }
 0x140   : > { %v261_v12 = vmul.f32 0.03125, %v260_v11 }
 0x142   : > { %v262_v13 = vadd.f32 1e-05, %v261_v12 }
 0x144   : > { %516 = vrsqrt.f32 %v262_v13 }
 0x14e   : > { %v517_v14 = vpop.eup %516 }
 0x14f   : > { %v264_v16 = vmul.f32 %v517_v14, %v256_v5 }
 0x151   : > { %v272_v18 = vmul.f32 %v451_v15, %v264_v16 }
 0x153   : > { %v280_v19 = vadd.f32 %v452_v17, %v272_v18 }
 0x155   : > { %v281_v20 = vpack.c.bf16 %v280_v19, %v280_v19 }
 0x157   : > { %470 = vmatmul.mubr.msk.bf16.vlgmr.msra.gmra.mrb[0].mxu0 %vm250_vm0, %v281_v20 }
 0x22a   : > { %v335_v21 = vpop.f32.mrb[0].mxu0 }
 0x22b   : > { %v341_v22 = vmax.f32 %v335_v21, 0.0  ;;  %v471_v23 = vpop.f32.mrb[1].mxu0 }
 0x22c   : > { %v338_v24 = vpop.f32.mrb[2].mxu0 }
 0x22d   : > { %v472_v25 = vpop.f32.mrb[3].mxu0  ;;  %v342_v26 = vsel %vm250_vm0, %v341_v22, 0.0 }
 0x22e   : > { %343 = vadd.xlane.f32.xlu1 %v342_v26 }
 0x2bb   : > { %v344_v27 = vpop.xlane.xlu1 %343 }
 0x2bc   : > { %v345_v28 = vmul.f32 0.03125, %v344_v27 }
 0x2be   : > { %v346_v29 = vsub.f32 %v341_v22, %v345_v28 }
 0x2c0   : > { %v347_v30 = vmul.f32 %v346_v29, %v346_v29 }
 0x2c2   : > { %v348_v31 = vsel %vm250_vm0, %v347_v30, 0.0 }
 0x2c3   : > { %349 = vadd.xlane.f32.xlu1 %v348_v31 }
 0x350   : > { %v350_v32 = vpop.xlane.xlu1 %349 }
 0x351   : > { %v351_v33 = vmul.f32 0.03125, %v350_v32 }
 0x353   : > { %v352_v34 = vadd.f32 1e-05, %v351_v33 }
 0x355   : > { %518 = vrsqrt.f32 %v352_v34 }
 0x35f   : > { %v519_v35 = vpop.eup %518 }
 0x360   : > { %v354_v37 = vmul.f32 %v519_v35, %v346_v29 }
 0x362   : > { %v362_v39 = vmul.f32 %v456_v36, %v354_v37 }
 0x364   : > { %v370_v40 = vadd.f32 %v457_v38, %v362_v39 }
 0x366   : > { %371 = vst.msk [vmem:[%s242_s14] sm:$0xff] %vm250_vm0, %v370_v40 }
 0x367   : > { %533 = shalt.err (!%p530_p3)
}
 0x368   : > { %s534_s28 = scalar_lea.hbm %s703_s18, 128  ;;  %s538_s11 = scalar_lea.hbm %s752_s6, 256 }
 0x369   : > { %p535_p4 = scmp.ne.s32.totalorder %s703_s18, %s534_s28  ;;  %p539_p9 = scmp.lt.u32.totalorder %s703_s18, %s752_s6 }
 0x36a   : > { %p540_p10 = scmp.lt.u32.totalorder %s538_s11, %s534_s28  ;;  %p542_p12 = scmp.lt.u32.totalorder %s534_s28, %s703_s18 }
 0x36b   : > { %p536_p7 = pnand %p535_p4, %p660_p5 }
 0x36c   : > { %p541_p11 = por %p540_p10, %p539_p9 }
 0x36d   : > { %p537_p8 = pneg %p536_p7 }
 0x36e   : > { %p543_p13 = por %p542_p12, %p541_p11 }
 0x370   : > { %p544_p0 = pnand %p543_p13, %p537_p8 }
 0x372   : > { %547 = shalt.err (!%p544_p0)
}
 0x373   : > { %473 = dma.vmem_to_hbm [thread:$0]  (%p660_p5), %s705_s15, 128, %s703_s18, %s373_s19  }
 0x374 PF: > { %p479_p1 = scmp.ge.s32.totalorder %s582_s24, 2  ;;  %s398_s14 = sand.u32 1, %s570_s21  }
 0x375   : > { %s399_s16 = scalar_lea.sflag [#allocation3], %s398_s14 }
 0x376   : > { %p476_p2 = pnand %p479_p1, %p664_p6 }
 0x378   : > { %565 = dma.done.wait (!%p476_p2), %s399_s16, 128  }
 0x379   : > { %567 = vsyncadd (!%p476_p2), %s399_s16, 4294967168  ;;  %p16_p3 = scmp.ge.s32.totalorder %s647_s27, 4   ;;  %s755_s21 = smov %s574_s22 }
 0x37a   : > { %s756_s22 = smov %s578_s23  ;;  %s757_s23 = smov %s658_s30 }
 0x37b   : > { %s758_s24 = smov %s647_s27  ;;  %18 = sbr.rel (!%p16_p3) target bundleno = 3 (0x3), region = 79 }
 0x382   :  { %404 = vsyncpa [#allocation3], 1 }
 0x383   :  { %406 = vsyncpa [#allocation3 + $0x1], 1 }

// kernel: decoder_forward.4
= control target key start
LH: loop header
LB: loop body
LE: loop exit
PB: predicated region body
PF: predicated region fallthrough
CT: control target
= control target key end

     0   :  { %s3817_s0 = inlined_call_operand.vmem [shape: bf16[2,8,32], index: 0, kind: input, shape index: {}]   ;;  %s3818_s1 = inlined_call_operand.vmem [shape: f32[1,32], index: 1, kind: input, shape index: {}]   ;;  %s3819_s2 = inlined_call_operand.vmem [shape: f32[1,32], index: 2, kind: input, shape index: {}]   ;;  %s3820_s3 = inlined_call_operand.vmem [shape: bf16[32,136], index: 3, kind: input, shape index: {}]   ;;  %s3821_s4 = inlined_call_operand.vmem [shape: f32[1,136], index: 4, kind: input, shape index: {}]   ;;  %s3822_s5 = inlined_call_operand.vmem [shape: bf16[2,16,32], index: 5, kind: input, shape index: {}, may-alias: {5,6}]   ;;  %s3823_s6 = inlined_call_operand.vmem [shape: bf16[2,16,32], index: 6, kind: input, shape index: {}, may-alias: {5,6}]   ;;  %s3824_s7 = inlined_call_operand.vmem [shape: f32[2,1,24], index: 7, kind: input, shape index: {}]   ;;  %s3825_s8 = inlined_call_operand.vmem [shape: f32[8,10,24], index: 8, kind: input, shape index: {}]   ;;  %s3826_s9 = inlined_call_operand.vmem [shape: bf16[32,32], index: 9, kind: input, shape index: {}]   ;;  %s3827_s10 = inlined_call_operand.vmem [shape: f32[1,32], index: 10, kind: input, shape index: {}]   ;;  %s3828_s11 = inlined_call_operand.vmem [shape: f32[1,32], index: 11, kind: input, shape index: {}]   ;;  %s3829_s12 = inlined_call_operand.vmem [shape: f32[1,32], index: 12, kind: input, shape index: {}]   ;;  %s3830_s13 = inlined_call_operand.vmem [shape: bf16[32,128], index: 13, kind: input, shape index: {}]   ;;  %s3831_s14 = inlined_call_operand.vmem [shape: bf16[128,32], index: 14, kind: input, shape index: {}]   ;;  %s3832_s15 = inlined_call_operand.vmem [shape: f32[1,32], index: 15, kind: input, shape index: {}]   ;;  %s3833_s16 = inlined_call_operand.vmem [shape: bf16[2,8,32], index: 16, kind: output, shape index: {0}]   ;;  %s3834_s17 = inlined_call_operand.hbm [shape: bf16[2,16,32], index: 17, kind: output, shape index: {1}]   ;;  %s3835_s18 = inlined_call_operand.hbm [shape: bf16[2,16,32], index: 18, kind: output, shape index: {2}]  }
   0x1   :  { %3847 = sst [smem:[#allocation17_spill]] %s3817_s0 }
   0x2   :  { %3848 = sst [smem:[#allocation18_spill]] %s3818_s1 }
   0x3   :  { %3849 = sst [smem:[#allocation19_spill]] %s3819_s2 }
   0x4   :  { %3850 = sst [smem:[#allocation20_spill]] %s3820_s3 }
   0x5   :  { %3851 = sst [smem:[#allocation21_spill]] %s3821_s4 }
   0x6   :  { %3852 = sst [smem:[#allocation22_spill]] %s3822_s5 }
   0x7   :  { %3853 = sst [smem:[#allocation23_spill]] %s3823_s6 }
   0x8   :  { %3854 = sst [smem:[#allocation24_spill]] %s3824_s7 }
   0x9   :  { %24 = vsyncpa [#allocation6], 0 }
   0xa   :  { %26 = vsyncpa [#allocation6 + $0x1], 0 }
   0xb   :  { %27 = vsyncpa [#allocation8], 0 }
   0xc   :  { %29 = vsyncpa [#allocation8 + $0x1], 0  ;;  %s3228_s27 = smov 0   ;;  %s3230_s28 = smov 0  }
   0xd   :  { %s3232_s29 = smov 0   ;;  %s3234_s30 = smov 0  }
   0xe LB: > { %3855 = sst [smem:[#allocation11_spill]] %s3096_s27  ;;  %s3249_s0 = sadd.s32 4294967295, %s3108_s30   ;;  %s3108_s30 = sphi %s3234_s30, %s3883_s30   ;;  %s3104_s29 = sphi %s3232_s29, %s3885_s29   ;;  %s3100_s28 = sphi %s3230_s28, %s3887_s28   ;;  %s3096_s27 = sphi %s3228_s27, %s3886_s27  }
   0xf   : > { %3856 = sst [smem:[#allocation12_spill]] %s3104_s29  ;;  %s2577_s19 = sadd.s32 4294967294, %s3108_s30  }
  0x10   : > { %3857 = sst [smem:[#allocation13_spill]] %s3108_s30  ;;  %s3253_s1 = sadd.s32 1, %s3108_s30  }
  0x11   : > { %3858 = sst [smem:[#allocation14_spill]] %s3253_s1  ;;  %s424_s20 = sadd.s32 1, %s3104_s29 }
  0x12   : > { %s421_s21 = ssub.s32 %s3108_s30, %s3253_s1  ;;  %p434_p0 = scmp.ne.s32.totalorder %s3104_s29, %s3100_s28 }
  0x13   : > { %p422_p1 = scmp.eq.s32.totalorder %s421_s21, 0  ;;  %p435_p2 = scmp.eq.s32.totalorder %s3249_s0, 1 }
  0x14   : > { %p440_p3 = scmp.ne.s32.totalorder %s3100_s28, %s3096_s27  ;;  %p441_p4 = scmp.eq.s32.totalorder %s2577_s19, 1 }
  0x15   : > { %s3264_s22 = scalar_select %p422_p1, %s3104_s29, %s424_s20  }
  0x16   : > { %p3266_p5 = por %p435_p2, %p434_p0  ;;  %p3270_p6 = por %p441_p4, %p440_p3 }
  0x17   : > { %3859 = sst [smem:[#allocation15_spill]] %s3264_s22  ;;  %p2580_p7 = scmp.ge.s32.totalorder %s3108_s30, 1 }
  0x18   : > { %s3861_s23 = scalar_select %p3270_p6, 1, 0 }
  0x19   : > { %p550_p8 = scmp.lt.s32.totalorder %s3108_s30, 3 }
  0x1a   : > { %3862 = sst [smem:[#allocation16_spill]] %s3861_s23 }
  0x1b   : > { %p551_p9 = pnand %p2580_p7, %p550_p8 }
  0x1c   : > { %p625_p10 = scmp.lt.s32.totalorder (!%p551_p9), %s3249_s0, 1  ;;  %vm649_vm0 = vcmask (!%p551_p9), 261120   ;;  %s3863_s20 = sld [smem:[#allocation17_spill]] (!%p551_p9)  ;;  %v687_v11 = vlaneseq (!%p551_p9)  ;;  %v3110_v13 = vmov (!%p551_p9), 0   ;;  %v897_v44 = vld [vmem:[%s3825_s8] sm:$0xff] (!%p551_p9)  ;;  %v903_v46 = vld [vmem:[%s3825_s8 + $0x30] sm:$0xff] (!%p551_p9) }
  0x1d   : > { %554 = sbr.rel (%p551_p9) target bundleno = 4333 (0x10ed), region = 84  ;;  %s3864_s3 = sld [smem:[#allocation20_spill]] (!%p551_p9)  ;;  %752 = vmatprep.mubr.bf16.mxu0 (!%p551_p9), %v3110_v13  ;;  %v898_v45 = vld [vmem:[%s3825_s8 + $0x8] sm:$0x3] (!%p551_p9)  ;;  %v904_v47 = vld [vmem:[%s3825_s8 + $0x38] sm:$0x3] (!%p551_p9) }
  0x1e   : > { %s3865_s7 = sld [smem:[#allocation24_spill]] (!%p551_p9)  ;;  %v3304_v15 = vshrl.u32 (!%p551_p9), %v687_v11, 7  ;;  %v790_v16 = vand.u32 (!%p551_p9), 127, %v687_v11  ;;  %s3868_s30 = sld [smem:[#allocation18_spill]] (!%p551_p9)  ;;  %vm917_vm7 = vcmask (!%p551_p9), 1041408   ;;  %v3115_v49 = vmov (!%p551_p9), 0.0|0.0  }
  0x1f   : > { %s3870_s4 = sld [smem:[#allocation21_spill]] (!%p551_p9)  ;;  %s3111_s19 = smov (!%p551_p9), 118   ;;  %vm3116_vm8 = vmmov (!%p551_p9), 1   ;;  %v2888_v51 = vpack.c.bf16 (!%p551_p9), %v904_v47, %v903_v46  ;;  %2875 = vmatprep.subr.bf16.mxu1 (!%p551_p9), %v3115_v49  ;;  %v2876_v52 = vpack.c.bf16 (!%p551_p9), %v898_v45, %v897_v44  ;;  %vm3117_vm10 = vmmov (!%p551_p9), 0   ;;  %v909_v45 = vld [vmem:[%s3825_s8 + $0x60] sm:$0xff] (!%p551_p9) }
  0x20   : > { %v689_v18 = vsub.s32 (!%p551_p9), 0, %v3304_v15  ;;  %vm791_vm2 = vcmp.gt.s32.totalorder (!%p551_p9), %v790_v16, %v3304_v15  ;;  %v792_v19 = vadd.s32 (!%p551_p9), 16, %v3304_v15  ;;  %v693_v34 = vsub.s32 (!%p551_p9), 1, %v3304_v15  ;;  %s3114_s27 = smov (!%p551_p9), 32   ;;  %vm3349_vm9 = vmpackc.low (!%p551_p9), %vm917_vm7, %vm3116_vm8  ;;  %s3873_s5 = sld [smem:[#allocation22_spill]] (!%p551_p9) }
  0x21   : > { %2878 = vmatpush3.bf16.msk.msra.mxu1 (!%p551_p9), %vm3349_vm9, %v2876_v52  ;;  %v3118_v53 = vmov (!%p551_p9), 0.0   ;;  %vm815_vm11 = vcmask (!%p551_p9), 801792   ;;  %vm766_vm12 = vcmask (!%p551_p9), 257024   ;;  %v3120_v60 = vmov (!%p551_p9), 1983009808   ;;  %s3874_s6 = sld [smem:[#allocation23_spill]] (!%p551_p9) }
  0x22   : > { %vm793_vm3 = vcmp.le.s32.totalorder (!%p551_p9), %v790_v16, %v792_v19  ;;  %2723 = vmatprep.mubr.msk.f32.mxu1 (!%p551_p9), %vm3117_vm10, %v3118_v53  ;;  %2879 = vmatprep.subr.bf16.mxu1 (!%p551_p9), %v3115_v49  ;;  %v832_v61 = vunpack.c.l.s4 (!%p551_p9), %v3120_v60  ;;  %v3121_v63 = vmov (!%p551_p9), 1934713408   ;;  %v899_v16 = vld [vmem:[%s3825_s8 + $0x10] sm:$0xff] (!%p551_p9)  ;;  %vm913_vm13 = vcmask (!%p551_p9), 80896   ;;  %v910_v46 = vld [vmem:[%s3825_s8 + $0x68] sm:$0x3] (!%p551_p9) }
  0x23   : > { %v2972_v8 = vld [vmem:[%s3864_s3 + $0x4] ss:$8 sps:$4 sm:$0xff] (!%p551_p9)   ;;  %v2974_v9 = vld [vmem:[%s3864_s3] ss:$8 sps:$4 sm:$0xff] (!%p551_p9)   ;;  %v2975_v10 = vld [vmem:[%s3864_s3 + $0x14] ss:$8 sps:$4 sm:$0xff] (!%p551_p9)  }
  0x24   : > { %s3278_s24 = scalar_select %p625_p10, %s3249_s0, 1  ;;  %720 = vmatprep.subr.bf16.mxu0 %v2972_v8  ;;  %v2977_v12 = vld [vmem:[%s3864_s3 + $0x10] ss:$8 sps:$4 sm:$0xff]   ;;  %vm794_vm4 = vmand %vm791_vm2, %vm793_vm3  ;;  %v2589_v26 = vld [vmem:[%s3868_s30] ss:$0 sm:$0xff]  ;;  %vm1568_vm14 = vcmask 64512  }
  0x25   : > { %721 = vmatpush1.bf16.msra.mxu0 %v2974_v9  ;;  %v685_v32 = vld [vmem:[%s3870_s4] sm:$0x3]  ;;  %vm1547_vm15 = vcmask 1041409   ;;  %vm1553_vm2 = vcmask 1043459   ;;  %vm1556_vm3 = vcmask 1044484   ;;  %vm1565_vm7 = vcmask 1047559  }
  0x26   : > { %s3839_s25 = sshll.u32 %s3278_s24, 2  ;;  %s641_s23 = scalar_lea.vmem %s3865_s7, %s3278_s24  ;;  %722 = vmatprep.subr.bf16.mxu0 %v2975_v10  ;;  %v690_v33 = vrot.slane %v685_v32, %v689_v18  ;;  %v694_v37 = vrot.slane %v685_v32, %v693_v34  ;;  %v911_v34 = vld [vmem:[%s3825_s8 + $0x70] sm:$0xff]  ;;  %vm1619_vm8 = vcmask 195584  }
  0x27   : > { %s628_s21 = scalar_lea.vmem %s3863_s20, %s3839_s25  ;;  %v795_v14 = vld [vmem:[%s641_s23] sm:$0x1]  ;;  %s3869_s23 = sld [smem:[#allocation19_spill]] }
  0x28   : > { %v647_v0 = vld [vmem:[%s628_s21] sm:$0xf]  ;;  %vm796_vm1 = vcmp.gt.f32.partialorder %v795_v14, 0.5  ;;  %s3112_s20 = smov 98   ;;  %s3113_s21 = smov 108  }
  0x29   : > { %v648_v1 = vunpack.c.l.bf16 %v647_v0  ;;  %v797_v17 = vsel %vm796_vm1, 1, %v3110_v13  ;;  %723 = vmatpush1.bf16.msra.mxu0 %v2977_v12  ;;  %s2651_s29 = sshll.u32 %s3278_s24, 3  ;;  %s3119_s25 = smov 96   ;;  %v864_v0 = vunpack.c.l.s4 %v3121_v63  ;;  %vm1550_vm1 = vcmask 1042434  }
  0x2a   : > { %v801_v20 = vrot.slane %v797_v17, %v689_v18  ;;  %2887 = vmatprep.subr.bf16.mxu0 %v3115_v49  ;;  %s633_s22 = scalar_lea.vmem %s3873_s5, %s2651_s29  ;;  %v900_v17 = vld [vmem:[%s3825_s8 + $0x18] sm:$0x3]  ;;  %s3844_s1 = smov 64  }
  0x2b   : > { %v650_v2 = vsel %vm649_vm0, %v648_v1, 0.0  ;;  %v762_v55 = vld [vmem:[%s633_s22] sm:$0xf]  ;;  %v763_v56 = vld [vmem:[%s633_s22 + $0x4] sm:$0xf]  ;;  %s3125_s22 = smov 112  }
  0x2c   : > { %651 = vadd.xlane.f32.xlu0 %v650_v2  ;;  %vm802_vm5 = vcmp.eq.s32.totalorder %v801_v20, 1  ;;  %767 = vst.msk [vmem:[#allocation2] sm:$0xf] %vm766_vm12, %v762_v55  ;;  %768 = vst.msk [vmem:[#allocation2 + $0x4] sm:$0xf] %vm766_vm12, %v763_v56  ;;  %s3128_s26 = smov 16  }
  0x2d   : > { %vm3309_vm6 = vmand %vm794_vm4, %vm802_vm5  ;;  %v2590_v28 = vld [vmem:[%s3869_s23] ss:$0 sm:$0xff]  ;;  %vm1559_vm4 = vcmask 1045509   ;;  %vm1562_vm5 = vcmask 1046534  }
  0xb9   : > { %v652_v3 = vpop.xlane.xlu0 %651 }
  0xba   : > { %v654_v4 = vmul.f32 0.03125, %v652_v3  ;;  %v865_v3 = vunpack.c.0.s8 %v864_v0 }
  0xbc   : > { %v655_v5 = vsub.f32 %v648_v1, %v654_v4  ;;  %v833_v1 = vunpack.c.0.s8 %v832_v61  ;;  %v868_v10 = vsub.s32 %v865_v3, %v3304_v15 }
  0xbe   : > { %v656_v6 = vmul.f32 %v655_v5, %v655_v5  ;;  %v836_v4 = vsub.s32 %v833_v1, %v3304_v15  ;;  %v907_v15 = vld [vmem:[%s3825_s8 + $0x50] sm:$0xff] }
  0xc0   : > { %v657_v7 = vsel %vm649_vm0, %v656_v6, 0.0 }
  0xc1   : > { %658 = vadd.xlane.f32.xlu0 %v657_v7 }
 0x14e   : > { %v659_v22 = vpop.xlane.xlu0 %658 }
 0x14f   : > { %v660_v23 = vmul.f32 0.03125, %v659_v22 }
 0x151   : > { %v661_v24 = vadd.f32 1e-05, %v660_v23  ;;  %v908_v23 = vld [vmem:[%s3825_s8 + $0x58] sm:$0x3] }
 0x153   : > { %2994 = vrsqrt.f32 %v661_v24  ;;  %v2880_v24 = vpack.c.bf16 %v900_v17, %v899_v16 }
 0x15d   : > { %v2995_v25 = vpop.eup %2994 }
 0x15e   : > { %v663_v27 = vmul.f32 %v2995_v25, %v655_v5 }
 0x160   : > { %v671_v29 = vmul.f32 %v2589_v26, %v663_v27  ;;  %v901_v27 = vld [vmem:[%s3825_s8 + $0x20] sm:$0xff] }
 0x162   : > { %v3319_v30 = vadd.f32 %v2590_v28, %v671_v29  ;;  %v902_v28 = vld [vmem:[%s3825_s8 + $0x28] sm:$0x3]  ;;  %v2896_v29 = vpack.c.bf16 %v908_v23, %v907_v15 }
 0x164   : > { %v680_v31 = vpack.c.bf16 %v3319_v30, %v3319_v30 }
 0x166   : > { %2595 = vmatmul.mubr.msk.bf16.vlgmr.msra.gmra.mrb[0].mxu0 %vm649_vm0, %v680_v31 }
 0x167   : > { %2890 = vmatpush3.bf16.msk.msra.mxu0 %vm3349_vm9, %v2888_v51  ;;  %2744 = vmatprep.mubr.msk.f32.mxu0 %vm3117_vm10, %v3118_v53  ;;  %v3463_v51 = vld [vmem:[#allocation2] sm:$0xff]  }
 0x168   : > { %2895 = vmatprep.subr.bf16.mxu0 %v3115_v49  ;;  %v1573_v52 = vsel %vm1568_vm14, %v3463_v51, 0 }
 0x239   : > { %v754_v35 = vpop.f32.mrb[0].mxu0 }
 0x23a   : > { %v3328_v36 = vadd.f32 %v754_v35, %v690_v33  ;;  %v756_v38 = vpop.f32.mrb[1].mxu0  ;;  %v912_v35 = vld [vmem:[%s3825_s8 + $0x78] sm:$0x3] }
 0x23b   : > { %v758_v39 = vpop.f32.mrb[2].mxu0  ;;  %v757_v41 = vadd.f32 %v756_v38, %v694_v37  ;;  %v2884_v37 = vpack.c.bf16 %v902_v28, %v901_v27 }
 0x23c   : > { %v759_v40 = vpop.f32.mrb[3].mxu0  ;;  %806 = vrot.lane.b32.xlu0 %v3328_v36, %s3111_s19  ;;  %811 = vrot.lane.b32.xlu1 %v3328_v36, %s3112_s20  ;;  %v3386_v58 = vpack.c.bf16 %v3328_v36, %v3328_v36  ;;  %v905_v39 = vld [vmem:[%s3825_s8 + $0x40] sm:$0xff]  ;;  %s638_s19 = scalar_lea.vmem %s3874_s6, %s2651_s29  ;;  %s3124_s29 = smov 120  }
 0x23d   : > { %v906_v40 = vld [vmem:[%s3825_s8 + $0x48] sm:$0x3]  ;;  %v764_v21 = vld [vmem:[%s638_s19] sm:$0xf] }
 0x23e   : > { %v2892_v44 = vpack.c.bf16 %v906_v40, %v905_v39  ;;  %777 = vst.msk [vmem:[#allocation3] sm:$0xf] %vm766_vm12, %v764_v21 }
 0x240   : > { %813 = vrot.lane.b32.xlu1 %v757_v41, %s3112_s20  ;;  %s3354_s20 = sand.u32 1, %s3100_s28   ;;  %v2904_v41 = vpack.c.bf16 %v912_v35, %v911_v34 }
 0x241   : > { %s3875_s30 = sshll.u32 %s3354_s20, 3 }
 0x244   : > { %808 = vrot.lane.b32.xlu1 %v3328_v36, %s3113_s21  ;;  %s3843_s21 = sshll.u32 %s3354_s20, 3 }
 0x245   : > { %s3379_s23 = scalar_lea.vmem [#allocation5], %s3843_s21  ;;  %s3542_s21 = scalar_lea.vmem [#allocation7], %s3875_s30 }
 0x246   : > { %783 = vst.msk [vmem:[%s3379_s23] sm:$0xf] %vm766_vm12, %v763_v56  ;;  %s2426_s30 = sshll.u32 %s3542_s21, 4  ;;  %s3719_s30 = int_to_ptr.vmem [resolvable:$true] %s2426_s30 }
 0x248   : > { %817 = vrot.lane.b32.xlu1 %v3328_v36, %s3114_s27 }
 0x2ae   : > { %v807_v42 = vpop.permute.xlu0 %806  ;;  %v812_v43 = vpop.permute.xlu1 %811 }
 0x2af   : > { %819 = vrot.lane.b32.xlu1 %v807_v42, %s3114_s27 }
 0x2b2   : > { %v814_v48 = vpop.permute.xlu1 %813 }
 0x2b3   : > { %v816_v57 = vsel %vm815_vm11, %v812_v43, %v814_v48  ;;  %v2900_v48 = vpack.c.bf16 %v910_v46, %v909_v45  ;;  %vm1968_vm11 = vcmask 195712  }
 0x2b6   : > { %v809_v54 = vpop.permute.xlu1 %808 }
 0x2b7   : > { %821 = vrot.lane.b32.xlu1 %v809_v54, %s3114_s27  ;;  %v761_v54 = vmul.f32 0.125, %v3328_v36 }
 0x2b9   : > { %v3487_v55 = vpack.c.bf16 %v761_v54, %v761_v54 }
 0x2ba   : > { %v818_v59 = vpop.permute.xlu1 %817 }
 0x2bb   : > { %823 = vrot.lane.b32.xlu1 %v816_v57, %s3114_s27  ;;  %s3127_s27 = smov 8  }
 0x2bf   : > { %773 = vrot.lane.b32.xlu1 %v3386_v58, %s3119_s25  ;;  %s3126_s25 = smov 104  }
 0x321   : > { %v820_v62 = vpop.permute.xlu1 %819 }
 0x329   : > { %v822_v2 = vpop.permute.xlu1 %821 }
 0x32a   : > { %v829_v5 = vcombine.low %v818_v59, %v822_v2  ;;  %v830_v6 = vcombine.high %v818_v59, %v822_v2 }
 0x32c   : > { %v837_v11 = vrot.slane %v829_v5, %v836_v4  ;;  %v844_v12 = vrot.slane %v830_v6, %v836_v4 }
 0x32d   : > { %v824_v7 = vpop.permute.xlu1 %823 }
 0x32e   : > { %v845_v8 = vcombine.low %v820_v62, %v824_v7  ;;  %v846_v9 = vcombine.high %v820_v62, %v824_v7 }
 0x330   : > { %v853_v13 = vrot.slane %v845_v8, %v836_v4  ;;  %v860_v14 = vrot.slane %v846_v9, %v836_v4 }
 0x331   : > { %v774_v18 = vpop.permute.xlu1 %773 }
 0x332   : > { %v861_v19 = vcombine.low %v837_v11, %v853_v13  ;;  %v862_v20 = vcombine.high %v837_v11, %v853_v13  ;;  %v877_v22 = vcombine.low %v844_v12, %v860_v14  ;;  %776 = vst.msk [vmem:[#allocation2 + $0x8] sm:$0xf] %vm766_vm12, %v774_v18  ;;  %784 = vst.msk [vmem:[%s3379_s23 + $0x4] sm:$0xf] %vm766_vm12, %v774_v18 }
 0x333   : > { %v878_v31 = vcombine.high %v844_v12, %v860_v14 }
 0x334   : > { %v876_v25 = vrot.slane %v862_v20, %v868_v10  ;;  %v869_v26 = vrot.slane %v861_v19, %v868_v10  ;;  %v885_v32 = vrot.slane %v877_v22, %v868_v10 }
 0x335   : > { %v892_v42 = vrot.slane %v878_v31, %v868_v10 }
 0x336   : > { %v894_v33 = vcombine.high %v876_v25, %v3118_v53  ;;  %2724 = vmatmul.mubr.msk.f32.vlgmr.msra.gmra.mrb[0].mxu1 %vm913_vm13, %v869_v26  ;;  %v893_v38 = vcombine.high %v869_v26, %v3118_v53  ;;  %v895_v43 = vcombine.high %v885_v32, %v3118_v53 }
 0x337   : > { %2882 = vmatpush3.bf16.msk.msra.mxu1 %vm3349_vm9, %v2880_v24  ;;  %2730 = vmatprep.mubr.msk.f32.mxu1 %vm3117_vm10, %v3118_v53  ;;  %v896_v47 = vcombine.high %v892_v42, %v3118_v53 }
 0x338   : > { %2745 = vmatmul.mubr.msk.f32.vlgmr.msra.gmra.mrb[4].mxu0 %vm913_vm13, %v894_v33  ;;  %2883 = vmatprep.subr.bf16.mxu1 %v3115_v49 }
 0x339   : > { %2898 = vmatpush3.bf16.msk.msra.mxu0 %vm3349_vm9, %v2896_v29  ;;  %2758 = vmatprep.mubr.msk.f32.mxu0 %vm3117_vm10, %v3118_v53 }
 0x33a   : > { %2731 = vmatmul.mubr.msk.f32.vlgmr.msra.gmra.mrb[2].mxu1 %vm913_vm13, %v893_v38  ;;  %2903 = vmatprep.subr.bf16.mxu0 %v3115_v49 }
 0x33b   : > { %2886 = vmatpush3.bf16.msk.msra.mxu1 %vm3349_vm9, %v2884_v37  ;;  %2737 = vmatprep.mubr.msk.f32.mxu1 %vm3117_vm10, %v3118_v53 }
 0x33c   : > { %2759 = vmatmul.mubr.msk.f32.vlgmr.msra.gmra.mrb[6].mxu0 %vm913_vm13, %v895_v43  ;;  %2891 = vmatprep.subr.bf16.mxu1 %v3115_v49 }
 0x33d   : > { %2906 = vmatpush3.bf16.msk.msra.mxu0 %vm3349_vm9, %v2904_v41  ;;  %2772 = vmatprep.mubr.msk.f32.mxu0 %vm3117_vm10, %v3118_v53 }
 0x33e   : > { %2738 = vmatmul.mubr.msk.f32.vlgmr.msra.gmra.mrb[4].mxu1 %vm913_vm13, %v876_v25  ;;  %2775 = vmatprep.subr.bf16.mxu0 %v3118_v53 }
 0x33f   : > { %2894 = vmatpush3.bf16.msk.msra.mxu1 %vm3349_vm9, %v2892_v44  ;;  %2751 = vmatprep.mubr.msk.f32.mxu1 %vm3117_vm10, %v3118_v53 }
 0x340   : > { %2773 = vmatmul.mubr.msk.f32.vlgmr.msra.gmra.mrb[8].mxu0 %vm913_vm13, %v896_v47  ;;  %2899 = vmatprep.subr.bf16.mxu1 %v3115_v49  ;;  %v3481_v49 = vld [vmem:[#allocation2 + $0x8] ss:$0 sps:$4 sm:$0xff]  }
 0x341   : > { %2779 = vmatprep.mubr.msk.bf16.mxu0 %vm3117_vm10, %v3118_v53  ;;  %v1576_v50 = vsel %vm1568_vm14, %v3481_v49, 0 }
 0x342   : > { %2752 = vmatmul.mubr.msk.f32.vlgmr.msra.gmra.mrb[6].mxu1 %vm913_vm13, %v885_v32 }
 0x343   : > { %2902 = vmatpush3.bf16.msk.msra.mxu1 %vm3349_vm9, %v2900_v48  ;;  %2765 = vmatprep.mubr.msk.f32.mxu1 %vm3117_vm10, %v3118_v53  ;;  %vm1828_vm9 = vcmask 130112  }
 0x344   : > { %2799 = vmatprep.subr.bf16.mxu1 %v3118_v53 }
 0x346   : > { %2776 = vmatpush3.bf16.xpose.msra.mxu0 %v1573_v52  ;;  %2766 = vmatmul.mubr.msk.f32.vlgmr.msra.gmra.mrb[8].mxu1 %vm913_vm13, %v892_v42  ;;  %vm2108_vm13 = vcmask 261312  }
 0x347   : > { %2777 = vmatprep.subr.bf16.mxu0 %v3118_v53  ;;  %2803 = vmatprep.mubr.msk.bf16.mxu1 %vm3117_vm10, %v3118_v53 }
 0x34e   : > { %2778 = vmatpush3.bf16.xpose.msra.mxu0 %v1576_v50 }
 0x34f   : > { %2783 = vmatprep.subr.bf16.mxu0 %v3118_v53 }
 0x355   : > { %2780 = vmatmul.mubr.msk.bf16.vlgmr.msra.gmra.mrb[12].mxu0 %vm1568_vm14, %v3487_v55 }
 0x356   : > { %2787 = vmatprep.mubr.msk.bf16.mxu0 %vm3117_vm10, %v3118_v53 }
 0x409   : > { %v987_v56 = vpop.f32.mrb[0].mxu1 }
 0x40a   : > { %v2725_v57 = vpop.f32.mrb[1].mxu1  ;;  %v1696_v60 = vrot.slane %v987_v56, 1  ;;  %v1976_v62 = vrot.slane %v987_v56, 3  ;;  %v1836_v4 = vrot.slane %v987_v56, 2 }
 0x40b   : > { %v1215_v59 = vpop.f32.mrb[4].mxu0 }
 0x40c   : > { %v2746_v61 = vpop.f32.mrb[5].mxu0  ;;  %v1840_v9 = vrot.slane %v1215_v59, 7  ;;  %v1552_v18 = vrot.slane %v1215_v59, 5  ;;  %v1700_v25 = vrot.slane %v1215_v59, 6 }
 0x40d   : > { %v1063_v63 = vpop.f32.mrb[2].mxu1 }
 0x40e   : > { %v1546_v0 = vrot.slane %v1063_v63, 7  ;;  %v1697_v36 = vsel %vm1547_vm15, %v1063_v63, %v1696_v60  ;;  %v1837_v1 = vrot.slane %v1063_v63, 1  ;;  %v1977_v2 = vrot.slane %v1063_v63, 2  ;;  %v2732_v3 = vpop.f32.mrb[3].mxu1 }
 0x40f   : > { %v1367_v5 = vpop.f32.mrb[6].mxu0 }
 0x410   : > { %v1548_v6 = vsel %vm1547_vm15, %v1546_v0, %v987_v56  ;;  %v1978_v7 = vsel %vm1547_vm15, %v1977_v2, %v1976_v62  ;;  %v2760_v8 = vpop.f32.mrb[7].mxu0  ;;  %v1838_v11 = vsel %vm1547_vm15, %v1837_v1, %v1836_v4  ;;  %v1558_v26 = vrot.slane %v1367_v5, 3 }
 0x411   : > { %v1139_v10 = vpop.f32.mrb[4].mxu1  ;;  %v1704_v27 = vrot.slane %v1367_v5, 4  ;;  %v1844_v37 = vrot.slane %v1367_v5, 5  ;;  %v1984_v38 = vrot.slane %v1367_v5, 6 }
 0x412   : > { %v1549_v12 = vrot.slane %v1139_v10, 6  ;;  %v1698_v13 = vrot.slane %v1139_v10, 7  ;;  %v1839_v14 = vsel %vm1550_vm1, %v1139_v10, %v1838_v11  ;;  %v1979_v16 = vrot.slane %v1139_v10, 1  ;;  %v2739_v17 = vpop.f32.mrb[5].mxu1 }
 0x413   : > { %v1841_v19 = vsel %vm1553_vm2, %v1840_v9, %v1839_v14  ;;  %v1519_v20 = vpop.f32.mrb[8].mxu0  ;;  %v765_v17 = vld [vmem:[%s638_s19 + $0x4] sm:$0xf]  ;;  %s2410_s19 = sshll.u32 %s3379_s23, 4  ;;  %s3130_s23 = smov [#allocation5]   ;;  %s3717_s19 = int_to_ptr.vmem [resolvable:$true] %s2410_s19 }
 0x414   : > { %v1551_v22 = vsel %vm1550_vm1, %v1549_v12, %v1548_v6  ;;  %v1699_v15 = vsel %vm1550_vm1, %v1698_v13, %v1697_v36  ;;  %v1980_v23 = vsel %vm1550_vm1, %v1979_v16, %v1978_v7  ;;  %v2774_v24 = vpop.f32.mrb[9].mxu0  ;;  %v1564_v60 = vrot.slane %v1519_v20, 1  ;;  %778 = vst.msk [vmem:[#allocation3 + $0x4] sm:$0xf] %vm766_vm12, %v765_v17  ;;  %785 = vst.msk [vmem:[%s3542_s21] sm:$0xf] %vm766_vm12, %v765_v17 }
 0x415   : > { %v1291_v28 = vpop.f32.mrb[6].mxu1  ;;  %v1554_v29 = vsel %vm1553_vm2, %v1552_v18, %v1551_v22  ;;  %v1701_v39 = vsel %vm1553_vm2, %v1700_v25, %v1699_v15  ;;  %v1981_v40 = vsel %vm1553_vm2, %v1215_v59, %v1980_v23  ;;  %v1708_v61 = vrot.slane %v1519_v20, 2 }
 0x416   : > { %v1555_v31 = vrot.slane %v1291_v28, 4  ;;  %v1702_v32 = vrot.slane %v1291_v28, 5  ;;  %v1842_v33 = vrot.slane %v1291_v28, 6  ;;  %v1982_v34 = vrot.slane %v1291_v28, 7  ;;  %v2753_v35 = vpop.f32.mrb[7].mxu1 }
 0x417   : > { %v1848_v62 = vrot.slane %v1519_v20, 3  ;;  %v1988_v63 = vrot.slane %v1519_v20, 4  ;;  %v3122_v7 = vmov -1e+09  }
 0x418   : > { %v1557_v41 = vsel %vm1556_vm3, %v1555_v31, %v1554_v29  ;;  %v1703_v42 = vsel %vm1556_vm3, %v1702_v32, %v1701_v39  ;;  %v1843_v43 = vsel %vm1556_vm3, %v1842_v33, %v1841_v19  ;;  %v1983_v44 = vsel %vm1556_vm3, %v1982_v34, %v1981_v40 }
 0x419   : > { %v1443_v45 = vpop.f32.mrb[8].mxu1  ;;  %v1560_v46 = vsel %vm1559_vm4, %v1558_v26, %v1557_v41  ;;  %v1705_v47 = vsel %vm1559_vm4, %v1704_v27, %v1703_v42  ;;  %v1845_v48 = vsel %vm1559_vm4, %v1844_v37, %v1843_v43  ;;  %v1985_v52 = vsel %vm1559_vm4, %v1984_v38, %v1983_v44 }
 0x41a   : > { %v1561_v50 = vrot.slane %v1443_v45, 2  ;;  %v1706_v54 = vrot.slane %v1443_v45, 3  ;;  %v1846_v56 = vrot.slane %v1443_v45, 4  ;;  %v1986_v57 = vrot.slane %v1443_v45, 5  ;;  %v2767_v59 = vpop.f32.mrb[9].mxu1 }
 0x41b   : > { %v3529_v8 = vsel %vm3309_vm6, 0.0, %v3122_v7  ;;  %v3548_v18 = vld [vmem:[#allocation3] sm:$0xff]   ;;  %vm1644_vm6 = vcmask 1043456  }
 0x41c   : > { %v1563_v0 = vsel %vm1562_vm5, %v1561_v50, %v1560_v46  ;;  %v1707_v36 = vsel %vm1562_vm5, %v1706_v54, %v1705_v47  ;;  %v1847_v1 = vsel %vm1562_vm5, %v1846_v56, %v1845_v48  ;;  %v1987_v2 = vsel %vm1562_vm5, %v1986_v57, %v1985_v52  ;;  %2784 = vmatpush3.bf16.msra.mxu0 %v3548_v18 }
 0x41d   : > { %v1566_v3 = vsel %vm1565_vm7, %v1564_v60, %v1563_v0  ;;  %v3519_v4 = vsel %vm1565_vm7, %v1708_v61, %v1707_v36  ;;  %v3522_v5 = vsel %vm1565_vm7, %v1848_v62, %v1847_v1  ;;  %v3525_v6 = vsel %vm1565_vm7, %v1988_v63, %v1987_v2  ;;  %2785 = vmatprep.subr.bf16.mxu0 %v3118_v53 }
 0x428   : > { %v1612_v9 = vpop.f32.mrb[12].mxu0 }
 0x429   : > { %v1613_v10 = vadd.f32 %v1612_v9, %v1566_v3  ;;  %v2781_v11 = vpop.f32.mrb[13].mxu0 }
 0x42a   : > { %v1615_v12 = vpop.f32.mrb[14].mxu0 }
 0x42b   : > { %v2782_v13 = vpop.f32.mrb[15].mxu0  ;;  %v1618_v14 = vadd.f32 %v1613_v10, %v3529_v8 }
 0x42d   : > { %v1620_v16 = vsel %vm1619_vm8, %v1618_v14, -inf }
 0x42e   : > { %1621 = vmax.xlane.f32.xlu0 %v1620_v16 }
 0x444   : > { %779 = vrot.lane.b32.xlu0 %v3386_v58, %s3844_s1 }
 0x448   : > { %1694 = vrot.lane.b32.xlu0 %v3481_v49, %s3124_s29 }
 0x4bb   : > { %v1622_v19 = vpop.xlane.xlu0 %1621 }
 0x4bc   : > { %v1623_v20 = vsub.f32 %v1618_v14, %v1622_v19 }
 0x4be   : > { %v1624_v22 = vmul.f32 1.442695, %v1623_v20 }
 0x4bf   : > { %v780_v15 = vpop.permute.xlu0 %779 }
 0x4c0   : > { %2996 = vpow2.f32 %v1624_v22  ;;  %782 = vst.msk [vmem:[#allocation3 + $0x8] sm:$0xf] %vm766_vm12, %v780_v15  ;;  %786 = vst.msk [vmem:[%s3542_s21 + $0x4] sm:$0xf] %vm766_vm12, %v780_v15  ;;  %s3018_s21 = sshll.u32 %s3130_s23, 4  ;;  %s3019_s21 = int_to_ptr.vmem [resolvable:$false] %s3018_s21 }
 0x4c1   : > { %s3020_s3 = scalar_lea.vmem %s3019_s21, 256  ;;  %p3021_p0 = scmp.lt.s32.totalorder %s3717_s19, %s3019_s21 }
 0x4c3   : > { %v1695_v33 = vpop.permute.xlu0 %1694 }
 0x4c4   : > { %v1718_v34 = vsel %vm1568_vm14, %v1695_v33, 0 }
 0x4c7   : > { %v3557_v58 = vld [vmem:[#allocation3 + $0x8] ss:$0 sps:$4 sm:$0xff]  }
 0x4c8   : > { %v1646_v23 = vsel %vm1644_vm6, %v3557_v58, 0 }
 0x4c9   : > { %2786 = vmatpush3.bf16.msra.mxu0 %v1646_v23 }
 0x4ca   : > { %v2997_v24 = vpop.eup %2996  ;;  %2791 = vmatprep.subr.bf16.mxu0 %v3118_v53 }
 0x4cb   : > { %v1626_v25 = vsel %vm1619_vm8, %v2997_v24, 0.0 }
 0x4cc   : > { %1627 = vadd.xlane.f32.xlu1 %v1626_v25 }
 0x4dd   : > { %1692 = vrot.lane.b32.xlu1 %v3463_v51, %s3124_s29 }
 0x4e1   : > { %1690 = vrot.lane.b32.xlu1 %v3487_v55, %s3124_s29 }
 0x4e5   : > { %1775 = vrot.lane.b32.xlu1 %v3557_v58, %s3124_s29 }
 0x559   : > { %v1628_v26 = vpop.xlane.xlu1 %1627 }
 0x55a   : > { %2998 = vrcp.f32 %v1628_v26 }
 0x55d   : > { %v1693_v29 = vpop.permute.xlu1 %1692 }
 0x55e   : > { %v1715_v31 = vsel %vm1568_vm14, %v1693_v29, 0 }
 0x561   : > { %v1691_v35 = vpop.permute.xlu1 %1690 }
 0x564   : > { %v2999_v27 = vpop.eup %2998 }
 0x565   : > { %v1630_v28 = vmul.f32 %v2999_v27, %v2997_v24  ;;  %v1776_v56 = vpop.permute.xlu1 %1775 }
 0x566   : > { %v1782_v57 = vsel %vm1644_vm6, %v1776_v56, 0 }
 0x567   : > { %v1631_v32 = vpack.c.bf16 %v1630_v28, %v1630_v28 }
 0x569   : > { %2788 = vmatmul.mubr.msk.bf16.vlgmr.msra.gmra.mrb[16].mxu0 %vm1619_vm8, %v1631_v32 }
 0x56a   : > { %2792 = vmatpush3.bf16.xpose.msra.mxu0 %v1715_v31  ;;  %2795 = vmatprep.mubr.msk.bf16.mxu0 %vm3117_vm10, %v3118_v53 }
 0x56b   : > { %2793 = vmatprep.subr.bf16.mxu0 %v3118_v53 }
 0x572   : > { %2794 = vmatpush3.bf16.xpose.msra.mxu0 %v1718_v34 }
 0x573   : > { %2815 = vmatprep.subr.bf16.mxu0 %v3118_v53 }
 0x579   : > { %2796 = vmatmul.mubr.msk.bf16.vlgmr.msra.gmra.mrb[20].mxu0 %vm1568_vm14, %v1691_v35 }
 0x57a   : > { %2819 = vmatprep.mubr.msk.bf16.mxu0 %vm3117_vm10, %v3118_v53 }
 0x63c   : > { %v1682_v37 = vpop.f32.mrb[16].mxu0 }
 0x63d   : > { %1688 = vst.msk [vmem:[#allocation4] sm:$0xff] %vm1568_vm14, %v1682_v37  ;;  %v2789_v38 = vpop.f32.mrb[17].mxu0 }
 0x63e   : > { %v1685_v39 = vpop.f32.mrb[18].mxu0 }
 0x63f   : > { %v2790_v40 = vpop.f32.mrb[19].mxu0 }
 0x64c   : > { %v1754_v41 = vpop.f32.mrb[20].mxu0 }
 0x64d   : > { %v1755_v42 = vadd.f32 %v1754_v41, %v3519_v4  ;;  %v2797_v43 = vpop.f32.mrb[21].mxu0 }
 0x64e   : > { %v1757_v44 = vpop.f32.mrb[22].mxu0 }
 0x64f   : > { %v2798_v45 = vpop.f32.mrb[23].mxu0  ;;  %v1760_v46 = vadd.f32 %v1755_v42, %v3529_v8 }
 0x651   : > { %v1761_v47 = vsel %vm1619_vm8, %v1760_v46, -inf }
 0x652   : > { %1762 = vmax.xlane.f32.xlu0 %v1761_v47 }
 0x668   : > { %1773 = vrot.lane.b32.xlu0 %v3548_v18, %s3124_s29  ;;  %s3846_s29 = sshll.u32 %s3249_s0, 7 }
 0x669   : > { %s3727_s1 = scalar_lea.hbm %s3834_s17, %s3846_s29 }
 0x66c   : > { %1832 = vrot.lane.b32.xlu0 %v3463_v51, %s3125_s22 }
 0x670   : > { %1830 = vrot.lane.b32.xlu0 %v3487_v55, %s3125_s22 }
 0x6df   : > { %v1763_v48 = vpop.xlane.xlu0 %1762 }
 0x6e0   : > { %v1764_v52 = vsub.f32 %v1760_v46, %v1763_v48 }
 0x6e2   : > { %v1765_v50 = vmul.f32 1.442695, %v1764_v52 }
 0x6e3   : > { %v1774_v54 = vpop.permute.xlu0 %1773 }
 0x6e4   : > { %3000 = vpow2.f32 %v1765_v50  ;;  %2800 = vmatpush3.bf16.msra.mxu1 %v1774_v54 }
 0x6e5   : > { %2801 = vmatprep.subr.bf16.mxu1 %v3118_v53 }
 0x6e7   : > { %v1833_v0 = vpop.permute.xlu0 %1832 }
 0x6e8   : > { %2802 = vmatpush3.bf16.msra.mxu1 %v1782_v57  ;;  %v1855_v36 = vsel %vm1568_vm14, %v1833_v0, 0 }
 0x6e9   : > { %2807 = vmatprep.subr.bf16.mxu1 %v3118_v53 }
 0x6eb   : > { %v1831_v4 = vpop.permute.xlu0 %1830 }
 0x6ee   : > { %v3001_v59 = vpop.eup %3000 }
 0x6ef   : > { %v1767_v60 = vsel %vm1619_vm8, %v3001_v59, 0.0 }
 0x6f0   : > { %1768 = vadd.xlane.f32.xlu1 %v1767_v60 }
 0x701   : > { %1834 = vrot.lane.b32.xlu1 %v3481_v49, %s3125_s22 }
 0x77d   : > { %v1769_v61 = vpop.xlane.xlu1 %1768 }
 0x77e   : > { %3002 = vrcp.f32 %v1769_v61 }
 0x781   : > { %v1835_v2 = vpop.permute.xlu1 %1834 }
 0x782   : > { %v1858_v3 = vsel %vm1568_vm14, %v1835_v2, 0 }
 0x788   : > { %v3003_v62 = vpop.eup %3002 }
 0x789   : > { %v1771_v63 = vmul.f32 %v3003_v62, %v3001_v59  ;;  %v2983_v62 = vld [vmem:[%s3826_s9 + $0x8] sm:$0xff]  }
 0x78b   : > { %v1772_v1 = vpack.c.bf16 %v1771_v63, %v1771_v63 }
 0x78d   : > { %2804 = vmatmul.mubr.msk.bf16.vlgmr.msra.gmra.mrb[12].mxu1 %vm1619_vm8, %v1772_v1 }
 0x78e   : > { %2808 = vmatpush3.bf16.xpose.msra.mxu1 %v1855_v36  ;;  %2811 = vmatprep.mubr.msk.bf16.mxu1 %vm3117_vm10, %v3118_v53 }
 0x78f   : > { %2809 = vmatprep.subr.bf16.mxu1 %v3118_v53 }
 0x796   : > { %2810 = vmatpush3.bf16.xpose.msra.mxu1 %v1858_v3 }
 0x797   : > { %2831 = vmatprep.subr.bf16.mxu1 %v3118_v53 }
 0x79d   : > { %2812 = vmatmul.mubr.msk.bf16.vlgmr.msra.gmra.mrb[16].mxu1 %vm1568_vm14, %v1831_v4 }
 0x79e   : > { %2835 = vmatprep.mubr.msk.bf16.mxu1 %vm3117_vm10, %v3118_v53 }
 0x860   : > { %v3605_v7 = vpop.f32.mrb[12].mxu1 }
 0x861   : > { %v2805_v9 = vpop.f32.mrb[13].mxu1 }
 0x862   : > { %v1821_v10 = vpop.f32.mrb[14].mxu1 }
 0x863   : > { %v2806_v11 = vpop.f32.mrb[15].mxu1 }
 0x870   : > { %v1894_v12 = vpop.f32.mrb[16].mxu1 }
 0x871   : > { %v1895_v13 = vadd.f32 %v1894_v12, %v3522_v5  ;;  %v2813_v14 = vpop.f32.mrb[17].mxu1 }
 0x872   : > { %v1897_v16 = vpop.f32.mrb[18].mxu1 }
 0x873   : > { %v2814_v21 = vpop.f32.mrb[19].mxu1  ;;  %v1900_v17 = vadd.f32 %v1895_v13, %v3529_v8 }
 0x875   : > { %v1901_v19 = vsel %vm1619_vm8, %v1900_v17, -inf }
 0x876   : > { %1902 = vmax.xlane.f32.xlu1 %v1901_v19 }
 0x887   : > { %1915 = vrot.lane.b32.xlu1 %v3557_v58, %s3125_s22 }
 0x88b   : > { %1972 = vrot.lane.b32.xlu1 %v3463_v51, %s3126_s25 }
 0x88f   : > { %1970 = vrot.lane.b32.xlu1 %v3487_v55, %s3126_s25 }
 0x903   : > { %v1903_v20 = vpop.xlane.xlu1 %1902 }
 0x904   : > { %v1904_v5 = vsub.f32 %v1900_v17, %v1903_v20 }
 0x906   : > { %v1905_v22 = vmul.f32 1.442695, %v1904_v5 }
 0x907   : > { %v1916_v25 = vpop.permute.xlu1 %1915 }
 0x908   : > { %3004 = vpow2.f32 %v1905_v22  ;;  %v1922_v55 = vsel %vm1644_vm6, %v1916_v25, 0  ;;  %v2984_v22 = vld [vmem:[%s3830_s13] sm:$0xff]  }
 0x909   : > { %v2990_v25 = vld [vmem:[%s3831_s14 + $0x20] sm:$0xff]  }
 0x90b   : > { %v1973_v28 = vpop.permute.xlu1 %1972 }
 0x90c   : > { %v1995_v31 = vsel %vm1568_vm14, %v1973_v28, 0 }
 0x90f   : > { %v1971_v33 = vpop.permute.xlu1 %1970 }
 0x912   : > { %v3005_v15 = vpop.eup %3004 }
 0x913   : > { %v1907_v23 = vsel %vm1619_vm8, %v3005_v15, 0.0 }
 0x914   : > { %1908 = vadd.xlane.f32.xlu0 %v1907_v23  ;;  %v2987_v23 = vld [vmem:[%s3831_s14 + $0x8] sm:$0xff]  }
 0x92a   : > { %1913 = vrot.lane.b32.xlu0 %v3548_v18, %s3125_s22 }
 0x92e   : > { %1974 = vrot.lane.b32.xlu0 %v3481_v49, %s3126_s25 }
 0x9a1   : > { %v1909_v24 = vpop.xlane.xlu0 %1908 }
 0x9a2   : > { %3006 = vrcp.f32 %v1909_v24  ;;  %v2988_v24 = vld [vmem:[%s3831_s14 + $0x10] sm:$0xff]  }
 0x9a5   : > { %v1914_v51 = vpop.permute.xlu0 %1913 }
 0x9a6   : > { %2816 = vmatpush3.bf16.msra.mxu0 %v1914_v51  ;;  %v2989_v51 = vld [vmem:[%s3831_s14 + $0x18] sm:$0xff]  }
 0x9a7   : > { %2817 = vmatprep.subr.bf16.mxu0 %v3118_v53 }
 0x9a9   : > { %v1975_v49 = vpop.permute.xlu0 %1974 }
 0x9aa   : > { %2818 = vmatpush3.bf16.msra.mxu0 %v1922_v55  ;;  %v1998_v32 = vsel %vm1568_vm14, %v1975_v49, 0  ;;  %v2991_v55 = vld [vmem:[%s3831_s14 + $0x28] sm:$0xff]   ;;  %v2629_v49 = vld [vmem:[%s3828_s11] ss:$0 sm:$0xff] }
 0x9ab   : > { %2823 = vmatprep.subr.bf16.mxu0 %v3118_v53 }
 0x9ac   : > { %v3007_v26 = vpop.eup %3006 }
 0x9ad   : > { %v1911_v27 = vmul.f32 %v3007_v26, %v3005_v15  ;;  %v2986_v15 = vld [vmem:[%s3831_s14] sm:$0xff]   ;;  %v2992_v26 = vld [vmem:[%s3831_s14 + $0x30] sm:$0xff]  }
 0x9af   : > { %v1912_v29 = vpack.c.bf16 %v1911_v27, %v1911_v27 }
 0x9b1   : > { %2820 = vmatmul.mubr.msk.bf16.vlgmr.msra.gmra.mrb[24].mxu0 %vm1619_vm8, %v1912_v29 }
 0x9b2   : > { %2827 = vmatprep.mubr.msk.bf16.mxu0 %vm3117_vm10, %v3118_v53 }
 0x9b3   : > { %2824 = vmatpush3.bf16.xpose.msra.mxu0 %v1995_v31 }
 0x9b4   : > { %2825 = vmatprep.subr.bf16.mxu0 %v3118_v53 }
 0x9bb   : > { %2826 = vmatpush3.bf16.xpose.msra.mxu0 %v1998_v32 }
 0x9bc   : > { %2847 = vmatprep.subr.bf16.mxu0 %v3118_v53 }
 0x9c2   : > { %2828 = vmatmul.mubr.msk.bf16.vlgmr.msra.gmra.mrb[28].mxu0 %vm1568_vm14, %v1971_v33  ;;  %v2630_v33 = vld [vmem:[%s3829_s12] ss:$0 sm:$0xff] }
 0x9c3   : > { %2851 = vmatprep.mubr.msk.bf16.mxu0 %vm3117_vm10, %v3118_v53  ;;  %2848 = vmatpush3.bf16.msra.mxu0 %v2984_v22 }
 0x9c4   : > { %2849 = vmatprep.subr.bf16.mxu0 %v3118_v53 }
 0xa84   : > { %v1958_v34 = vpop.f32.mrb[24].mxu0 }
 0xa85   : > { %v2821_v35 = vpop.f32.mrb[25].mxu0 }
 0xa86   : > { %v1961_v37 = vpop.f32.mrb[26].mxu0 }
 0xa87   : > { %v2822_v38 = vpop.f32.mrb[27].mxu0  ;;  %v2993_v37 = vld [vmem:[%s3831_s14 + $0x38] sm:$0xff]  }
 0xa95   : > { %v2034_v39 = vpop.f32.mrb[28].mxu0 }
 0xa96   : > { %v2035_v40 = vadd.f32 %v2034_v39, %v3525_v6  ;;  %v2829_v41 = vpop.f32.mrb[29].mxu0 }
 0xa97   : > { %v2037_v42 = vpop.f32.mrb[30].mxu0 }
 0xa98   : > { %v2830_v43 = vpop.f32.mrb[31].mxu0  ;;  %v2040_v44 = vadd.f32 %v2035_v40, %v3529_v8 }
 0xa9a   : > { %v2041_v45 = vsel %vm1619_vm8, %v2040_v44, -inf }
 0xa9b   : > { %2042 = vmax.xlane.f32.xlu0 %v2041_v45 }
 0xab1   : > { %2053 = vrot.lane.b32.xlu0 %v3548_v18, %s3126_s25 }
 0xab5   : > { %1825 = vrot.lane.b32.xlu0 %v3605_v7, %s3127_s27  ;;  %v2625_v7 = vld [vmem:[%s3827_s10] ss:$0 sm:$0xff] }
 0xb28   : > { %v2043_v46 = vpop.xlane.xlu0 %2042 }
 0xb29   : > { %v2044_v47 = vsub.f32 %v2040_v44, %v2043_v46 }
 0xb2b   : > { %v2045_v48 = vmul.f32 1.442695, %v2044_v47 }
 0xb2c   : > { %v2054_v52 = vpop.permute.xlu0 %2053 }
 0xb2d   : > { %3008 = vpow2.f32 %v2045_v48  ;;  %2832 = vmatpush3.bf16.msra.mxu1 %v2054_v52 }
 0xb2e   : > { %2833 = vmatprep.subr.bf16.mxu1 %v3118_v53 }
 0xb30   : > { %v1826_v6 = vpop.permute.xlu0 %1825 }
 0xb31   : > { %1829 = vst.msk [vmem:[#allocation4] sm:$0xff] %vm1828_vm9, %v1826_v6 }
 0xb37   : > { %v3009_v8 = vpop.eup %3008 }
 0xb38   : > { %v2047_v50 = vsel %vm1619_vm8, %v3009_v8, 0.0 }
 0xb39   : > { %2048 = vadd.xlane.f32.xlu1 %v2047_v50 }
 0xb4a   : > { %2055 = vrot.lane.b32.xlu1 %v3557_v58, %s3126_s25  ;;  %v2982_v58 = vld [vmem:[%s3826_s9] sm:$0xff]   ;;  %s3129_s25 = smov 24  }
 0xb4e   : > { %1965 = vrot.lane.b32.xlu1 %v1958_v34, %s3128_s26  ;;  %s3014_s26 = scalar_lea.vmem %s3717_s19, 128 }
 0xb4f   : > { %p3015_p11 = scmp.ne.s32.totalorder %s3717_s19, %s3014_s26  ;;  %p3022_p1 = scmp.lt.s32.totalorder %s3020_s3, %s3014_s26 }
 0xb51   : > { %p3016_p12 = pnand %p3015_p11, %p3266_p5  ;;  %p3023_p2 = por %p3022_p1, %p3021_p0 }
 0xb53   : > { %p3017_p13 = pneg %p3016_p12 }
 0xb55   : > { %p3024_p3 = pnand %p3023_p2, %p3017_p13 }
 0xbc6   : > { %v2049_v18 = vpop.xlane.xlu1 %2048 }
 0xbc7   : > { %3010 = vrcp.f32 %v2049_v18 }
 0xbca   : > { %v2056_v54 = vpop.permute.xlu1 %2055 }
 0xbcb   : > { %v2062_v56 = vsel %vm1644_vm6, %v2056_v54, 0 }
 0xbcc   : > { %2834 = vmatpush3.bf16.msra.mxu1 %v2062_v56 }
 0xbcd   : > { %2839 = vmatprep.subr.bf16.mxu1 %v3118_v53 }
 0xbce   : > { %v1966_v57 = vpop.permute.xlu1 %1965 }
 0xbcf   : > { %1969 = vst.msk [vmem:[#allocation4] sm:$0xff] %vm1968_vm11, %v1966_v57 }
 0xbd1   : > { %v3011_v59 = vpop.eup %3010 }
 0xbd2   : > { %v2051_v60 = vmul.f32 %v3011_v59, %v3009_v8 }
 0xbd4   : > { %v2052_v61 = vpack.c.bf16 %v2051_v60, %v2051_v60 }
 0xbd6   : > { %2836 = vmatmul.mubr.msk.bf16.vlgmr.msra.gmra.mrb[20].mxu1 %vm1619_vm8, %v2052_v61 }
 0xbd7   : > { %2843 = vmatprep.mubr.msk.bf16.mxu1 %vm3117_vm10, %v3118_v53  ;;  %2840 = vmatpush3.bf16.msra.mxu1 %v2982_v58 }
 0xbd8   : > { %2841 = vmatprep.subr.bf16.mxu1 %v3118_v53 }
 0xbdb   : > { %2842 = vmatpush3.bf16.msra.mxu1 %v2983_v62 }
 0xbdc   : > { %2855 = vmatprep.subr.bf16.mxu1 %v3118_v53 }
 0xca9   : > { %v2098_v63 = vpop.f32.mrb[20].mxu1 }
 0xcaa   : > { %2105 = vrot.lane.b32.xlu0 %v2098_v63, %s3129_s25  ;;  %v2837_v0 = vpop.f32.mrb[21].mxu1 }
 0xcab   : > { %v2101_v36 = vpop.f32.mrb[22].mxu1 }
 0xcac   : > { %v2838_v1 = vpop.f32.mrb[23].mxu1 }
 0xd1c   : > { %v2106_v2 = vpop.permute.xlu0 %2105 }
 0xd1d   : > { %2109 = vst.msk [vmem:[#allocation4] sm:$0xff] %vm2108_vm13, %v2106_v2 }
 0xd24   : > { %v2110_v3 = vld [vmem:[#allocation4] sm:$0xff] }
 0xd25   : > { %v2111_v4 = vpack.c.bf16 %v2110_v3, %v2110_v3 }
 0xd27   : > { %2844 = vmatmul.mubr.msk.bf16.vlgmr.msra.gmra.mrb[24].mxu1 %vm649_vm0, %v2111_v4 }
 0xd28   : > { %2871 = vmatprep.mubr.msk.bf16.mxu1 %vm3117_vm10, %v3118_v53  ;;  %2856 = vmatpush3.bf16.msra.mxu1 %v2986_v15 }
 0xd29   : > { %2857 = vmatprep.subr.bf16.mxu1 %v3118_v53 }
 0xd2c   : > { %2858 = vmatpush3.bf16.msra.mxu1 %v2987_v23 }
 0xd2d   : > { %2859 = vmatprep.subr.bf16.mxu1 %v3118_v53 }
 0xd30   : > { %2860 = vmatpush3.bf16.msra.mxu1 %v2988_v24 }
 0xd31   : > { %2861 = vmatprep.subr.bf16.mxu1 %v3118_v53 }
 0xd34   : > { %2862 = vmatpush3.bf16.msra.mxu1 %v2989_v51 }
 0xd35   : > { %2863 = vmatprep.subr.bf16.mxu1 %v3118_v53 }
 0xd38   : > { %2864 = vmatpush3.bf16.msra.mxu1 %v2990_v25 }
 0xd39   : > { %2865 = vmatprep.subr.bf16.mxu1 %v3118_v53 }
 0xd3c   : > { %2866 = vmatpush3.bf16.msra.mxu1 %v2991_v55 }
 0xd3d   : > { %2867 = vmatprep.subr.bf16.mxu1 %v3118_v53 }
 0xd40   : > { %2868 = vmatpush3.bf16.msra.mxu1 %v2992_v26 }
 0xd41   : > { %2869 = vmatprep.subr.bf16.mxu1 %v3118_v53 }
 0xd44   : > { %2870 = vmatpush3.bf16.msra.mxu1 %v2993_v37 }
 0xdfa   : > { %v2172_v9 = vpop.f32.mrb[24].mxu1 }
 0xdfb   : > { %v2173_v10 = vadd.f32 %v2625_v7, %v2172_v9  ;;  %v2845_v11 = vpop.f32.mrb[25].mxu1 }
 0xdfc   : > { %v2175_v12 = vpop.f32.mrb[26].mxu1 }
 0xdfd   : > { %v3664_v13 = vadd.f32 %v2173_v10, %v3319_v30  ;;  %v2846_v14 = vpop.f32.mrb[27].mxu1  ;;  %v2985_v30 = vld [vmem:[%s3830_s13 + $0x8] sm:$0xff]  }
 0xdfe   : > { %2850 = vmatpush3.bf16.msra.mxu0 %v2985_v30 }
 0xdff   : > { %v2179_v16 = vsel %vm649_vm0, %v3664_v13, 0.0 }
 0xe00   : > { %2180 = vadd.xlane.f32.xlu1 %v2179_v16 }
 0xe8d   : > { %v2181_v21 = vpop.xlane.xlu1 %2180 }
 0xe8e   : > { %v2182_v17 = vmul.f32 0.03125, %v2181_v21 }
 0xe90   : > { %v2183_v19 = vsub.f32 %v3664_v13, %v2182_v17 }
 0xe92   : > { %v2184_v20 = vmul.f32 %v2183_v19, %v2183_v19 }
 0xe94   : > { %v2185_v5 = vsel %vm649_vm0, %v2184_v20, 0.0 }
 0xe95   : > { %2186 = vadd.xlane.f32.xlu0 %v2185_v5 }
 0xf22   : > { %v2187_v27 = vpop.xlane.xlu0 %2186 }
 0xf23   : > { %v2188_v28 = vmul.f32 0.03125, %v2187_v27 }
 0xf25   : > { %v2189_v29 = vadd.f32 1e-05, %v2188_v28 }
 0xf27   : > { %3012 = vrsqrt.f32 %v2189_v29 }
 0xf31   : > { %v3013_v31 = vpop.eup %3012 }
 0xf32   : > { %v2191_v32 = vmul.f32 %v3013_v31, %v2183_v19 }
 0xf34   : > { %v2199_v34 = vmul.f32 %v2629_v49, %v2191_v32 }
 0xf36   : > { %v2207_v35 = vadd.f32 %v2630_v33, %v2199_v34 }
 0xf38   : > { %v2208_v53 = vpack.c.bf16 %v2207_v35, %v2207_v35 }
 0xf3a   : > { %2852 = vmatmul.mubr.msk.bf16.vlgmr.msra.gmra.mrb[32].mxu0 %vm649_vm0, %v2208_v53 }
0x100d   : > { %v2262_v38 = vpop.f32.mrb[32].mxu0 }
0x100e   : > { %v2268_v39 = vmax.f32 %v2262_v38, 0.0  ;;  %v2853_v40 = vpop.f32.mrb[33].mxu0 }
0x100f   : > { %v2265_v41 = vpop.f32.mrb[34].mxu0 }
0x1010   : > { %v2269_v42 = vpack.c.bf16 %v2268_v39, %v2268_v39  ;;  %v2854_v43 = vpop.f32.mrb[35].mxu0 }
0x1012   : > { %2872 = vmatmul.mubr.bf16.vlgmr.msra.gmra.mrb[28].mxu1 %v2269_v42 }
0x1013   : > { %3027 = shalt.err (!%p3024_p3)
}
0x1014   : > { %s3028_s22 = scalar_lea.hbm %s3727_s1, 128  ;;  %s3032_s23 = scalar_lea.hbm %s3834_s17, 256 }
0x1015   : > { %p3029_p4 = scmp.ne.s32.totalorder %s3727_s1, %s3028_s22  ;;  %p3033_p9 = scmp.lt.u32.totalorder %s3727_s1, %s3834_s17 }
0x1016   : > { %p3034_p10 = scmp.lt.u32.totalorder %s3032_s23, %s3028_s22  ;;  %p3036_p12 = scmp.lt.u32.totalorder %s3028_s22, %s3727_s1 }
0x1017   : > { %p3030_p7 = pnand %p3029_p4, %p3266_p5 }
0x1018   : > { %p3035_p11 = por %p3034_p10, %p3033_p9 }
0x1019   : > { %p3031_p8 = pneg %p3030_p7 }
0x101a   : > { %p3037_p13 = por %p3036_p12, %p3035_p11 }
0x101c   : > { %p3038_p0 = pnand %p3037_p13, %p3031_p8 }
0x101e   : > { %3041 = shalt.err (!%p3038_p0)
}
0x101f   : > { %s3131_s3 = smov 4   ;;  %s3876_s26 = smov 64  }
0x1020   : > { %s3877_s4 = scalar_lea.sflag [#allocation6], %s3354_s20  ;;  %s3878_s29 = sshll.u32 %s3249_s0, 7 }
0x1021   : > { %2907 = dma.vmem_to_hbm [thread:$0]  (%p3266_p5), %s3717_s19, 128, %s3727_s1, %s3877_s4, %s3876_s26, %s3876_s26, %s3131_s3  }
0x1022   : > { %s3761_s25 = scalar_lea.hbm %s3835_s18, %s3878_s29  ;;  %s2394_s23 = scalar_lea.sflag [#allocation8], %s3354_s20 }
0x1023   : > { %s3042_s21 = scalar_lea.vmem %s3719_s30, 128  ;;  %s3132_s5 = smov [#allocation7]  }
0x1024   : > { %p3043_p1 = scmp.ne.s32.totalorder %s3719_s30, %s3042_s21  ;;  %s3046_s6 = sshll.u32 %s3132_s5, 4  ;;  %s3047_s6 = int_to_ptr.vmem [resolvable:$false] %s3046_s6 }
0x1025   : > { %s3048_s7 = scalar_lea.vmem %s3047_s6, 256  ;;  %p3049_p4 = scmp.lt.s32.totalorder %s3719_s30, %s3047_s6 }
0x1026   : > { %p3044_p2 = pnand %p3043_p1, %p3266_p5  ;;  %p3050_p7 = scmp.lt.s32.totalorder %s3048_s7, %s3042_s21 }
0x1028   : > { %p3045_p3 = pneg %p3044_p2  ;;  %p3051_p8 = por %p3050_p7, %p3049_p4 }
0x102a   : > { %p3052_p9 = pnand %p3051_p8, %p3045_p3 }
0x102c   : > { %3055 = shalt.err (!%p3052_p9)
}
0x102d   : > { %s3056_s4 = scalar_lea.hbm %s3761_s25, 128  ;;  %s3060_s5 = scalar_lea.hbm %s3835_s18, 256 }
0x102e   : > { %p3057_p10 = scmp.ne.s32.totalorder %s3761_s25, %s3056_s4  ;;  %p3061_p13 = scmp.lt.u32.totalorder %s3761_s25, %s3835_s18 }
0x102f   : > { %p3062_p0 = scmp.lt.u32.totalorder %s3060_s5, %s3056_s4  ;;  %p3064_p2 = scmp.lt.u32.totalorder %s3056_s4, %s3761_s25 }
0x1030   : > { %p3058_p11 = pnand %p3057_p10, %p3266_p5 }
0x1031   : > { %p3063_p1 = por %p3062_p0, %p3061_p13 }
0x1032   : > { %p3059_p12 = pneg %p3058_p11 }
0x1033   : > { %p3065_p3 = por %p3064_p2, %p3063_p1 }
0x1035   : > { %p3066_p4 = pnand %p3065_p3, %p3059_p12 }
0x1037   : > { %3069 = shalt.err (!%p3066_p4)
}
0x1038   : > { %2908 = dma.vmem_to_hbm [thread:$0]  (%p3266_p5), %s3719_s30, 128, %s3761_s25, %s2394_s23, %s3876_s26, %s3876_s26, %s3131_s3  }
0x1039   : > { %v2634_v44 = vld [vmem:[%s3832_s15] ss:$0 sm:$0xff]  ;;  %s3879_s2 = sshll.u32 %s3278_s24, 2 }
0x103a   : > { %s645_s20 = scalar_lea.vmem %s3833_s16, %s3879_s2 }
0x10e5   : > { %v2375_v45 = vpop.f32.mrb[28].mxu1 }
0x10e6   : > { %v2376_v46 = vadd.f32 %v2634_v44, %v2375_v45  ;;  %v2873_v47 = vpop.f32.mrb[29].mxu1 }
0x10e7   : > { %v2378_v48 = vpop.f32.mrb[30].mxu1 }
0x10e8   : > { %v2381_v52 = vadd.f32 %v2376_v46, %v3664_v13  ;;  %v2874_v6 = vpop.f32.mrb[31].mxu1 }
0x10ea   : > { %v2382_v8 = vpack.c.bf16 %v2381_v52, %v2381_v52 }
0x10ec   : > { %2383 = vst.msk [vmem:[%s645_s20] sm:$0xf] %vm766_vm12, %v2382_v8 }
0x10ed PF: > { %s3880_s30 = sld [smem:[#allocation13_spill]]  ;;  %s3881_s3 = sld [smem:[#allocation11_spill]] }
0x10f3   : > { %p2918_p5 = scmp.ge.s32.totalorder %s3880_s30, 2  ;;  %s2448_s25 = sand.u32 1, %s3881_s3  }
0x10f4   : > { %s2449_s23 = scalar_lea.sflag [#allocation6], %s2448_s25 }
0x10f5   : > { %p2912_p7 = pnand %p2918_p5, %p3270_p6 }
0x10f7   : > { %3087 = dma.done.wait (!%p2912_p7), %s2449_s23, 128  }
0x10f8   : > { %3089 = vsyncadd (!%p2912_p7), %s2449_s23, 4294967168  ;;  %s2458_s21 = scalar_lea.sflag [#allocation8], %s2448_s25 }
0x10f9   : > { %3091 = dma.done.wait (!%p2912_p7), %s2458_s21, 128  }
0x10fa   : > { %3093 = vsyncadd (!%p2912_p7), %s2458_s21, 4294967168  ;;  %s3883_s30 = sld [smem:[#allocation14_spill]]  ;;  %s3884_s24 = sld [smem:[#allocation12_spill]] }
0x10fb   : > { %s3885_s29 = sld [smem:[#allocation15_spill]]  ;;  %s3886_s27 = smov %s3100_s28 }
0x1100   : > { %p32_p8 = scmp.ge.s32.totalorder %s3883_s30, 4   ;;  %s3887_s28 = smov %s3884_s24 }
0x1102   :  { %34 = sbr.rel (!%p32_p8) target bundleno = 14 (0xe), region = 157 }
0x1109   :  { %2463 = vsyncpa [#allocation6], 1 }
0x110a   :  { %2465 = vsyncpa [#allocation6 + $0x1], 1 }
0x110b   :  { %2466 = vsyncpa [#allocation8], 1 }
0x110c   :  { %2468 = vsyncpa [#allocation8 + $0x1], 1 }

// kernel: decoder_forward.3
= control target key start
LH: loop header
LB: loop body
LE: loop exit
PB: predicated region body
PF: predicated region fallthrough
CT: control target
= control target key end

     0   :  { %s3816_s0 = inlined_call_operand.vmem [shape: f32[2,8,32], index: 0, kind: input, shape index: {}]   ;;  %s3817_s1 = inlined_call_operand.vmem [shape: f32[1,32], index: 1, kind: input, shape index: {}]   ;;  %s3818_s2 = inlined_call_operand.vmem [shape: f32[1,32], index: 2, kind: input, shape index: {}]   ;;  %s3819_s3 = inlined_call_operand.vmem [shape: bf16[32,136], index: 3, kind: input, shape index: {}]   ;;  %s3820_s4 = inlined_call_operand.vmem [shape: f32[1,136], index: 4, kind: input, shape index: {}]   ;;  %s3821_s5 = inlined_call_operand.vmem [shape: bf16[2,16,32], index: 5, kind: input, shape index: {}, may-alias: {5,6}]   ;;  %s3822_s6 = inlined_call_operand.vmem [shape: bf16[2,16,32], index: 6, kind: input, shape index: {}, may-alias: {5,6}]   ;;  %s3823_s7 = inlined_call_operand.vmem [shape: f32[2,1,24], index: 7, kind: input, shape index: {}]   ;;  %s3824_s8 = inlined_call_operand.vmem [shape: f32[8,10,24], index: 8, kind: input, shape index: {}]   ;;  %s3825_s9 = inlined_call_operand.vmem [shape: bf16[32,32], index: 9, kind: input, shape index: {}]   ;;  %s3826_s10 = inlined_call_operand.vmem [shape: f32[1,32], index: 10, kind: input, shape index: {}]   ;;  %s3827_s11 = inlined_call_operand.vmem [shape: f32[1,32], index: 11, kind: input, shape index: {}]   ;;  %s3828_s12 = inlined_call_operand.vmem [shape: f32[1,32], index: 12, kind: input, shape index: {}]   ;;  %s3829_s13 = inlined_call_operand.vmem [shape: bf16[32,128], index: 13, kind: input, shape index: {}]   ;;  %s3830_s14 = inlined_call_operand.vmem [shape: bf16[128,32], index: 14, kind: input, shape index: {}]   ;;  %s3831_s15 = inlined_call_operand.vmem [shape: f32[1,32], index: 15, kind: input, shape index: {}]   ;;  %s3832_s16 = inlined_call_operand.vmem [shape: bf16[2,8,32], index: 16, kind: output, shape index: {0}]   ;;  %s3833_s17 = inlined_call_operand.hbm [shape: bf16[2,16,32], index: 17, kind: output, shape index: {1}]   ;;  %s3834_s18 = inlined_call_operand.hbm [shape: bf16[2,16,32], index: 18, kind: output, shape index: {2}]  }
   0x1   :  { %3844 = sst [smem:[#allocation17_spill]] %s3816_s0 }
   0x2   :  { %3845 = sst [smem:[#allocation18_spill]] %s3817_s1 }
   0x3   :  { %3846 = sst [smem:[#allocation19_spill]] %s3818_s2 }
   0x4   :  { %3847 = sst [smem:[#allocation20_spill]] %s3819_s3 }
   0x5   :  { %3848 = sst [smem:[#allocation21_spill]] %s3820_s4 }
   0x6   :  { %3849 = sst [smem:[#allocation22_spill]] %s3821_s5 }
   0x7   :  { %3850 = sst [smem:[#allocation23_spill]] %s3822_s6 }
   0x8   :  { %3851 = sst [smem:[#allocation24_spill]] %s3823_s7 }
   0x9   :  { %24 = vsyncpa [#allocation6], 0 }
   0xa   :  { %26 = vsyncpa [#allocation6 + $0x1], 0 }
   0xb   :  { %27 = vsyncpa [#allocation8], 0 }
   0xc   :  { %29 = vsyncpa [#allocation8 + $0x1], 0  ;;  %s3227_s27 = smov 0   ;;  %s3229_s28 = smov 0  }
   0xd   :  { %s3231_s29 = smov 0   ;;  %s3233_s30 = smov 0  }
   0xe LB: > { %3852 = sst [smem:[#allocation11_spill]] %s3095_s27  ;;  %s3248_s0 = sadd.s32 4294967295, %s3107_s30   ;;  %s3107_s30 = sphi %s3233_s30, %s3878_s30   ;;  %s3103_s29 = sphi %s3231_s29, %s3880_s29   ;;  %s3099_s28 = sphi %s3229_s28, %s3882_s28   ;;  %s3095_s27 = sphi %s3227_s27, %s3881_s27  }
   0xf   : > { %3853 = sst [smem:[#allocation12_spill]] %s3103_s29  ;;  %s2576_s19 = sadd.s32 4294967294, %s3107_s30  }
  0x10   : > { %3854 = sst [smem:[#allocation13_spill]] %s3107_s30  ;;  %s3252_s1 = sadd.s32 1, %s3107_s30  }
  0x11   : > { %3855 = sst [smem:[#allocation14_spill]] %s3252_s1  ;;  %s424_s20 = sadd.s32 1, %s3103_s29 }
  0x12   : > { %s421_s21 = ssub.s32 %s3107_s30, %s3252_s1  ;;  %p434_p0 = scmp.ne.s32.totalorder %s3103_s29, %s3099_s28 }
  0x13   : > { %p422_p1 = scmp.eq.s32.totalorder %s421_s21, 0  ;;  %p435_p2 = scmp.eq.s32.totalorder %s3248_s0, 1 }
  0x14   : > { %p440_p3 = scmp.ne.s32.totalorder %s3099_s28, %s3095_s27  ;;  %p441_p4 = scmp.eq.s32.totalorder %s2576_s19, 1 }
  0x15   : > { %s3263_s22 = scalar_select %p422_p1, %s3103_s29, %s424_s20  }
  0x16   : > { %p3265_p5 = por %p435_p2, %p434_p0  ;;  %p3269_p6 = por %p441_p4, %p440_p3 }
  0x17   : > { %3856 = sst [smem:[#allocation15_spill]] %s3263_s22  ;;  %p2579_p7 = scmp.ge.s32.totalorder %s3107_s30, 1 }
  0x18   : > { %s3858_s23 = scalar_select %p3269_p6, 1, 0 }
  0x19   : > { %p550_p8 = scmp.lt.s32.totalorder %s3107_s30, 3 }
  0x1a   : > { %3859 = sst [smem:[#allocation16_spill]] %s3858_s23 }
  0x1b   : > { %p551_p9 = pnand %p2579_p7, %p550_p8 }
  0x1c   : > { %p625_p10 = scmp.lt.s32.totalorder (!%p551_p9), %s3248_s0, 1  ;;  %vm648_vm0 = vcmask (!%p551_p9), 261120   ;;  %s3860_s20 = sld [smem:[#allocation17_spill]] (!%p551_p9)  ;;  %vm765_vm1 = vcmask (!%p551_p9), 257024   ;;  %v686_v14 = vlaneseq (!%p551_p9)  ;;  %v3109_v16 = vmov (!%p551_p9), 0   ;;  %v896_v47 = vld [vmem:[%s3824_s8] sm:$0xff] (!%p551_p9) }
  0x1d   : > { %554 = sbr.rel (%p551_p9) target bundleno = 4331 (0x10eb), region = 84  ;;  %s3861_s5 = sld [smem:[#allocation22_spill]] (!%p551_p9)  ;;  %751 = vmatprep.mubr.bf16.mxu0 (!%p551_p9), %v3109_v16  ;;  %v897_v48 = vld [vmem:[%s3824_s8 + $0x8] sm:$0x3] (!%p551_p9)  ;;  %v902_v49 = vld [vmem:[%s3824_s8 + $0x30] sm:$0xff] (!%p551_p9)  ;;  %vm916_vm8 = vcmask (!%p551_p9), 1041408  }
  0x1e   : > { %s3862_s6 = sld [smem:[#allocation23_spill]] (!%p551_p9)  ;;  %s3863_s3 = sld [smem:[#allocation20_spill]] (!%p551_p9)  ;;  %v3317_v18 = vshrl.u32 (!%p551_p9), %v686_v14, 7  ;;  %v789_v19 = vand.u32 (!%p551_p9), 127, %v686_v14  ;;  %v903_v50 = vld [vmem:[%s3824_s8 + $0x38] sm:$0x3] (!%p551_p9)  ;;  %v2875_v55 = vpack.c.bf16 (!%p551_p9), %v897_v48, %v896_v47 }
  0x1f   : > { %s3864_s7 = sld [smem:[#allocation24_spill]] (!%p551_p9)  ;;  %s3868_s23 = sld [smem:[#allocation19_spill]] (!%p551_p9)  ;;  %v3114_v52 = vmov (!%p551_p9), 0.0|0.0   ;;  %vm3115_vm9 = vmmov (!%p551_p9), 1   ;;  %v2887_v54 = vpack.c.bf16 (!%p551_p9), %v903_v50, %v902_v49  ;;  %vm3116_vm11 = vmmov (!%p551_p9), 0   ;;  %v908_v47 = vld [vmem:[%s3824_s8 + $0x60] sm:$0xff] (!%p551_p9) }
  0x20   : > { %v688_v21 = vsub.s32 (!%p551_p9), 0, %v3317_v18  ;;  %vm790_vm3 = vcmp.gt.s32.totalorder (!%p551_p9), %v789_v19, %v3317_v18  ;;  %v791_v22 = vadd.s32 (!%p551_p9), 16, %v3317_v18  ;;  %s3869_s4 = sld [smem:[#allocation21_spill]] (!%p551_p9)  ;;  %v692_v37 = vsub.s32 (!%p551_p9), 1, %v3317_v18  ;;  %s3113_s27 = smov (!%p551_p9), 32   ;;  %vm3366_vm10 = vmpackc.low (!%p551_p9), %vm916_vm8, %vm3115_vm9  ;;  %2874 = vmatprep.subr.bf16.mxu1 (!%p551_p9), %v3114_v52 }
  0x21   : > { %s3350_s29 = sand.u32 (!%p551_p9), 1, %s3099_s28   ;;  %2877 = vmatpush3.bf16.msk.msra.mxu1 (!%p551_p9), %vm3366_vm10, %v2875_v55  ;;  %v3117_v56 = vmov (!%p551_p9), 0.0   ;;  %vm814_vm12 = vcmask (!%p551_p9), 801792   ;;  %s3118_s22 = smov (!%p551_p9), 96   ;;  %v3119_v61 = vmov (!%p551_p9), 1983009808  }
  0x22   : > { %vm792_vm4 = vcmp.le.s32.totalorder (!%p551_p9), %v789_v19, %v791_v22  ;;  %2722 = vmatprep.mubr.msk.f32.mxu1 (!%p551_p9), %vm3116_vm11, %v3117_v56  ;;  %2878 = vmatprep.subr.bf16.mxu1 (!%p551_p9), %v3114_v52  ;;  %v831_v62 = vunpack.c.l.s4 (!%p551_p9), %v3119_v61  ;;  %v899_v19 = vld [vmem:[%s3824_s8 + $0x18] sm:$0x3] (!%p551_p9)  ;;  %vm912_vm13 = vcmask (!%p551_p9), 80896   ;;  %v909_v48 = vld [vmem:[%s3824_s8 + $0x68] sm:$0x3] (!%p551_p9)  ;;  %vm1567_vm14 = vcmask (!%p551_p9), 64512  }
  0x23   : > { %vm793_vm5 = vmand (!%p551_p9), %vm790_vm3, %vm792_vm4  ;;  %v2899_v50 = vpack.c.bf16 (!%p551_p9), %v909_v48, %v908_v47  ;;  %vm1546_vm15 = vcmask (!%p551_p9), 1041409   ;;  %vm1552_vm3 = vcmask (!%p551_p9), 1043459   ;;  %vm1555_vm4 = vcmask (!%p551_p9), 1044484   ;;  %s3125_s26 = smov (!%p551_p9), 104  }
  0x24   : > { %s3277_s24 = scalar_select %p625_p10, %s3248_s0, 1  ;;  %v2971_v11 = vld [vmem:[%s3863_s3 + $0x4] ss:$8 sps:$4 sm:$0xff]   ;;  %v2973_v12 = vld [vmem:[%s3863_s3] ss:$8 sps:$4 sm:$0xff]   ;;  %vm1564_vm8 = vcmask 1047559  }
  0x25   : > { %719 = vmatprep.subr.bf16.mxu0 %v2971_v11  ;;  %v2974_v13 = vld [vmem:[%s3863_s3 + $0x14] ss:$8 sps:$4 sm:$0xff]   ;;  %v2976_v15 = vld [vmem:[%s3863_s3 + $0x10] ss:$8 sps:$4 sm:$0xff]   ;;  %v2589_v31 = vld [vmem:[%s3868_s23] ss:$0 sm:$0xff] }
  0x26   : > { %s2582_s25 = sshll.u32 %s3277_s24, 3  ;;  %s641_s19 = scalar_lea.vmem %s3864_s7, %s3277_s24  ;;  %720 = vmatpush1.bf16.msra.mxu0 %v2973_v12  ;;  %v684_v35 = vld [vmem:[%s3869_s4] sm:$0x3]  ;;  %vm1618_vm9 = vcmask 195584  }
  0x27   : > { %s628_s21 = scalar_lea.vmem %s3860_s20, %s2582_s25  ;;  %s633_s1 = scalar_lea.vmem %s3861_s5, %s2582_s25  ;;  %v794_v17 = vld [vmem:[%s641_s19] sm:$0x1]  ;;  %721 = vmatprep.subr.bf16.mxu0 %v2974_v13  ;;  %v689_v36 = vrot.slane %v684_v35, %v688_v21  ;;  %v693_v40 = vrot.slane %v684_v35, %v692_v37  ;;  %v911_v37 = vld [vmem:[%s3824_s8 + $0x78] sm:$0x3] }
  0x28   : > { %s638_s30 = scalar_lea.vmem %s3862_s6, %s2582_s25  ;;  %v647_v0 = vld [vmem:[%s628_s21] sm:$0xff]  ;;  %vm795_vm2 = vcmp.gt.f32.partialorder %v794_v17, 0.5  ;;  %s3110_s19 = smov 118   ;;  %v898_v17 = vld [vmem:[%s3824_s8 + $0x10] sm:$0xff] }
  0x29   : > { %v761_v1 = vld [vmem:[%s633_s1] sm:$0xf]  ;;  %v3289_v2 = vld [vmem:[%s633_s1 + $0x4] sm:$0xf]  ;;  %v649_v3 = vsel %vm648_vm0, %v647_v0, 0.0  ;;  %v796_v20 = vsel %vm795_vm2, 1, %v3109_v16 }
  0x2a   : > { %v763_v4 = vld [vmem:[%s638_s30] sm:$0xf]  ;;  %v3292_v5 = vld [vmem:[%s638_s30 + $0x4] sm:$0xf]  ;;  %766 = vst.msk [vmem:[#allocation2] sm:$0xf] %vm765_vm1, %v761_v1  ;;  %650 = vadd.xlane.f32.xlu0 %v649_v3  ;;  %722 = vmatpush1.bf16.msra.mxu0 %v2976_v15  ;;  %v800_v23 = vrot.slane %v796_v20, %v688_v21 }
  0x2b   : > { %767 = vst.msk [vmem:[#allocation2 + $0x4] sm:$0xf] %vm765_vm1, %v3289_v2  ;;  %776 = vst.msk [vmem:[#allocation3] sm:$0xf] %vm765_vm1, %v763_v4  ;;  %s3867_s30 = sld [smem:[#allocation18_spill]]  ;;  %s3111_s20 = smov 98   ;;  %2886 = vmatprep.subr.bf16.mxu0 %v3114_v52 }
  0x2c   : > { %777 = vst.msk [vmem:[#allocation3 + $0x4] sm:$0xf] %vm765_vm1, %v3292_v5  ;;  %vm801_vm6 = vcmp.eq.s32.totalorder %v800_v23, 1  ;;  %s3112_s21 = smov 108   ;;  %vm1549_vm2 = vcmask 1042434   ;;  %s3841_s23 = smov 64  }
  0x2d   : > { %vm3322_vm7 = vmand %vm793_vm5, %vm801_vm6  ;;  %vm1558_vm5 = vcmask 1045509   ;;  %vm1561_vm6 = vcmask 1046534   ;;  %s3123_s25 = smov 120  }
  0x31   : > { %v2588_v29 = vld [vmem:[%s3867_s30] ss:$0 sm:$0xff]  ;;  %s2580_s30 = sshll.u32 %s3350_s29, 3 }
  0x32   : > { %s3373_s1 = scalar_lea.vmem [#allocation5], %s2580_s30 }
  0x33   : > { %782 = vst.msk [vmem:[%s3373_s1] sm:$0xf] %vm765_vm1, %v3289_v2  ;;  %v832_v2 = vunpack.c.0.s8 %v831_v62  ;;  %v3548_v24 = vld [vmem:[#allocation3] sm:$0xff]  }
  0xb7   : > { %v651_v6 = vpop.xlane.xlu0 %650 }
  0xb8   : > { %v653_v7 = vmul.f32 0.03125, %v651_v6  ;;  %v835_v6 = vsub.s32 %v832_v2, %v3317_v18 }
  0xba   : > { %v654_v8 = vsub.f32 %v647_v0, %v653_v7  ;;  %v3120_v0 = vmov 1934713408  }
  0xbb   : > { %v863_v1 = vunpack.c.l.s4 %v3120_v0 }
  0xbc   : > { %v655_v9 = vmul.f32 %v654_v8, %v654_v8 }
  0xbd   : > { %v864_v4 = vunpack.c.0.s8 %v863_v1 }
  0xbe   : > { %v656_v10 = vsel %vm648_vm0, %v655_v9, 0.0 }
  0xbf   : > { %657 = vadd.xlane.f32.xlu0 %v656_v10  ;;  %v867_v12 = vsub.s32 %v864_v4, %v3317_v18  ;;  %v906_v18 = vld [vmem:[%s3824_s8 + $0x50] sm:$0xff] }
 0x14c   : > { %v658_v25 = vpop.xlane.xlu0 %657 }
 0x14d   : > { %v659_v26 = vmul.f32 0.03125, %v658_v25  ;;  %v907_v25 = vld [vmem:[%s3824_s8 + $0x58] sm:$0x3] }
 0x14f   : > { %v660_v27 = vadd.f32 1e-05, %v659_v26  ;;  %v2879_v26 = vpack.c.bf16 %v899_v19, %v898_v17 }
 0x151   : > { %2993 = vrsqrt.f32 %v660_v27 }
 0x15b   : > { %v2994_v28 = vpop.eup %2993 }
 0x15c   : > { %v662_v30 = vmul.f32 %v2994_v28, %v654_v8 }
 0x15e   : > { %v670_v32 = vmul.f32 %v2588_v29, %v662_v30  ;;  %v900_v29 = vld [vmem:[%s3824_s8 + $0x20] sm:$0xff]  ;;  %v901_v30 = vld [vmem:[%s3824_s8 + $0x28] sm:$0x3] }
 0x160   : > { %v3332_v33 = vadd.f32 %v2589_v31, %v670_v32  ;;  %v2895_v31 = vpack.c.bf16 %v907_v25, %v906_v18 }
 0x162   : > { %v679_v34 = vpack.c.bf16 %v3332_v33, %v3332_v33 }
 0x164   : > { %2594 = vmatmul.mubr.msk.bf16.vlgmr.msra.gmra.mrb[0].mxu0 %vm648_vm0, %v679_v34 }
 0x165   : > { %2889 = vmatpush3.bf16.msk.msra.mxu0 %vm3366_vm10, %v2887_v54  ;;  %2743 = vmatprep.mubr.msk.f32.mxu0 %vm3116_vm11, %v3117_v56 }
 0x166   : > { %2894 = vmatprep.subr.bf16.mxu0 %v3114_v52 }
 0x237   : > { %v753_v38 = vpop.f32.mrb[0].mxu0 }
 0x238   : > { %v3341_v39 = vadd.f32 %v753_v38, %v689_v36  ;;  %v755_v41 = vpop.f32.mrb[1].mxu0  ;;  %v910_v36 = vld [vmem:[%s3824_s8 + $0x70] sm:$0xff]  ;;  %v2883_v38 = vpack.c.bf16 %v901_v30, %v900_v29 }
 0x239   : > { %v757_v42 = vpop.f32.mrb[2].mxu0  ;;  %v756_v44 = vadd.f32 %v755_v41, %v693_v40  ;;  %v904_v41 = vld [vmem:[%s3824_s8 + $0x40] sm:$0xff] }
 0x23a   : > { %v758_v43 = vpop.f32.mrb[3].mxu0  ;;  %805 = vrot.lane.b32.xlu0 %v3341_v39, %s3110_s19  ;;  %810 = vrot.lane.b32.xlu1 %v3341_v39, %s3111_s20  ;;  %v3392_v59 = vpack.c.bf16 %v3341_v39, %v3341_v39  ;;  %v905_v42 = vld [vmem:[%s3824_s8 + $0x48] sm:$0x3]  ;;  %v760_v55 = vmul.f32 0.125, %v3341_v39  ;;  %s3126_s19 = smov 8  }
 0x23b   : > { %v2903_v43 = vpack.c.bf16 %v911_v37, %v910_v36 }
 0x23e   : > { %812 = vrot.lane.b32.xlu1 %v756_v44, %s3111_s20  ;;  %s3127_s20 = smov 16  }
 0x242   : > { %807 = vrot.lane.b32.xlu1 %v3341_v39, %s3112_s21  ;;  %s2409_s21 = sshll.u32 %s3373_s1, 4  ;;  %s3717_s21 = int_to_ptr.vmem [resolvable:$true] %s2409_s21 }
 0x246   : > { %816 = vrot.lane.b32.xlu1 %v3341_v39, %s3113_s27 }
 0x2ac   : > { %v806_v45 = vpop.permute.xlu0 %805  ;;  %v811_v46 = vpop.permute.xlu1 %810 }
 0x2ad   : > { %818 = vrot.lane.b32.xlu1 %v806_v45, %s3113_s27 }
 0x2b0   : > { %v813_v51 = vpop.permute.xlu1 %812 }
 0x2b1   : > { %v815_v58 = vsel %vm814_vm12, %v811_v46, %v813_v51  ;;  %v2891_v46 = vpack.c.bf16 %v905_v42, %v904_v41  ;;  %v3469_v51 = vld [vmem:[#allocation2] sm:$0xff]   ;;  %vm1967_vm12 = vcmask 195712  }
 0x2b2   : > { %v1572_v54 = vsel %vm1567_vm14, %v3469_v51, 0 }
 0x2b4   : > { %v808_v57 = vpop.permute.xlu1 %807 }
 0x2b5   : > { %820 = vrot.lane.b32.xlu1 %v808_v57, %s3113_s27  ;;  %v3493_v57 = vpack.c.bf16 %v760_v55, %v760_v55 }
 0x2b8   : > { %v817_v60 = vpop.permute.xlu1 %816 }
 0x2b9   : > { %822 = vrot.lane.b32.xlu1 %v815_v58, %s3113_s27  ;;  %s3541_s27 = scalar_lea.vmem [#allocation7], %s2580_s30  ;;  %s3124_s30 = smov 112  }
 0x2ba   : > { %784 = vst.msk [vmem:[%s3541_s27] sm:$0xf] %vm765_vm1, %v3292_v5 }
 0x2bd   : > { %772 = vrot.lane.b32.xlu1 %v3392_v59, %s3118_s22  ;;  %s2425_s22 = sshll.u32 %s3541_s27, 4  ;;  %s3719_s22 = int_to_ptr.vmem [resolvable:$true] %s2425_s22 }
 0x31f   : > { %v819_v63 = vpop.permute.xlu1 %818 }
 0x327   : > { %v821_v3 = vpop.permute.xlu1 %820 }
 0x328   : > { %v828_v7 = vcombine.low %v817_v60, %v821_v3  ;;  %v829_v8 = vcombine.high %v817_v60, %v821_v3 }
 0x32a   : > { %v836_v13 = vrot.slane %v828_v7, %v835_v6  ;;  %v843_v14 = vrot.slane %v829_v8, %v835_v6 }
 0x32b   : > { %v823_v9 = vpop.permute.xlu1 %822 }
 0x32c   : > { %v844_v10 = vcombine.low %v819_v63, %v823_v9  ;;  %v845_v11 = vcombine.high %v819_v63, %v823_v9 }
 0x32e   : > { %v852_v15 = vrot.slane %v844_v10, %v835_v6  ;;  %v859_v16 = vrot.slane %v845_v11, %v835_v6 }
 0x32f   : > { %v773_v20 = vpop.permute.xlu1 %772 }
 0x330   : > { %v860_v21 = vcombine.low %v836_v13, %v852_v15  ;;  %v861_v22 = vcombine.high %v836_v13, %v852_v15  ;;  %v876_v23 = vcombine.low %v843_v14, %v859_v16  ;;  %775 = vst.msk [vmem:[#allocation2 + $0x8] sm:$0xf] %vm765_vm1, %v773_v20  ;;  %783 = vst.msk [vmem:[%s3373_s1 + $0x4] sm:$0xf] %vm765_vm1, %v773_v20  ;;  %s3129_s1 = smov [#allocation5]  }
 0x331   : > { %v877_v32 = vcombine.high %v843_v14, %v859_v16 }
 0x332   : > { %v875_v27 = vrot.slane %v861_v22, %v867_v12  ;;  %v868_v28 = vrot.slane %v860_v21, %v867_v12  ;;  %v884_v34 = vrot.slane %v876_v23, %v867_v12 }
 0x333   : > { %v891_v44 = vrot.slane %v877_v32, %v867_v12 }
 0x334   : > { %v893_v35 = vcombine.high %v875_v27, %v3117_v56  ;;  %2723 = vmatmul.mubr.msk.f32.vlgmr.msra.gmra.mrb[0].mxu1 %vm912_vm13, %v868_v28  ;;  %v892_v40 = vcombine.high %v868_v28, %v3117_v56  ;;  %v894_v45 = vcombine.high %v884_v34, %v3117_v56 }
 0x335   : > { %2881 = vmatpush3.bf16.msk.msra.mxu1 %vm3366_vm10, %v2879_v26  ;;  %2729 = vmatprep.mubr.msk.f32.mxu1 %vm3116_vm11, %v3117_v56  ;;  %v895_v49 = vcombine.high %v891_v44, %v3117_v56 }
 0x336   : > { %2744 = vmatmul.mubr.msk.f32.vlgmr.msra.gmra.mrb[4].mxu0 %vm912_vm13, %v893_v35  ;;  %2882 = vmatprep.subr.bf16.mxu1 %v3114_v52 }
 0x337   : > { %2897 = vmatpush3.bf16.msk.msra.mxu0 %vm3366_vm10, %v2895_v31  ;;  %2757 = vmatprep.mubr.msk.f32.mxu0 %vm3116_vm11, %v3117_v56 }
 0x338   : > { %2730 = vmatmul.mubr.msk.f32.vlgmr.msra.gmra.mrb[2].mxu1 %vm912_vm13, %v892_v40  ;;  %2902 = vmatprep.subr.bf16.mxu0 %v3114_v52 }
 0x339   : > { %2885 = vmatpush3.bf16.msk.msra.mxu1 %vm3366_vm10, %v2883_v38  ;;  %2736 = vmatprep.mubr.msk.f32.mxu1 %vm3116_vm11, %v3117_v56 }
 0x33a   : > { %2758 = vmatmul.mubr.msk.f32.vlgmr.msra.gmra.mrb[6].mxu0 %vm912_vm13, %v894_v45  ;;  %2890 = vmatprep.subr.bf16.mxu1 %v3114_v52 }
 0x33b   : > { %2905 = vmatpush3.bf16.msk.msra.mxu0 %vm3366_vm10, %v2903_v43  ;;  %2771 = vmatprep.mubr.msk.f32.mxu0 %vm3116_vm11, %v3117_v56 }
 0x33c   : > { %2737 = vmatmul.mubr.msk.f32.vlgmr.msra.gmra.mrb[4].mxu1 %vm912_vm13, %v875_v27  ;;  %2774 = vmatprep.subr.bf16.mxu0 %v3117_v56 }
 0x33d   : > { %2893 = vmatpush3.bf16.msk.msra.mxu1 %vm3366_vm10, %v2891_v46  ;;  %2750 = vmatprep.mubr.msk.f32.mxu1 %vm3116_vm11, %v3117_v56 }
 0x33e   : > { %2772 = vmatmul.mubr.msk.f32.vlgmr.msra.gmra.mrb[8].mxu0 %vm912_vm13, %v895_v49  ;;  %2898 = vmatprep.subr.bf16.mxu1 %v3114_v52  ;;  %v3487_v52 = vld [vmem:[#allocation2 + $0x8] ss:$0 sps:$4 sm:$0xff]  }
 0x33f   : > { %2778 = vmatprep.mubr.msk.bf16.mxu0 %vm3116_vm11, %v3117_v56  ;;  %v1575_v53 = vsel %vm1567_vm14, %v3487_v52, 0 }
 0x340   : > { %2751 = vmatmul.mubr.msk.f32.vlgmr.msra.gmra.mrb[6].mxu1 %vm912_vm13, %v884_v34 }
 0x341   : > { %2901 = vmatpush3.bf16.msk.msra.mxu1 %vm3366_vm10, %v2899_v50  ;;  %2764 = vmatprep.mubr.msk.f32.mxu1 %vm3116_vm11, %v3117_v56  ;;  %vm1827_vm10 = vcmask 130112  }
 0x342   : > { %2798 = vmatprep.subr.bf16.mxu1 %v3117_v56 }
 0x344   : > { %2775 = vmatpush3.bf16.xpose.msra.mxu0 %v1572_v54  ;;  %2765 = vmatmul.mubr.msk.f32.vlgmr.msra.gmra.mrb[8].mxu1 %vm912_vm13, %v891_v44  ;;  %vm2107_vm13 = vcmask 261312  }
 0x345   : > { %2776 = vmatprep.subr.bf16.mxu0 %v3117_v56  ;;  %2802 = vmatprep.mubr.msk.bf16.mxu1 %vm3116_vm11, %v3117_v56 }
 0x34c   : > { %2777 = vmatpush3.bf16.xpose.msra.mxu0 %v1575_v53 }
 0x34d   : > { %2782 = vmatprep.subr.bf16.mxu0 %v3117_v56 }
 0x353   : > { %2779 = vmatmul.mubr.msk.bf16.vlgmr.msra.gmra.mrb[12].mxu0 %vm1567_vm14, %v3493_v57 }
 0x354   : > { %2786 = vmatprep.mubr.msk.bf16.mxu0 %vm3116_vm11, %v3117_v56  ;;  %2783 = vmatpush3.bf16.msra.mxu0 %v3548_v24 }
 0x355   : > { %2784 = vmatprep.subr.bf16.mxu0 %v3117_v56 }
 0x407   : > { %v986_v58 = vpop.f32.mrb[0].mxu1 }
 0x408   : > { %v2724_v60 = vpop.f32.mrb[1].mxu1  ;;  %v1695_v62 = vrot.slane %v986_v58, 1  ;;  %v1975_v0 = vrot.slane %v986_v58, 3  ;;  %v1835_v7 = vrot.slane %v986_v58, 2 }
 0x409   : > { %v1214_v61 = vpop.f32.mrb[4].mxu0 }
 0x40a   : > { %v2745_v63 = vpop.f32.mrb[5].mxu0  ;;  %v1839_v12 = vrot.slane %v1214_v61, 7  ;;  %v1551_v21 = vrot.slane %v1214_v61, 5  ;;  %v1699_v28 = vrot.slane %v1214_v61, 6 }
 0x40b   : > { %v1062_v1 = vpop.f32.mrb[2].mxu1 }
 0x40c   : > { %v1545_v2 = vrot.slane %v1062_v1, 7  ;;  %v1696_v39 = vsel %vm1546_vm15, %v1062_v1, %v1695_v62  ;;  %v1836_v3 = vrot.slane %v1062_v1, 1  ;;  %v1976_v4 = vrot.slane %v1062_v1, 2  ;;  %v2731_v6 = vpop.f32.mrb[3].mxu1 }
 0x40d   : > { %v1366_v8 = vpop.f32.mrb[6].mxu0 }
 0x40e   : > { %v1547_v9 = vsel %vm1546_vm15, %v1545_v2, %v986_v58  ;;  %v1977_v10 = vsel %vm1546_vm15, %v1976_v4, %v1975_v0  ;;  %v2759_v11 = vpop.f32.mrb[7].mxu0  ;;  %v1837_v14 = vsel %vm1546_vm15, %v1836_v3, %v1835_v7  ;;  %v1557_v29 = vrot.slane %v1366_v8, 3 }
 0x40f   : > { %v1138_v13 = vpop.f32.mrb[4].mxu1  ;;  %v1703_v30 = vrot.slane %v1366_v8, 4  ;;  %v1843_v40 = vrot.slane %v1366_v8, 5  ;;  %v1983_v41 = vrot.slane %v1366_v8, 6  ;;  %v3121_v11 = vmov -1e+09  }
 0x410   : > { %v1548_v15 = vrot.slane %v1138_v13, 6  ;;  %v1697_v16 = vrot.slane %v1138_v13, 7  ;;  %v1838_v17 = vsel %vm1549_vm2, %v1138_v13, %v1837_v14  ;;  %v1978_v19 = vrot.slane %v1138_v13, 1  ;;  %v2738_v20 = vpop.f32.mrb[5].mxu1 }
 0x411   : > { %v1840_v22 = vsel %vm1552_vm3, %v1839_v12, %v1838_v17  ;;  %v1518_v23 = vpop.f32.mrb[8].mxu0  ;;  %v3535_v12 = vsel %vm3322_vm7, 0.0, %v3121_v11  ;;  %vm1643_vm7 = vcmask 1043456  }
 0x412   : > { %v1550_v18 = vsel %vm1549_vm2, %v1548_v15, %v1547_v9  ;;  %v1698_v25 = vsel %vm1549_vm2, %v1697_v16, %v1696_v39  ;;  %v1979_v26 = vsel %vm1549_vm2, %v1978_v19, %v1977_v10  ;;  %v2773_v27 = vpop.f32.mrb[9].mxu0  ;;  %v1563_v63 = vrot.slane %v1518_v23, 1 }
 0x413   : > { %v1290_v31 = vpop.f32.mrb[6].mxu1  ;;  %v1553_v32 = vsel %vm1552_vm3, %v1551_v21, %v1550_v18  ;;  %v1700_v42 = vsel %vm1552_vm3, %v1699_v28, %v1698_v25  ;;  %v1980_v43 = vsel %vm1552_vm3, %v1214_v61, %v1979_v26  ;;  %v1707_v0 = vrot.slane %v1518_v23, 2 }
 0x414   : > { %v1554_v34 = vrot.slane %v1290_v31, 4  ;;  %v1701_v35 = vrot.slane %v1290_v31, 5  ;;  %v1841_v36 = vrot.slane %v1290_v31, 6  ;;  %v1981_v37 = vrot.slane %v1290_v31, 7  ;;  %v2752_v38 = vpop.f32.mrb[7].mxu1 }
 0x415   : > { %v1847_v1 = vrot.slane %v1518_v23, 3  ;;  %v1987_v2 = vrot.slane %v1518_v23, 4 }
 0x416   : > { %v1556_v44 = vsel %vm1555_vm4, %v1554_v34, %v1553_v32  ;;  %v1702_v45 = vsel %vm1555_vm4, %v1701_v35, %v1700_v42  ;;  %v1842_v46 = vsel %vm1555_vm4, %v1841_v36, %v1840_v22  ;;  %v1982_v47 = vsel %vm1555_vm4, %v1981_v37, %v1980_v43 }
 0x417   : > { %v1442_v48 = vpop.f32.mrb[8].mxu1  ;;  %v1559_v49 = vsel %vm1558_vm5, %v1557_v29, %v1556_v44  ;;  %v1704_v50 = vsel %vm1558_vm5, %v1703_v30, %v1702_v45  ;;  %v1844_v54 = vsel %vm1558_vm5, %v1843_v40, %v1842_v46  ;;  %v1984_v53 = vsel %vm1558_vm5, %v1983_v41, %v1982_v47 }
 0x418   : > { %v1560_v55 = vrot.slane %v1442_v48, 2  ;;  %v1705_v58 = vrot.slane %v1442_v48, 3  ;;  %v1845_v60 = vrot.slane %v1442_v48, 4  ;;  %v1985_v61 = vrot.slane %v1442_v48, 5  ;;  %v2766_v62 = vpop.f32.mrb[9].mxu1 }
 0x41a   : > { %v1562_v39 = vsel %vm1561_vm6, %v1560_v55, %v1559_v49  ;;  %v1706_v3 = vsel %vm1561_vm6, %v1705_v58, %v1704_v50  ;;  %v1846_v4 = vsel %vm1561_vm6, %v1845_v60, %v1844_v54  ;;  %v1986_v6 = vsel %vm1561_vm6, %v1985_v61, %v1984_v53 }
 0x41b   : > { %v1565_v7 = vsel %vm1564_vm8, %v1563_v63, %v1562_v39  ;;  %v3525_v8 = vsel %vm1564_vm8, %v1707_v0, %v1706_v3  ;;  %v3528_v9 = vsel %vm1564_vm8, %v1847_v1, %v1846_v4  ;;  %v3531_v10 = vsel %vm1564_vm8, %v1987_v2, %v1986_v6 }
 0x426   : > { %v1611_v13 = vpop.f32.mrb[12].mxu0 }
 0x427   : > { %v1612_v14 = vadd.f32 %v1611_v13, %v1565_v7  ;;  %v2780_v15 = vpop.f32.mrb[13].mxu0 }
 0x428   : > { %v1614_v16 = vpop.f32.mrb[14].mxu0 }
 0x429   : > { %v2781_v17 = vpop.f32.mrb[15].mxu0  ;;  %v1617_v19 = vadd.f32 %v1612_v14, %v3535_v12 }
 0x42b   : > { %v1619_v20 = vsel %vm1618_vm9, %v1617_v19, -inf }
 0x42c   : > { %1620 = vmax.xlane.f32.xlu0 %v1619_v20 }
 0x442   : > { %778 = vrot.lane.b32.xlu0 %v3392_v59, %s3841_s23 }
 0x446   : > { %1693 = vrot.lane.b32.xlu0 %v3487_v52, %s3123_s25 }
 0x4b9   : > { %v1621_v21 = vpop.xlane.xlu0 %1620 }
 0x4ba   : > { %v1622_v22 = vsub.f32 %v1617_v19, %v1621_v21 }
 0x4bc   : > { %v1623_v23 = vmul.f32 1.442695, %v1622_v22 }
 0x4bd   : > { %v779_v18 = vpop.permute.xlu0 %778 }
 0x4be   : > { %2995 = vpow2.f32 %v1623_v23  ;;  %781 = vst.msk [vmem:[#allocation3 + $0x8] sm:$0xf] %vm765_vm1, %v779_v18  ;;  %785 = vst.msk [vmem:[%s3541_s27 + $0x4] sm:$0xf] %vm765_vm1, %v779_v18  ;;  %s3017_s27 = sshll.u32 %s3129_s1, 4  ;;  %s3018_s27 = int_to_ptr.vmem [resolvable:$false] %s3017_s27 }
 0x4bf   : > { %s3019_s3 = scalar_lea.vmem %s3018_s27, 256  ;;  %p3020_p0 = scmp.lt.s32.totalorder %s3717_s21, %s3018_s27 }
 0x4c1   : > { %v1694_v34 = vpop.permute.xlu0 %1693 }
 0x4c2   : > { %v1717_v35 = vsel %vm1567_vm14, %v1694_v34, 0 }
 0x4c5   : > { %v3557_v5 = vld [vmem:[#allocation3 + $0x8] ss:$0 sps:$4 sm:$0xff]  }
 0x4c6   : > { %v1645_v59 = vsel %vm1643_vm7, %v3557_v5, 0 }
 0x4c7   : > { %2785 = vmatpush3.bf16.msra.mxu0 %v1645_v59 }
 0x4c8   : > { %v2996_v25 = vpop.eup %2995  ;;  %2790 = vmatprep.subr.bf16.mxu0 %v3117_v56 }
 0x4c9   : > { %v1625_v26 = vsel %vm1618_vm9, %v2996_v25, 0.0 }
 0x4ca   : > { %1626 = vadd.xlane.f32.xlu1 %v1625_v26 }
 0x4db   : > { %1691 = vrot.lane.b32.xlu1 %v3469_v51, %s3123_s25 }
 0x4df   : > { %1689 = vrot.lane.b32.xlu1 %v3493_v57, %s3123_s25 }
 0x4e3   : > { %1774 = vrot.lane.b32.xlu1 %v3557_v5, %s3123_s25 }
 0x557   : > { %v1627_v27 = vpop.xlane.xlu1 %1626 }
 0x558   : > { %2997 = vrcp.f32 %v1627_v27 }
 0x55b   : > { %v1692_v30 = vpop.permute.xlu1 %1691 }
 0x55c   : > { %v1714_v31 = vsel %vm1567_vm14, %v1692_v30, 0 }
 0x55f   : > { %v1690_v36 = vpop.permute.xlu1 %1689 }
 0x562   : > { %v2998_v28 = vpop.eup %2997 }
 0x563   : > { %v1629_v29 = vmul.f32 %v2998_v28, %v2996_v25  ;;  %v1775_v55 = vpop.permute.xlu1 %1774 }
 0x564   : > { %v1781_v58 = vsel %vm1643_vm7, %v1775_v55, 0 }
 0x565   : > { %v1630_v32 = vpack.c.bf16 %v1629_v29, %v1629_v29 }
 0x567   : > { %2787 = vmatmul.mubr.msk.bf16.vlgmr.msra.gmra.mrb[16].mxu0 %vm1618_vm9, %v1630_v32 }
 0x568   : > { %2791 = vmatpush3.bf16.xpose.msra.mxu0 %v1714_v31  ;;  %2794 = vmatprep.mubr.msk.bf16.mxu0 %vm3116_vm11, %v3117_v56 }
 0x569   : > { %2792 = vmatprep.subr.bf16.mxu0 %v3117_v56 }
 0x570   : > { %2793 = vmatpush3.bf16.xpose.msra.mxu0 %v1717_v35 }
 0x571   : > { %2814 = vmatprep.subr.bf16.mxu0 %v3117_v56 }
 0x577   : > { %2795 = vmatmul.mubr.msk.bf16.vlgmr.msra.gmra.mrb[20].mxu0 %vm1567_vm14, %v1690_v36 }
 0x578   : > { %2818 = vmatprep.mubr.msk.bf16.mxu0 %vm3116_vm11, %v3117_v56 }
 0x63a   : > { %v1681_v37 = vpop.f32.mrb[16].mxu0 }
 0x63b   : > { %1687 = vst.msk [vmem:[#allocation4] sm:$0xff] %vm1567_vm14, %v1681_v37  ;;  %v2788_v38 = vpop.f32.mrb[17].mxu0 }
 0x63c   : > { %v1684_v40 = vpop.f32.mrb[18].mxu0 }
 0x63d   : > { %v2789_v41 = vpop.f32.mrb[19].mxu0 }
 0x64a   : > { %v1753_v42 = vpop.f32.mrb[20].mxu0 }
 0x64b   : > { %v1754_v43 = vadd.f32 %v1753_v42, %v3525_v8  ;;  %v2796_v44 = vpop.f32.mrb[21].mxu0 }
 0x64c   : > { %v1756_v45 = vpop.f32.mrb[22].mxu0 }
 0x64d   : > { %v2797_v46 = vpop.f32.mrb[23].mxu0  ;;  %v1759_v47 = vadd.f32 %v1754_v43, %v3535_v12 }
 0x64f   : > { %v1760_v48 = vsel %vm1618_vm9, %v1759_v47, -inf }
 0x650   : > { %1761 = vmax.xlane.f32.xlu0 %v1760_v48 }
 0x666   : > { %1772 = vrot.lane.b32.xlu0 %v3548_v24, %s3123_s25  ;;  %s3843_s25 = sshll.u32 %s3248_s0, 7 }
 0x667   : > { %s3727_s23 = scalar_lea.hbm %s3833_s17, %s3843_s25 }
 0x66a   : > { %1831 = vrot.lane.b32.xlu0 %v3469_v51, %s3124_s30 }
 0x66e   : > { %1829 = vrot.lane.b32.xlu0 %v3493_v57, %s3124_s30 }
 0x6dd   : > { %v1762_v49 = vpop.xlane.xlu0 %1761 }
 0x6de   : > { %v1763_v50 = vsub.f32 %v1759_v47, %v1762_v49 }
 0x6e0   : > { %v1764_v54 = vmul.f32 1.442695, %v1763_v50 }
 0x6e1   : > { %v1773_v53 = vpop.permute.xlu0 %1772 }
 0x6e2   : > { %2999 = vpow2.f32 %v1764_v54  ;;  %2799 = vmatpush3.bf16.msra.mxu1 %v1773_v53 }
 0x6e3   : > { %2800 = vmatprep.subr.bf16.mxu1 %v3117_v56 }
 0x6e5   : > { %v1832_v1 = vpop.permute.xlu0 %1831 }
 0x6e6   : > { %2801 = vmatpush3.bf16.msra.mxu1 %v1781_v58  ;;  %v1854_v2 = vsel %vm1567_vm14, %v1832_v1, 0 }
 0x6e7   : > { %2806 = vmatprep.subr.bf16.mxu1 %v3117_v56 }
 0x6e9   : > { %v1830_v6 = vpop.permute.xlu0 %1829 }
 0x6ec   : > { %v3000_v60 = vpop.eup %2999 }
 0x6ed   : > { %v1766_v61 = vsel %vm1618_vm9, %v3000_v60, 0.0 }
 0x6ee   : > { %1767 = vadd.xlane.f32.xlu1 %v1766_v61 }
 0x6ff   : > { %1833 = vrot.lane.b32.xlu1 %v3487_v52, %s3124_s30 }
 0x77b   : > { %v1768_v62 = vpop.xlane.xlu1 %1767 }
 0x77c   : > { %3001 = vrcp.f32 %v1768_v62 }
 0x77f   : > { %v1834_v3 = vpop.permute.xlu1 %1833 }
 0x780   : > { %v1857_v4 = vsel %vm1567_vm14, %v1834_v3, 0 }
 0x786   : > { %v3002_v63 = vpop.eup %3001 }
 0x787   : > { %v1770_v0 = vmul.f32 %v3002_v63, %v3000_v60  ;;  %v2982_v63 = vld [vmem:[%s3825_s9 + $0x8] sm:$0xff]  }
 0x789   : > { %v1771_v39 = vpack.c.bf16 %v1770_v0, %v1770_v0 }
 0x78b   : > { %2803 = vmatmul.mubr.msk.bf16.vlgmr.msra.gmra.mrb[12].mxu1 %vm1618_vm9, %v1771_v39 }
 0x78c   : > { %2807 = vmatpush3.bf16.xpose.msra.mxu1 %v1854_v2  ;;  %2810 = vmatprep.mubr.msk.bf16.mxu1 %vm3116_vm11, %v3117_v56 }
 0x78d   : > { %2808 = vmatprep.subr.bf16.mxu1 %v3117_v56 }
 0x794   : > { %2809 = vmatpush3.bf16.xpose.msra.mxu1 %v1857_v4 }
 0x795   : > { %2830 = vmatprep.subr.bf16.mxu1 %v3117_v56 }
 0x79b   : > { %2811 = vmatmul.mubr.msk.bf16.vlgmr.msra.gmra.mrb[16].mxu1 %vm1567_vm14, %v1830_v6 }
 0x79c   : > { %2834 = vmatprep.mubr.msk.bf16.mxu1 %vm3116_vm11, %v3117_v56 }
 0x85e   : > { %v3605_v7 = vpop.f32.mrb[12].mxu1 }
 0x85f   : > { %v2804_v8 = vpop.f32.mrb[13].mxu1 }
 0x860   : > { %v1820_v11 = vpop.f32.mrb[14].mxu1 }
 0x861   : > { %v2805_v13 = vpop.f32.mrb[15].mxu1 }
 0x86e   : > { %v1893_v14 = vpop.f32.mrb[16].mxu1 }
 0x86f   : > { %v1894_v15 = vadd.f32 %v1893_v14, %v3528_v9  ;;  %v2812_v16 = vpop.f32.mrb[17].mxu1 }
 0x870   : > { %v1896_v17 = vpop.f32.mrb[18].mxu1 }
 0x871   : > { %v2813_v19 = vpop.f32.mrb[19].mxu1  ;;  %v1899_v20 = vadd.f32 %v1894_v15, %v3535_v12 }
 0x873   : > { %v1900_v21 = vsel %vm1618_vm9, %v1899_v20, -inf }
 0x874   : > { %1901 = vmax.xlane.f32.xlu1 %v1900_v21 }
 0x885   : > { %1914 = vrot.lane.b32.xlu1 %v3557_v5, %s3124_s30 }
 0x889   : > { %1971 = vrot.lane.b32.xlu1 %v3469_v51, %s3125_s26 }
 0x88d   : > { %1969 = vrot.lane.b32.xlu1 %v3493_v57, %s3125_s26 }
 0x901   : > { %v1902_v22 = vpop.xlane.xlu1 %1901 }
 0x902   : > { %v1903_v9 = vsub.f32 %v1899_v20, %v1902_v22 }
 0x904   : > { %v1904_v23 = vmul.f32 1.442695, %v1903_v9 }
 0x905   : > { %v1915_v26 = vpop.permute.xlu1 %1914 }
 0x906   : > { %3003 = vpow2.f32 %v1904_v23  ;;  %v1921_v57 = vsel %vm1643_vm7, %v1915_v26, 0  ;;  %v2983_v23 = vld [vmem:[%s3829_s13] sm:$0xff]  }
 0x907   : > { %v2989_v26 = vld [vmem:[%s3830_s14 + $0x20] sm:$0xff]  }
 0x909   : > { %v1972_v29 = vpop.permute.xlu1 %1971 }
 0x90a   : > { %v1994_v31 = vsel %vm1567_vm14, %v1972_v29, 0 }
 0x90d   : > { %v1970_v34 = vpop.permute.xlu1 %1969 }
 0x910   : > { %v3004_v18 = vpop.eup %3003 }
 0x911   : > { %v1906_v59 = vsel %vm1618_vm9, %v3004_v18, 0.0 }
 0x912   : > { %1907 = vadd.xlane.f32.xlu0 %v1906_v59  ;;  %v2986_v59 = vld [vmem:[%s3830_s14 + $0x8] sm:$0xff]  }
 0x928   : > { %1912 = vrot.lane.b32.xlu0 %v3548_v24, %s3124_s30 }
 0x92c   : > { %1973 = vrot.lane.b32.xlu0 %v3487_v52, %s3125_s26 }
 0x99f   : > { %v1908_v25 = vpop.xlane.xlu0 %1907 }
 0x9a0   : > { %3005 = vrcp.f32 %v1908_v25  ;;  %v2987_v25 = vld [vmem:[%s3830_s14 + $0x10] sm:$0xff]  }
 0x9a3   : > { %v1913_v51 = vpop.permute.xlu0 %1912 }
 0x9a4   : > { %2815 = vmatpush3.bf16.msra.mxu0 %v1913_v51  ;;  %v2988_v51 = vld [vmem:[%s3830_s14 + $0x18] sm:$0xff]  }
 0x9a5   : > { %2816 = vmatprep.subr.bf16.mxu0 %v3117_v56 }
 0x9a7   : > { %v1974_v52 = vpop.permute.xlu0 %1973 }
 0x9a8   : > { %2817 = vmatpush3.bf16.msra.mxu0 %v1921_v57  ;;  %v1997_v32 = vsel %vm1567_vm14, %v1974_v52, 0  ;;  %v2990_v57 = vld [vmem:[%s3830_s14 + $0x28] sm:$0xff]   ;;  %v2628_v52 = vld [vmem:[%s3827_s11] ss:$0 sm:$0xff] }
 0x9a9   : > { %2822 = vmatprep.subr.bf16.mxu0 %v3117_v56 }
 0x9aa   : > { %v3006_v27 = vpop.eup %3005 }
 0x9ab   : > { %v1910_v28 = vmul.f32 %v3006_v27, %v3004_v18  ;;  %v2985_v18 = vld [vmem:[%s3830_s14] sm:$0xff]   ;;  %v2991_v27 = vld [vmem:[%s3830_s14 + $0x30] sm:$0xff]  }
 0x9ad   : > { %v1911_v30 = vpack.c.bf16 %v1910_v28, %v1910_v28 }
 0x9af   : > { %2819 = vmatmul.mubr.msk.bf16.vlgmr.msra.gmra.mrb[24].mxu0 %vm1618_vm9, %v1911_v30 }
 0x9b0   : > { %2826 = vmatprep.mubr.msk.bf16.mxu0 %vm3116_vm11, %v3117_v56 }
 0x9b1   : > { %2823 = vmatpush3.bf16.xpose.msra.mxu0 %v1994_v31 }
 0x9b2   : > { %2824 = vmatprep.subr.bf16.mxu0 %v3117_v56 }
 0x9b9   : > { %2825 = vmatpush3.bf16.xpose.msra.mxu0 %v1997_v32 }
 0x9ba   : > { %2846 = vmatprep.subr.bf16.mxu0 %v3117_v56 }
 0x9c0   : > { %2827 = vmatmul.mubr.msk.bf16.vlgmr.msra.gmra.mrb[28].mxu0 %vm1567_vm14, %v1970_v34  ;;  %v2629_v34 = vld [vmem:[%s3828_s12] ss:$0 sm:$0xff] }
 0x9c1   : > { %2850 = vmatprep.mubr.msk.bf16.mxu0 %vm3116_vm11, %v3117_v56  ;;  %2847 = vmatpush3.bf16.msra.mxu0 %v2983_v23 }
 0x9c2   : > { %2848 = vmatprep.subr.bf16.mxu0 %v3117_v56 }
 0xa82   : > { %v1957_v35 = vpop.f32.mrb[24].mxu0 }
 0xa83   : > { %v2820_v36 = vpop.f32.mrb[25].mxu0 }
 0xa84   : > { %v1960_v37 = vpop.f32.mrb[26].mxu0 }
 0xa85   : > { %v2821_v38 = vpop.f32.mrb[27].mxu0  ;;  %v2992_v37 = vld [vmem:[%s3830_s14 + $0x38] sm:$0xff]  }
 0xa93   : > { %v2033_v40 = vpop.f32.mrb[28].mxu0 }
 0xa94   : > { %v2034_v41 = vadd.f32 %v2033_v40, %v3531_v10  ;;  %v2828_v42 = vpop.f32.mrb[29].mxu0 }
 0xa95   : > { %v2036_v43 = vpop.f32.mrb[30].mxu0 }
 0xa96   : > { %v2829_v44 = vpop.f32.mrb[31].mxu0  ;;  %v2039_v45 = vadd.f32 %v2034_v41, %v3535_v12 }
 0xa98   : > { %v2040_v46 = vsel %vm1618_vm9, %v2039_v45, -inf }
 0xa99   : > { %2041 = vmax.xlane.f32.xlu0 %v2040_v46 }
 0xaaf   : > { %2052 = vrot.lane.b32.xlu0 %v3548_v24, %s3125_s26 }
 0xab3   : > { %1824 = vrot.lane.b32.xlu0 %v3605_v7, %s3126_s19  ;;  %v2624_v7 = vld [vmem:[%s3826_s10] ss:$0 sm:$0xff] }
 0xb26   : > { %v2042_v47 = vpop.xlane.xlu0 %2041 }
 0xb27   : > { %v2043_v48 = vsub.f32 %v2039_v45, %v2042_v47 }
 0xb29   : > { %v2044_v49 = vmul.f32 1.442695, %v2043_v48 }
 0xb2a   : > { %v2053_v50 = vpop.permute.xlu0 %2052 }
 0xb2b   : > { %3007 = vpow2.f32 %v2044_v49  ;;  %2831 = vmatpush3.bf16.msra.mxu1 %v2053_v50 }
 0xb2c   : > { %2832 = vmatprep.subr.bf16.mxu1 %v3117_v56 }
 0xb2e   : > { %v1825_v10 = vpop.permute.xlu0 %1824 }
 0xb2f   : > { %1828 = vst.msk [vmem:[#allocation4] sm:$0xff] %vm1827_vm10, %v1825_v10 }
 0xb35   : > { %v3008_v12 = vpop.eup %3007 }
 0xb36   : > { %v2046_v54 = vsel %vm1618_vm9, %v3008_v12, 0.0 }
 0xb37   : > { %2047 = vadd.xlane.f32.xlu1 %v2046_v54 }
 0xb48   : > { %2054 = vrot.lane.b32.xlu1 %v3557_v5, %s3125_s26  ;;  %v2981_v5 = vld [vmem:[%s3825_s9] sm:$0xff]   ;;  %s3128_s26 = smov 24  }
 0xb4c   : > { %1964 = vrot.lane.b32.xlu1 %v1957_v35, %s3127_s20  ;;  %s3013_s20 = scalar_lea.vmem %s3717_s21, 128 }
 0xb4d   : > { %p3014_p11 = scmp.ne.s32.totalorder %s3717_s21, %s3013_s20  ;;  %p3021_p1 = scmp.lt.s32.totalorder %s3019_s3, %s3013_s20 }
 0xb4f   : > { %p3015_p12 = pnand %p3014_p11, %p3265_p5  ;;  %p3022_p2 = por %p3021_p1, %p3020_p0 }
 0xb51   : > { %p3016_p13 = pneg %p3015_p12 }
 0xb53   : > { %p3023_p3 = pnand %p3022_p2, %p3016_p13 }
 0xbc4   : > { %v2048_v24 = vpop.xlane.xlu1 %2047 }
 0xbc5   : > { %3009 = vrcp.f32 %v2048_v24 }
 0xbc8   : > { %v2055_v53 = vpop.permute.xlu1 %2054 }
 0xbc9   : > { %v2061_v55 = vsel %vm1643_vm7, %v2055_v53, 0 }
 0xbca   : > { %2833 = vmatpush3.bf16.msra.mxu1 %v2061_v55 }
 0xbcb   : > { %2838 = vmatprep.subr.bf16.mxu1 %v3117_v56 }
 0xbcc   : > { %v1965_v58 = vpop.permute.xlu1 %1964 }
 0xbcd   : > { %1968 = vst.msk [vmem:[#allocation4] sm:$0xff] %vm1967_vm12, %v1965_v58 }
 0xbcf   : > { %v3010_v60 = vpop.eup %3009 }
 0xbd0   : > { %v2050_v61 = vmul.f32 %v3010_v60, %v3008_v12 }
 0xbd2   : > { %v2051_v62 = vpack.c.bf16 %v2050_v61, %v2050_v61 }
 0xbd4   : > { %2835 = vmatmul.mubr.msk.bf16.vlgmr.msra.gmra.mrb[20].mxu1 %vm1618_vm9, %v2051_v62 }
 0xbd5   : > { %2842 = vmatprep.mubr.msk.bf16.mxu1 %vm3116_vm11, %v3117_v56  ;;  %2839 = vmatpush3.bf16.msra.mxu1 %v2981_v5 }
 0xbd6   : > { %2840 = vmatprep.subr.bf16.mxu1 %v3117_v56 }
 0xbd9   : > { %2841 = vmatpush3.bf16.msra.mxu1 %v2982_v63 }
 0xbda   : > { %2854 = vmatprep.subr.bf16.mxu1 %v3117_v56 }
 0xca7   : > { %v2097_v0 = vpop.f32.mrb[20].mxu1 }
 0xca8   : > { %2104 = vrot.lane.b32.xlu0 %v2097_v0, %s3128_s26  ;;  %v2836_v1 = vpop.f32.mrb[21].mxu1 }
 0xca9   : > { %v2100_v2 = vpop.f32.mrb[22].mxu1 }
 0xcaa   : > { %v2837_v39 = vpop.f32.mrb[23].mxu1 }
 0xd1a   : > { %v2105_v3 = vpop.permute.xlu0 %2104 }
 0xd1b   : > { %2108 = vst.msk [vmem:[#allocation4] sm:$0xff] %vm2107_vm13, %v2105_v3 }
 0xd22   : > { %v2109_v4 = vld [vmem:[#allocation4] sm:$0xff] }
 0xd23   : > { %v2110_v6 = vpack.c.bf16 %v2109_v4, %v2109_v4 }
 0xd25   : > { %2843 = vmatmul.mubr.msk.bf16.vlgmr.msra.gmra.mrb[24].mxu1 %vm648_vm0, %v2110_v6 }
 0xd26   : > { %2870 = vmatprep.mubr.msk.bf16.mxu1 %vm3116_vm11, %v3117_v56  ;;  %2855 = vmatpush3.bf16.msra.mxu1 %v2985_v18 }
 0xd27   : > { %2856 = vmatprep.subr.bf16.mxu1 %v3117_v56 }
 0xd2a   : > { %2857 = vmatpush3.bf16.msra.mxu1 %v2986_v59 }
 0xd2b   : > { %2858 = vmatprep.subr.bf16.mxu1 %v3117_v56 }
 0xd2e   : > { %2859 = vmatpush3.bf16.msra.mxu1 %v2987_v25 }
 0xd2f   : > { %2860 = vmatprep.subr.bf16.mxu1 %v3117_v56 }
 0xd32   : > { %2861 = vmatpush3.bf16.msra.mxu1 %v2988_v51 }
 0xd33   : > { %2862 = vmatprep.subr.bf16.mxu1 %v3117_v56 }
 0xd36   : > { %2863 = vmatpush3.bf16.msra.mxu1 %v2989_v26 }
 0xd37   : > { %2864 = vmatprep.subr.bf16.mxu1 %v3117_v56 }
 0xd3a   : > { %2865 = vmatpush3.bf16.msra.mxu1 %v2990_v57 }
 0xd3b   : > { %2866 = vmatprep.subr.bf16.mxu1 %v3117_v56 }
 0xd3e   : > { %2867 = vmatpush3.bf16.msra.mxu1 %v2991_v27 }
 0xd3f   : > { %2868 = vmatprep.subr.bf16.mxu1 %v3117_v56 }
 0xd42   : > { %2869 = vmatpush3.bf16.msra.mxu1 %v2992_v37 }
 0xdf8   : > { %v2171_v8 = vpop.f32.mrb[24].mxu1 }
 0xdf9   : > { %v2172_v11 = vadd.f32 %v2624_v7, %v2171_v8  ;;  %v2844_v13 = vpop.f32.mrb[25].mxu1 }
 0xdfa   : > { %v2174_v14 = vpop.f32.mrb[26].mxu1 }
 0xdfb   : > { %v3664_v15 = vadd.f32 %v2172_v11, %v3332_v33  ;;  %v2845_v16 = vpop.f32.mrb[27].mxu1  ;;  %v2984_v33 = vld [vmem:[%s3829_s13 + $0x8] sm:$0xff]  }
 0xdfc   : > { %2849 = vmatpush3.bf16.msra.mxu0 %v2984_v33 }
 0xdfd   : > { %v2178_v17 = vsel %vm648_vm0, %v3664_v15, 0.0 }
 0xdfe   : > { %2179 = vadd.xlane.f32.xlu1 %v2178_v17 }
 0xe8b   : > { %v2180_v19 = vpop.xlane.xlu1 %2179 }
 0xe8c   : > { %v2181_v20 = vmul.f32 0.03125, %v2180_v19 }
 0xe8e   : > { %v2182_v21 = vsub.f32 %v3664_v15, %v2181_v20 }
 0xe90   : > { %v2183_v22 = vmul.f32 %v2182_v21, %v2182_v21 }
 0xe92   : > { %v2184_v9 = vsel %vm648_vm0, %v2183_v22, 0.0 }
 0xe93   : > { %2185 = vadd.xlane.f32.xlu0 %v2184_v9 }
 0xf20   : > { %v2186_v28 = vpop.xlane.xlu0 %2185 }
 0xf21   : > { %v2187_v29 = vmul.f32 0.03125, %v2186_v28 }
 0xf23   : > { %v2188_v30 = vadd.f32 1e-05, %v2187_v29 }
 0xf25   : > { %3011 = vrsqrt.f32 %v2188_v30 }
 0xf2f   : > { %v3012_v31 = vpop.eup %3011 }
 0xf30   : > { %v2190_v32 = vmul.f32 %v3012_v31, %v2182_v21 }
 0xf32   : > { %v2198_v35 = vmul.f32 %v2628_v52, %v2190_v32 }
 0xf34   : > { %v2206_v36 = vadd.f32 %v2629_v34, %v2198_v35 }
 0xf36   : > { %v2207_v56 = vpack.c.bf16 %v2206_v36, %v2206_v36 }
 0xf38   : > { %2851 = vmatmul.mubr.msk.bf16.vlgmr.msra.gmra.mrb[32].mxu0 %vm648_vm0, %v2207_v56 }
0x100b   : > { %v2261_v38 = vpop.f32.mrb[32].mxu0 }
0x100c   : > { %v2267_v40 = vmax.f32 %v2261_v38, 0.0  ;;  %v2852_v41 = vpop.f32.mrb[33].mxu0 }
0x100d   : > { %v2264_v42 = vpop.f32.mrb[34].mxu0 }
0x100e   : > { %v2268_v43 = vpack.c.bf16 %v2267_v40, %v2267_v40  ;;  %v2853_v44 = vpop.f32.mrb[35].mxu0 }
0x1010   : > { %2871 = vmatmul.mubr.bf16.vlgmr.msra.gmra.mrb[28].mxu1 %v2268_v43 }
0x1011   : > { %3026 = shalt.err (!%p3023_p3)
}
0x1012   : > { %s3027_s30 = scalar_lea.hbm %s3727_s23, 128  ;;  %s3031_s1 = scalar_lea.hbm %s3833_s17, 256 }
0x1013   : > { %p3028_p4 = scmp.ne.s32.totalorder %s3727_s23, %s3027_s30  ;;  %p3032_p9 = scmp.lt.u32.totalorder %s3727_s23, %s3833_s17 }
0x1014   : > { %p3033_p10 = scmp.lt.u32.totalorder %s3031_s1, %s3027_s30  ;;  %p3035_p12 = scmp.lt.u32.totalorder %s3027_s30, %s3727_s23 }
0x1015   : > { %p3029_p7 = pnand %p3028_p4, %p3265_p5 }
0x1016   : > { %p3034_p11 = por %p3033_p10, %p3032_p9 }
0x1017   : > { %p3030_p8 = pneg %p3029_p7 }
0x1018   : > { %p3036_p13 = por %p3035_p12, %p3034_p11 }
0x101a   : > { %p3037_p0 = pnand %p3036_p13, %p3030_p8 }
0x101c   : > { %3040 = shalt.err (!%p3037_p0)
}
0x101d   : > { %s3130_s3 = smov 4   ;;  %s3872_s20 = smov 64  }
0x101e   : > { %s3873_s4 = scalar_lea.sflag [#allocation6], %s3350_s29  ;;  %s3874_s25 = sshll.u32 %s3248_s0, 7 }
0x101f   : > { %2906 = dma.vmem_to_hbm [thread:$0]  (%p3265_p5), %s3717_s21, 128, %s3727_s23, %s3873_s4, %s3872_s20, %s3872_s20, %s3130_s3  }
0x1020   : > { %s3761_s26 = scalar_lea.hbm %s3834_s18, %s3874_s25  ;;  %s2393_s1 = scalar_lea.sflag [#allocation8], %s3350_s29 }
0x1021   : > { %s3041_s27 = scalar_lea.vmem %s3719_s22, 128  ;;  %s3131_s5 = smov [#allocation7]  }
0x1022   : > { %p3042_p1 = scmp.ne.s32.totalorder %s3719_s22, %s3041_s27  ;;  %s3045_s6 = sshll.u32 %s3131_s5, 4  ;;  %s3046_s6 = int_to_ptr.vmem [resolvable:$false] %s3045_s6 }
0x1023   : > { %s3047_s7 = scalar_lea.vmem %s3046_s6, 256  ;;  %p3048_p4 = scmp.lt.s32.totalorder %s3719_s22, %s3046_s6 }
0x1024   : > { %p3043_p2 = pnand %p3042_p1, %p3265_p5  ;;  %p3049_p7 = scmp.lt.s32.totalorder %s3047_s7, %s3041_s27 }
0x1026   : > { %p3044_p3 = pneg %p3043_p2  ;;  %p3050_p8 = por %p3049_p7, %p3048_p4 }
0x1028   : > { %p3051_p9 = pnand %p3050_p8, %p3044_p3 }
0x102a   : > { %3054 = shalt.err (!%p3051_p9)
}
0x102b   : > { %s3055_s4 = scalar_lea.hbm %s3761_s26, 128  ;;  %s3059_s5 = scalar_lea.hbm %s3834_s18, 256 }
0x102c   : > { %p3056_p10 = scmp.ne.s32.totalorder %s3761_s26, %s3055_s4  ;;  %p3060_p13 = scmp.lt.u32.totalorder %s3761_s26, %s3834_s18 }
0x102d   : > { %p3061_p0 = scmp.lt.u32.totalorder %s3059_s5, %s3055_s4  ;;  %p3063_p2 = scmp.lt.u32.totalorder %s3055_s4, %s3761_s26 }
0x102e   : > { %p3057_p11 = pnand %p3056_p10, %p3265_p5 }
0x102f   : > { %p3062_p1 = por %p3061_p0, %p3060_p13 }
0x1030   : > { %p3058_p12 = pneg %p3057_p11 }
0x1031   : > { %p3064_p3 = por %p3063_p2, %p3062_p1 }
0x1033   : > { %p3065_p4 = pnand %p3064_p3, %p3058_p12 }
0x1035   : > { %3068 = shalt.err (!%p3065_p4)
}
0x1036   : > { %2907 = dma.vmem_to_hbm [thread:$0]  (%p3265_p5), %s3719_s22, 128, %s3761_s26, %s2393_s1, %s3872_s20, %s3872_s20, %s3130_s3  }
0x1037   : > { %v2633_v45 = vld [vmem:[%s3831_s15] ss:$0 sm:$0xff]  ;;  %s2587_s19 = sshll.u32 %s3277_s24, 2 }
0x1038   : > { %s645_s29 = scalar_lea.vmem %s3832_s16, %s2587_s19 }
0x10e3   : > { %v2374_v46 = vpop.f32.mrb[28].mxu1 }
0x10e4   : > { %v2375_v47 = vadd.f32 %v2633_v45, %v2374_v46  ;;  %v2872_v48 = vpop.f32.mrb[29].mxu1 }
0x10e5   : > { %v2377_v49 = vpop.f32.mrb[30].mxu1 }
0x10e6   : > { %v2380_v50 = vadd.f32 %v2375_v47, %v3664_v15  ;;  %v2873_v10 = vpop.f32.mrb[31].mxu1 }
0x10e8   : > { %v2381_v12 = vpack.c.bf16 %v2380_v50, %v2380_v50 }
0x10ea   : > { %2382 = vst.msk [vmem:[%s645_s29] sm:$0xf] %vm765_vm1, %v2381_v12 }
0x10eb PF: > { %s3875_s22 = sld [smem:[#allocation13_spill]]  ;;  %s3876_s3 = sld [smem:[#allocation11_spill]] }
0x10f1   : > { %p2917_p5 = scmp.ge.s32.totalorder %s3875_s22, 2  ;;  %s2447_s26 = sand.u32 1, %s3876_s3  }
0x10f2   : > { %s2448_s24 = scalar_lea.sflag [#allocation6], %s2447_s26 }
0x10f3   : > { %p2911_p7 = pnand %p2917_p5, %p3269_p6 }
0x10f5   : > { %3086 = dma.done.wait (!%p2911_p7), %s2448_s24, 128  }
0x10f6   : > { %3088 = vsyncadd (!%p2911_p7), %s2448_s24, 4294967168  ;;  %s2457_s1 = scalar_lea.sflag [#allocation8], %s2447_s26 }
0x10f7   : > { %3090 = dma.done.wait (!%p2911_p7), %s2457_s1, 128  }
0x10f8   : > { %3092 = vsyncadd (!%p2911_p7), %s2457_s1, 4294967168  ;;  %s3878_s30 = sld [smem:[#allocation14_spill]]  ;;  %s3879_s4 = sld [smem:[#allocation12_spill]] }
0x10f9   : > { %s3880_s29 = sld [smem:[#allocation15_spill]]  ;;  %s3881_s27 = smov %s3099_s28 }
0x10fe   : > { %p32_p8 = scmp.ge.s32.totalorder %s3878_s30, 4   ;;  %s3882_s28 = smov %s3879_s4 }
0x1100   :  { %34 = sbr.rel (!%p32_p8) target bundleno = 14 (0xe), region = 157 }
0x1107   :  { %2462 = vsyncpa [#allocation6], 1 }
0x1108   :  { %2464 = vsyncpa [#allocation6 + $0x1], 1 }
0x1109   :  { %2465 = vsyncpa [#allocation8], 1 }
0x110a   :  { %2467 = vsyncpa [#allocation8 + $0x1], 1 }

</bundles_post_ra>
